<compile_context>
chip_gen: v6e
topology: v6e:2x2x1
jax: 0.10.0
libtpu: 0.0.40
codegen_flags: <defaults>
</compile_context>

<pallas_src>
import numpy as np
import jax
import jax.numpy as jnp
from jax.experimental import pallas as pl
from jax.experimental.pallas import tpu as pltpu


# ----------------------------------------------------------------------------- helpers
def _round_up(x, m):
    return ((x + m - 1) // m) * m


def _vmem_tile_bytes(rows, cols, itemsize):
    # VMEM pads the trailing two dims to (8, 128) tiles.
    return _round_up(rows, 8) * _round_up(cols, 128) * itemsize


def _tpu_vmem_and_cores():
    """Best-effort chip query; falls back to conservative v5e/v6e-like defaults."""
    try:
        info = pltpu.get_tpu_info()
        vmem = int(getattr(info, "vmem_capacity_bytes", 128 * 2**20))
        # Heuristic: only v7x has 64 MiB VMEM per TensorCore, and it has 2 TCs/chip.
        cores = 2 if vmem <= 64 * 2**20 else 1
        return vmem, cores
    except Exception:
        return 128 * 2**20, 1


def _vmem_limit_bytes(weight_arrays, in_rows, out_rows, TB, hidden, half, cond_dim,
                      weight_buffers, vmem_cap):
    wbytes = 0
    for w in weight_arrays:                       # stacked (L, r, c); biases are (L, r, 1)
        L, r, c = w.shape
        wbytes += L * _vmem_tile_bytes(r, c, w.dtype.itemsize)
    wbytes *= weight_buffers                      # 1 if single-buffered, else 2
    abytes = 2 * _vmem_tile_bytes(in_rows, TB, 4)     # input block, double-buffered
    abytes += 2 * _vmem_tile_bytes(out_rows, TB, 4)   # output block, double-buffered
    # in-body live registers / temporaries (Ta, Tb, C, h1, h2, s, t, exp, s_acc, ...)
    tbytes = _vmem_tile_bytes(4 * hidden + 8 * half + cond_dim, TB, 4)
    est = wbytes + abytes + tbytes
    # v7x: 64 MiB/TensorCore -> leave headroom for Mosaic internal scratch.
    # v5e/v6e: 128 MiB physical -> allow ~100 MiB before weight streaming is needed.
    hard_cap = 52 * 2**20 if vmem_cap <= 64 * 2**20 else 100 * 2**20
    return int(min(hard_cap, max(32 * 2**20, int(1.5 * est))))


# ------------------------------------------------------------------------------ kernel
def _make_flow_kernel(num_layers, half, cond_dim, matmul_dtype):
    """Kernel body: activations feature-major (feature, TB), batch tile on the lanes."""
    t_dim = 2 * half

    def kernel(x_ref,
               w1u_ref, w1c_ref, b1_ref,
               w2_ref, b2_ref,
               w3s_ref, w3t_ref, b3s_ref, b3t_ref,
               out_ref):
        X = x_ref[...]                               # (t_dim + cond_dim, TB), f32
        Ta = X[:half, :]                             # first-half features
        Tb = X[half:t_dim, :]                        # second-half features
        C = X[t_dim:, :].astype(matmul_dtype)        # conditioning, cast once for the MXU
        s_acc = jnp.zeros((half, X.shape[1]), jnp.float32)

        # TODO(synk): if num_layers grows beyond ~8, switch to lax.fori_loop with dynamic
        #             weight indexing instead of static unrolling.
        for l in range(num_layers):
            if l % 2 == 0:                           # mask = first half -> transform Ta
                unmasked, masked = Tb, Ta
            else:                                    # mask = second half -> transform Tb
                unmasked, masked = Ta, Tb
            u = unmasked.astype(matmul_dtype)

            # net: Linear -> ReLU -> Linear -> ReLU -> Linear
            # h1 = W1 @ cat([unmasked, cond]) == W1u @ unmasked + W1c @ cond
            # TODO(synk): with K=half/cond_dim this is mostly MXU zero-padding; swap to
            #             VPU broadcast-FMAs only if a bundle dump shows vmatmul/vpop on
            #             the critical path.
            h1 = (jnp.dot(w1u_ref[l], u, preferred_element_type=jnp.float32)
                  + jnp.dot(w1c_ref[l], C, preferred_element_type=jnp.float32)
                  + b1_ref[l])                       # (hidden, TB)
            h1 = jnp.maximum(h1, 0.0).astype(matmul_dtype)
            h2 = jnp.maximum(
                jnp.dot(w2_ref[l], h1, preferred_element_type=jnp.float32) + b2_ref[l],
                0.0).astype(matmul_dtype)            # (hidden, TB)

            # Third linear kept as two small dots (s / t_shift) so no sublane-crossing
            # slice of a fused (2*half, TB) result is needed.
            s = jnp.tanh(jnp.dot(w3s_ref[l], h2, preferred_element_type=jnp.float32)
                         + b3s_ref[l])               # (half, TB)
            t_shift = (jnp.dot(w3t_ref[l], h2, preferred_element_type=jnp.float32)
                       + b3t_ref[l])                 # (half, TB)

            y_masked = masked * jnp.exp(s) + t_shift     # lane-dense elementwise
            if l % 2 == 0:
                Ta = y_masked
            else:
                Tb = y_masked
            s_acc = s_acc + s

        # Single consolidated output block: rows [Ta ; Tb ; log_det].
        out_ref[:half, :] = Ta
        out_ref[half:t_dim, :] = Tb
        out_ref[t_dim:, :] = jnp.sum(s_acc, axis=0, keepdims=True)  # one XLU reduction

    return kernel


# ----------------------------------------------------------------------------- wrapper
def conditional_flow_forward(T, cond, params, *, block_b=2048, matmul_dtype=jnp.float32):
    """Pallas-backed forward(T, cond) -> (z, log_det_total)."""
    B, t_dim = T.shape
    assert t_dim % 2 == 0, "kernel assumes even t_dim (equal masked/unmasked halves)"
    half = t_dim // 2
    cond_dim = cond.shape[1]
    w1u, w1c, b1, w2, b2, w3s, w3t, b3s, b3t = params
    num_layers = w1u.shape[0]
    hidden = w2.shape[1]

    # Single stacked feature-major activation array: rows [T ; cond], batch on the lanes.
    # One fused concat+transpose pass; no per-half transposes, no padding pass.
    X = jnp.concatenate([T.astype(jnp.float32), cond.astype(jnp.float32)], axis=1).T

    if matmul_dtype != jnp.float32:
        cast_w = lambda w: w.astype(matmul_dtype)
    else:
        cast_w = lambda w: w.astype(jnp.float32)
    weight_args = [cast_w(w1u), cast_w(w1c), b1.astype(jnp.float32),
                   cast_w(w2), b2.astype(jnp.float32),
                   cast_w(w3s), cast_w(w3t),
                   b3s.astype(jnp.float32), b3t.astype(jnp.float32)]

    in_rows = t_dim + cond_dim
    out_rows = t_dim + 1

    # Batch tile on the lane axis: either the full extent or a multiple of 128 lanes.
    vmem_cap, n_cores = _tpu_vmem_and_cores()
    LANE = 128
    if B <= block_b:
        TB = B
    else:
        TB = max(LANE, (block_b // LANE) * LANE)
    num_tiles = -(-B // TB)
    # v7x has 2 TensorCores: avoid an odd tile count that leaves one core idle for part
    # of the wall time (no-op on single-core v5e/v6e). The ragged edge block is handled
    # by Pallas masked writes, so no host-side padding is needed.
    if n_cores >= 2 and num_tiles > 1 and num_tiles % 2 == 1:
        TB = _round_up(-(-B // (num_tiles - 1)), LANE)
        num_tiles = -(-B // TB)
    grid = (num_tiles,)

    kernel = _make_flow_kernel(num_layers, half, cond_dim, matmul_dtype)
    out_shape = jax.ShapeDtypeStruct((out_rows, B), jnp.float32)

    def call(single_buffer_weights):
        def wspec(w):
            ndim = w.ndim

            def idx(i):
                # Constant block index -> DMA'd once, VMEM-resident across all tiles.
                return (0,) * ndim

            if single_buffer_weights:
                return pl.BlockSpec(tuple(w.shape), idx, pipeline_mode=pl.Buffered(1))
            return pl.BlockSpec(tuple(w.shape), idx)

        vmem_limit = _vmem_limit_bytes(
            weight_args, in_rows, out_rows, TB, hidden, half, cond_dim,
            weight_buffers=1 if single_buffer_weights else 2, vmem_cap=vmem_cap)
        # TODO(synk): if num_layers*hidden^2 ever outgrows the cap, stream weights per
        #             layer (pltpu.emit_pipeline) instead of keeping them VMEM-resident.

        return pl.pallas_call(
            kernel,
            grid=grid,
            out_shape=out_shape,
            in_specs=[pl.BlockSpec((in_rows, TB), lambda i: (0, i))]
                     + [wspec(w) for w in weight_args],
            out_specs=pl.BlockSpec((out_rows, TB), lambda i: (0, i)),
            compiler_params=pltpu.CompilerParams(
                dimension_semantics=("parallel",),
                vmem_limit_bytes=vmem_limit),
        )(X, *weight_args)

    try:
        out = call(single_buffer_weights=True)
    except Exception:
        # pipeline_mode=pl.Buffered(1) unavailable on this jax/Mosaic version; fall back
        # to default double-buffered weight blocks (correctness identical).
        out = call(single_buffer_weights=False)

    z = out[:t_dim, :].T          # (B, t_dim): single transpose back to batch-major
    log_det = out[t_dim, :]       # (B,)
    return z, log_det


# ------------------------------------------------------------------------------- init
def init_params(key, t_dim, cond_dim, hidden_dim, num_layers):
    """PyTorch-Linear-style init; weights kept in torch (fout, fin) layout.

    W1 is split column-wise into the unmasked-T part and the cond part; W3/B3 are split
    row-wise into s / t halves (params.chunk(2)). Biases are stored as (fout, 1) columns
    for lane-broadcast in the kernel.
    """
    half = t_dim // 2
    nn_in = half + cond_dim          # num_unmasked + cond_dim
    nn_out = 2 * half                # num_masked * 2

    def linear(k, fin, fout):
        bound = 1.0 / np.sqrt(fin)
        kw, kb = jax.random.split(k)
        W = jax.random.uniform(kw, (fout, fin), jnp.float32, -bound, bound)
        b = jax.random.uniform(kb, (fout,), jnp.float32, -bound, bound)
        return W, b

    keys = jax.random.split(key, num_layers)
    names = ("w1u", "w1c", "b1", "w2", "b2", "w3s", "w3t", "b3s", "b3t")
    lists = {n: [] for n in names}
    for l in range(num_layers):
        k1, k2, k3 = jax.random.split(keys[l], 3)
        W1, B1 = linear(k1, nn_in, hidden_dim)
        W2, B2 = linear(k2, hidden_dim, hidden_dim)
        W3, B3 = linear(k3, hidden_dim, nn_out)
        lists["w1u"].append(W1[:, :half])       # (hidden, half)
        lists["w1c"].append(W1[:, half:])       # (hidden, cond_dim)
        lists["b1"].append(B1[:, None])         # (hidden, 1)
        lists["w2"].append(W2)                  # (hidden, hidden)
        lists["b2"].append(B2[:, None])
        lists["w3s"].append(W3[:half, :])       # rows producing s
        lists["w3t"].append(W3[half:, :])       # rows producing t_shift
        lists["b3s"].append(B3[:half, None])
        lists["b3t"].append(B3[half:, None])
    stack = lambda xs: jnp.stack(xs, axis=0)
    return tuple(stack(lists[n]) for n in names)


# --------------------------------------------------------------------------- reference
def flow_reference(T, cond, params, t_dim):
    """Pure-JAX (f32) mirror of the PyTorch forward (mask / concat / chunk form)."""
    half = t_dim // 2
    w1u, w1c, b1, w2, b2, w3s, w3t, b3s, b3t = params
    num_layers = w1u.shape[0]
    z = jnp.asarray(T, jnp.float32)
    cond = jnp.asarray(cond, jnp.float32)
    ld = jnp.zeros((T.shape[0],), jnp.float32)
    for l in range(num_layers):
        if l % 2 == 0:
            mask = np.arange(t_dim) < half
        else:
            mask = np.arange(t_dim) >= half
        inv = ~mask
        W1 = jnp.concatenate([w1u[l], w1c[l]], axis=1)          # (hidden, nn_in)
        h = jnp.concatenate([z[:, np.where(inv)[0]], cond], axis=1)
        h1 = jnp.maximum(h @ W1.T + b1[l][:, 0], 0.0)
        h2 = jnp.maximum(h1 @ w2[l].T + b2[l][:, 0], 0.0)
        s = jnp.tanh(h2 @ w3s[l].T + b3s[l][:, 0])
        t_shift = h2 @ w3t[l].T + b3t[l][:, 0]
        y_masked = z[:, np.where(mask)[0]] * jnp.exp(s) + t_shift
        z = z.at[:, np.where(mask)[0]].set(y_masked)
        ld = ld + jnp.sum(s, axis=1)
    return z, ld


# -------------------------------------------------------------------------------- main
if __name__ == "__main__":
    B, T_DIM, COND_DIM, HIDDEN, N_LAYERS = 8, 4, 4, 32, 6

    key = jax.random.PRNGKey(0)
    k_t, k_c, k_p, k_t2, k_c2 = jax.random.split(key, 5)
    T = jax.random.normal(k_t, (B, T_DIM), jnp.float32)
    cond = jax.random.normal(k_c, (B, COND_DIM), jnp.float32)
    params = init_params(k_p, T_DIM, COND_DIM, HIDDEN, N_LAYERS)

    # Small batch: single full-extent tile.
    z, log_det = conditional_flow_forward(T, cond, params)
    jax.block_until_ready((z, log_det))
    z_ref, log_det_ref = flow_reference(T, cond, params, T_DIM)
    np.testing.assert_allclose(np.asarray(z), np.asarray(z_ref), rtol=2e-5, atol=2e-5)
    np.testing.assert_allclose(np.asarray(log_det), np.asarray(log_det_ref),
                               rtol=2e-5, atol=2e-5)

    # Larger ragged batch: exercises the batch grid, 128-multiple lane tiles, the masked
    # edge block (no host-side padding) and the v7x even-tile rounding path if on v7x.
    B2 = 1300
    T2 = jax.random.normal(k_t2, (B2, T_DIM), jnp.float32)
    cond2 = jax.random.normal(k_c2, (B2, COND_DIM), jnp.float32)
    z2, ld2 = conditional_flow_forward(T2, cond2, params, block_b=512)
    jax.block_until_ready((z2, ld2))
    z2_ref, ld2_ref = flow_reference(T2, cond2, params, T_DIM)
    np.testing.assert_allclose(np.asarray(z2), np.asarray(z2_ref), rtol=2e-5, atol=2e-5)
    np.testing.assert_allclose(np.asarray(ld2), np.asarray(ld2_ref), rtol=2e-5, atol=2e-5)

    # bf16 MXU path (f32 accumulate); loose tolerance vs the f32 reference.
    z4, ld4 = conditional_flow_forward(T, cond, params, matmul_dtype=jnp.bfloat16)
    jax.block_until_ready((z4, ld4))
    np.testing.assert_allclose(np.asarray(z4), np.asarray(z_ref), rtol=2e-1, atol=2e-1)
    np.testing.assert_allclose(np.asarray(ld4), np.asarray(log_det_ref),
                               rtol=2e-1, atol=2e-1)

    print("KERNEL_OK")
</pallas_src>

<mosaic_0001>
module attributes {stable_mosaic.version = 11 : i64} {
  func.func @kernel(%arg0: i32, %arg1: memref<8x8xf32, #tpu.memory_space<vmem>>, %arg2: memref<6x32x2xf32, #tpu.memory_space<vmem>>, %arg3: memref<6x32x4xf32, #tpu.memory_space<vmem>>, %arg4: memref<6x32x1xf32, #tpu.memory_space<vmem>>, %arg5: memref<6x32x32xf32, #tpu.memory_space<vmem>>, %arg6: memref<6x32x1xf32, #tpu.memory_space<vmem>>, %arg7: memref<6x2x32xf32, #tpu.memory_space<vmem>>, %arg8: memref<6x2x32xf32, #tpu.memory_space<vmem>>, %arg9: memref<6x2x1xf32, #tpu.memory_space<vmem>>, %arg10: memref<6x2x1xf32, #tpu.memory_space<vmem>>, %arg11: memref<5x8xf32, #tpu.memory_space<vmem>>) attributes {dimension_semantics = [#tpu.dimension_semantics<parallel>], iteration_bounds = array<i64: 1>, scalar_prefetch = 0 : i64, scratch_operands = 0 : i64, tpu.core_type = #tpu.core_type<tc>, window_params = [{transform_indices = @transform_0, window_bounds = array<i64: 8, 8>}, {pipeline_mode = #tpu.pipeline_mode<synchronous>, transform_indices = @transform_1, window_bounds = array<i64: 6, 32, 2>}, {pipeline_mode = #tpu.pipeline_mode<synchronous>, transform_indices = @transform_2, window_bounds = array<i64: 6, 32, 4>}, {pipeline_mode = #tpu.pipeline_mode<synchronous>, transform_indices = @transform_3, window_bounds = array<i64: 6, 32, 1>}, {pipeline_mode = #tpu.pipeline_mode<synchronous>, transform_indices = @transform_4, window_bounds = array<i64: 6, 32, 32>}, {pipeline_mode = #tpu.pipeline_mode<synchronous>, transform_indices = @transform_5, window_bounds = array<i64: 6, 32, 1>}, {pipeline_mode = #tpu.pipeline_mode<synchronous>, transform_indices = @transform_6, window_bounds = array<i64: 6, 2, 32>}, {pipeline_mode = #tpu.pipeline_mode<synchronous>, transform_indices = @transform_7, window_bounds = array<i64: 6, 2, 32>}, {pipeline_mode = #tpu.pipeline_mode<synchronous>, transform_indices = @transform_8, window_bounds = array<i64: 6, 2, 1>}, {pipeline_mode = #tpu.pipeline_mode<synchronous>, transform_indices = @transform_9, window_bounds = array<i64: 6, 2, 1>}, {transform_indices = @transform_10, window_bounds = array<i64: 5, 8>}]} {
    %c0 = arith.constant 0 : index
    %c0_0 = arith.constant 0 : index
    %0 = vector.load %arg1[%c0, %c0_0] : memref<8x8xf32, #tpu.memory_space<vmem>>, vector<8x8xf32>
    %1 = vector.extract_strided_slice %0 {offsets = [0, 0], sizes = [2, 8], strides = [1, 1]} : vector<8x8xf32> to vector<2x8xf32>
    %2 = vector.extract_strided_slice %0 {offsets = [2, 0], sizes = [2, 8], strides = [1, 1]} : vector<8x8xf32> to vector<2x8xf32>
    %3 = vector.extract_strided_slice %0 {offsets = [4, 0], sizes = [4, 8], strides = [1, 1]} : vector<8x8xf32> to vector<4x8xf32>
    %cst = arith.constant 0.000000e+00 : f32
    %4 = vector.broadcast %cst : f32 to vector<2x8xf32>
    %c0_1 = arith.constant 0 : index
    %c0_2 = arith.constant 0 : index
    %c0_3 = arith.constant 0 : index
    %5 = vector.load %arg2[%c0_1, %c0_2, %c0_3] : memref<6x32x2xf32, #tpu.memory_space<vmem>>, vector<1x32x2xf32>
    %6 = vector.shape_cast %5 : vector<1x32x2xf32> to vector<32x2xf32>
    %cst_4 = arith.constant dense<0.000000e+00> : vector<32x8xf32>
    %7 = tpu.matmul %6, %2, %cst_4 {dimension_numbers = #tpu.dot_dimension_numbers<[1], [0], [0], [1], [0, 0, 1, 1], [], []>} : vector<32x2xf32>, vector<2x8xf32>, vector<32x8xf32> -> vector<32x8xf32>
    %c0_5 = arith.constant 0 : index
    %c0_6 = arith.constant 0 : index
    %c0_7 = arith.constant 0 : index
    %8 = vector.load %arg3[%c0_5, %c0_6, %c0_7] : memref<6x32x4xf32, #tpu.memory_space<vmem>>, vector<1x32x4xf32>
    %9 = vector.shape_cast %8 : vector<1x32x4xf32> to vector<32x4xf32>
    %cst_8 = arith.constant dense<0.000000e+00> : vector<32x8xf32>
    %10 = tpu.matmul %9, %3, %cst_8 {dimension_numbers = #tpu.dot_dimension_numbers<[1], [0], [0], [1], [0, 0, 1, 1], [], []>} : vector<32x4xf32>, vector<4x8xf32>, vector<32x8xf32> -> vector<32x8xf32>
    %11 = arith.addf %7, %10 : vector<32x8xf32>
    %c0_9 = arith.constant 0 : index
    %c0_10 = arith.constant 0 : index
    %c0_11 = arith.constant 0 : index
    %12 = vector.load %arg4[%c0_9, %c0_10, %c0_11] : memref<6x32x1xf32, #tpu.memory_space<vmem>>, vector<1x32x1xf32>
    %13 = vector.shape_cast %12 : vector<1x32x1xf32> to vector<32x1xf32>
    %14 = vector.broadcast %13 : vector<32x1xf32> to vector<32x8xf32>
    %15 = arith.addf %11, %14 : vector<32x8xf32>
    %cst_12 = arith.constant 0.000000e+00 : f32
    %16 = vector.broadcast %cst_12 : f32 to vector<32x8xf32>
    %17 = arith.maximumf %15, %16 : vector<32x8xf32>
    %c0_13 = arith.constant 0 : index
    %c0_14 = arith.constant 0 : index
    %c0_15 = arith.constant 0 : index
    %18 = vector.load %arg5[%c0_13, %c0_14, %c0_15] : memref<6x32x32xf32, #tpu.memory_space<vmem>>, vector<1x32x32xf32>
    %19 = vector.shape_cast %18 : vector<1x32x32xf32> to vector<32x32xf32>
    %cst_16 = arith.constant dense<0.000000e+00> : vector<32x8xf32>
    %20 = tpu.matmul %19, %17, %cst_16 {dimension_numbers = #tpu.dot_dimension_numbers<[1], [0], [0], [1], [0, 0, 1, 1], [], []>} : vector<32x32xf32>, vector<32x8xf32>, vector<32x8xf32> -> vector<32x8xf32>
    %c0_17 = arith.constant 0 : index
    %c0_18 = arith.constant 0 : index
    %c0_19 = arith.constant 0 : index
    %21 = vector.load %arg6[%c0_17, %c0_18, %c0_19] : memref<6x32x1xf32, #tpu.memory_space<vmem>>, vector<1x32x1xf32>
    %22 = vector.shape_cast %21 : vector<1x32x1xf32> to vector<32x1xf32>
    %23 = vector.broadcast %22 : vector<32x1xf32> to vector<32x8xf32>
    %24 = arith.addf %20, %23 : vector<32x8xf32>
    %cst_20 = arith.constant 0.000000e+00 : f32
    %25 = vector.broadcast %cst_20 : f32 to vector<32x8xf32>
    %26 = arith.maximumf %24, %25 : vector<32x8xf32>
    %c0_21 = arith.constant 0 : index
    %c0_22 = arith.constant 0 : index
    %c0_23 = arith.constant 0 : index
    %27 = vector.load %arg7[%c0_21, %c0_22, %c0_23] : memref<6x2x32xf32, #tpu.memory_space<vmem>>, vector<1x2x32xf32>
    %28 = vector.shape_cast %27 : vector<1x2x32xf32> to vector<2x32xf32>
    %cst_24 = arith.constant dense<0.000000e+00> : vector<2x8xf32>
    %29 = tpu.matmul %28, %26, %cst_24 {dimension_numbers = #tpu.dot_dimension_numbers<[1], [0], [0], [1], [0, 0, 1, 1], [], []>} : vector<2x32xf32>, vector<32x8xf32>, vector<2x8xf32> -> vector<2x8xf32>
    %c0_25 = arith.constant 0 : index
    %c0_26 = arith.constant 0 : index
    %c0_27 = arith.constant 0 : index
    %30 = vector.load %arg9[%c0_25, %c0_26, %c0_27] : memref<6x2x1xf32, #tpu.memory_space<vmem>>, vector<1x2x1xf32>
    %31 = vector.shape_cast %30 : vector<1x2x1xf32> to vector<2x1xf32>
    %32 = vector.broadcast %31 : vector<2x1xf32> to vector<2x8xf32>
    %33 = arith.addf %29, %32 : vector<2x8xf32>
    %34 = math.tanh %33 : vector<2x8xf32>
    %c0_28 = arith.constant 0 : index
    %c0_29 = arith.constant 0 : index
    %c0_30 = arith.constant 0 : index
    %35 = vector.load %arg8[%c0_28, %c0_29, %c0_30] : memref<6x2x32xf32, #tpu.memory_space<vmem>>, vector<1x2x32xf32>
    %36 = vector.shape_cast %35 : vector<1x2x32xf32> to vector<2x32xf32>
    %cst_31 = arith.constant dense<0.000000e+00> : vector<2x8xf32>
    %37 = tpu.matmul %36, %26, %cst_31 {dimension_numbers = #tpu.dot_dimension_numbers<[1], [0], [0], [1], [0, 0, 1, 1], [], []>} : vector<2x32xf32>, vector<32x8xf32>, vector<2x8xf32> -> vector<2x8xf32>
    %c0_32 = arith.constant 0 : index
    %c0_33 = arith.constant 0 : index
    %c0_34 = arith.constant 0 : index
    %38 = vector.load %arg10[%c0_32, %c0_33, %c0_34] : memref<6x2x1xf32, #tpu.memory_space<vmem>>, vector<1x2x1xf32>
    %39 = vector.shape_cast %38 : vector<1x2x1xf32> to vector<2x1xf32>
    %40 = vector.broadcast %39 : vector<2x1xf32> to vector<2x8xf32>
    %41 = arith.addf %37, %40 : vector<2x8xf32>
    %42 = math.exp %34 : vector<2x8xf32>
    %43 = arith.mulf %1, %42 : vector<2x8xf32>
    %44 = arith.addf %43, %41 : vector<2x8xf32>
    %45 = arith.addf %4, %34 : vector<2x8xf32>
    %c1 = arith.constant 1 : index
    %c0_35 = arith.constant 0 : index
    %c0_36 = arith.constant 0 : index
    %46 = vector.load %arg2[%c1, %c0_35, %c0_36] : memref<6x32x2xf32, #tpu.memory_space<vmem>>, vector<1x32x2xf32>
    %47 = vector.shape_cast %46 : vector<1x32x2xf32> to vector<32x2xf32>
    %cst_37 = arith.constant dense<0.000000e+00> : vector<32x8xf32>
    %48 = tpu.matmul %47, %44, %cst_37 {dimension_numbers = #tpu.dot_dimension_numbers<[1], [0], [0], [1], [0, 0, 1, 1], [], []>} : vector<32x2xf32>, vector<2x8xf32>, vector<32x8xf32> -> vector<32x8xf32>
    %c1_38 = arith.constant 1 : index
    %c0_39 = arith.constant 0 : index
    %c0_40 = arith.constant 0 : index
    %49 = vector.load %arg3[%c1_38, %c0_39, %c0_40] : memref<6x32x4xf32, #tpu.memory_space<vmem>>, vector<1x32x4xf32>
    %50 = vector.shape_cast %49 : vector<1x32x4xf32> to vector<32x4xf32>
    %cst_41 = arith.constant dense<0.000000e+00> : vector<32x8xf32>
    %51 = tpu.matmul %50, %3, %cst_41 {dimension_numbers = #tpu.dot_dimension_numbers<[1], [0], [0], [1], [0, 0, 1, 1], [], []>} : vector<32x4xf32>, vector<4x8xf32>, vector<32x8xf32> -> vector<32x8xf32>
    %52 = arith.addf %48, %51 : vector<32x8xf32>
    %c1_42 = arith.constant 1 : index
    %c0_43 = arith.constant 0 : index
    %c0_44 = arith.constant 0 : index
    %53 = vector.load %arg4[%c1_42, %c0_43, %c0_44] : memref<6x32x1xf32, #tpu.memory_space<vmem>>, vector<1x32x1xf32>
    %54 = vector.shape_cast %53 : vector<1x32x1xf32> to vector<32x1xf32>
    %55 = vector.broadcast %54 : vector<32x1xf32> to vector<32x8xf32>
    %56 = arith.addf %52, %55 : vector<32x8xf32>
    %cst_45 = arith.constant 0.000000e+00 : f32
    %57 = vector.broadcast %cst_45 : f32 to vector<32x8xf32>
    %58 = arith.maximumf %56, %57 : vector<32x8xf32>
    %c1_46 = arith.constant 1 : index
    %c0_47 = arith.constant 0 : index
    %c0_48 = arith.constant 0 : index
    %59 = vector.load %arg5[%c1_46, %c0_47, %c0_48] : memref<6x32x32xf32, #tpu.memory_space<vmem>>, vector<1x32x32xf32>
    %60 = vector.shape_cast %59 : vector<1x32x32xf32> to vector<32x32xf32>
    %cst_49 = arith.constant dense<0.000000e+00> : vector<32x8xf32>
    %61 = tpu.matmul %60, %58, %cst_49 {dimension_numbers = #tpu.dot_dimension_numbers<[1], [0], [0], [1], [0, 0, 1, 1], [], []>} : vector<32x32xf32>, vector<32x8xf32>, vector<32x8xf32> -> vector<32x8xf32>
    %c1_50 = arith.constant 1 : index
    %c0_51 = arith.constant 0 : index
    %c0_52 = arith.constant 0 : index
    %62 = vector.load %arg6[%c1_50, %c0_51, %c0_52] : memref<6x32x1xf32, #tpu.memory_space<vmem>>, vector<1x32x1xf32>
    %63 = vector.shape_cast %62 : vector<1x32x1xf32> to vector<32x1xf32>
    %64 = vector.broadcast %63 : vector<32x1xf32> to vector<32x8xf32>
    %65 = arith.addf %61, %64 : vector<32x8xf32>
    %cst_53 = arith.constant 0.000000e+00 : f32
    %66 = vector.broadcast %cst_53 : f32 to vector<32x8xf32>
    %67 = arith.maximumf %65, %66 : vector<32x8xf32>
    %c1_54 = arith.constant 1 : index
    %c0_55 = arith.constant 0 : index
    %c0_56 = arith.constant 0 : index
    %68 = vector.load %arg7[%c1_54, %c0_55, %c0_56] : memref<6x2x32xf32, #tpu.memory_space<vmem>>, vector<1x2x32xf32>
    %69 = vector.shape_cast %68 : vector<1x2x32xf32> to vector<2x32xf32>
    %cst_57 = arith.constant dense<0.000000e+00> : vector<2x8xf32>
    %70 = tpu.matmul %69, %67, %cst_57 {dimension_numbers = #tpu.dot_dimension_numbers<[1], [0], [0], [1], [0, 0, 1, 1], [], []>} : vector<2x32xf32>, vector<32x8xf32>, vector<2x8xf32> -> vector<2x8xf32>
    %c1_58 = arith.constant 1 : index
    %c0_59 = arith.constant 0 : index
    %c0_60 = arith.constant 0 : index
    %71 = vector.load %arg9[%c1_58, %c0_59, %c0_60] : memref<6x2x1xf32, #tpu.memory_space<vmem>>, vector<1x2x1xf32>
    %72 = vector.shape_cast %71 : vector<1x2x1xf32> to vector<2x1xf32>
    %73 = vector.broadcast %72 : vector<2x1xf32> to vector<2x8xf32>
    %74 = arith.addf %70, %73 : vector<2x8xf32>
    %75 = math.tanh %74 : vector<2x8xf32>
    %c1_61 = arith.constant 1 : index
    %c0_62 = arith.constant 0 : index
    %c0_63 = arith.constant 0 : index
    %76 = vector.load %arg8[%c1_61, %c0_62, %c0_63] : memref<6x2x32xf32, #tpu.memory_space<vmem>>, vector<1x2x32xf32>
    %77 = vector.shape_cast %76 : vector<1x2x32xf32> to vector<2x32xf32>
    %cst_64 = arith.constant dense<0.000000e+00> : vector<2x8xf32>
    %78 = tpu.matmul %77, %67, %cst_64 {dimension_numbers = #tpu.dot_dimension_numbers<[1], [0], [0], [1], [0, 0, 1, 1], [], []>} : vector<2x32xf32>, vector<32x8xf32>, vector<2x8xf32> -> vector<2x8xf32>
    %c1_65 = arith.constant 1 : index
    %c0_66 = arith.constant 0 : index
    %c0_67 = arith.constant 0 : index
    %79 = vector.load %arg10[%c1_65, %c0_66, %c0_67] : memref<6x2x1xf32, #tpu.memory_space<vmem>>, vector<1x2x1xf32>
    %80 = vector.shape_cast %79 : vector<1x2x1xf32> to vector<2x1xf32>
    %81 = vector.broadcast %80 : vector<2x1xf32> to vector<2x8xf32>
    %82 = arith.addf %78, %81 : vector<2x8xf32>
    %83 = math.exp %75 : vector<2x8xf32>
    %84 = arith.mulf %2, %83 : vector<2x8xf32>
    %85 = arith.addf %84, %82 : vector<2x8xf32>
    %86 = arith.addf %45, %75 : vector<2x8xf32>
    %c2 = arith.constant 2 : index
    %c0_68 = arith.constant 0 : index
    %c0_69 = arith.constant 0 : index
    %87 = vector.load %arg2[%c2, %c0_68, %c0_69] : memref<6x32x2xf32, #tpu.memory_space<vmem>>, vector<1x32x2xf32>
    %88 = vector.shape_cast %87 : vector<1x32x2xf32> to vector<32x2xf32>
    %cst_70 = arith.constant dense<0.000000e+00> : vector<32x8xf32>
    %89 = tpu.matmul %88, %85, %cst_70 {dimension_numbers = #tpu.dot_dimension_numbers<[1], [0], [0], [1], [0, 0, 1, 1], [], []>} : vector<32x2xf32>, vector<2x8xf32>, vector<32x8xf32> -> vector<32x8xf32>
    %c2_71 = arith.constant 2 : index
    %c0_72 = arith.constant 0 : index
    %c0_73 = arith.constant 0 : index
    %90 = vector.load %arg3[%c2_71, %c0_72, %c0_73] : memref<6x32x4xf32, #tpu.memory_space<vmem>>, vector<1x32x4xf32>
    %91 = vector.shape_cast %90 : vector<1x32x4xf32> to vector<32x4xf32>
    %cst_74 = arith.constant dense<0.000000e+00> : vector<32x8xf32>
    %92 = tpu.matmul %91, %3, %cst_74 {dimension_numbers = #tpu.dot_dimension_numbers<[1], [0], [0], [1], [0, 0, 1, 1], [], []>} : vector<32x4xf32>, vector<4x8xf32>, vector<32x8xf32> -> vector<32x8xf32>
    %93 = arith.addf %89, %92 : vector<32x8xf32>
    %c2_75 = arith.constant 2 : index
    %c0_76 = arith.constant 0 : index
    %c0_77 = arith.constant 0 : index
    %94 = vector.load %arg4[%c2_75, %c0_76, %c0_77] : memref<6x32x1xf32, #tpu.memory_space<vmem>>, vector<1x32x1xf32>
    %95 = vector.shape_cast %94 : vector<1x32x1xf32> to vector<32x1xf32>
    %96 = vector.broadcast %95 : vector<32x1xf32> to vector<32x8xf32>
    %97 = arith.addf %93, %96 : vector<32x8xf32>
    %cst_78 = arith.constant 0.000000e+00 : f32
    %98 = vector.broadcast %cst_78 : f32 to vector<32x8xf32>
    %99 = arith.maximumf %97, %98 : vector<32x8xf32>
    %c2_79 = arith.constant 2 : index
    %c0_80 = arith.constant 0 : index
    %c0_81 = arith.constant 0 : index
    %100 = vector.load %arg5[%c2_79, %c0_80, %c0_81] : memref<6x32x32xf32, #tpu.memory_space<vmem>>, vector<1x32x32xf32>
    %101 = vector.shape_cast %100 : vector<1x32x32xf32> to vector<32x32xf32>
    %cst_82 = arith.constant dense<0.000000e+00> : vector<32x8xf32>
    %102 = tpu.matmul %101, %99, %cst_82 {dimension_numbers = #tpu.dot_dimension_numbers<[1], [0], [0], [1], [0, 0, 1, 1], [], []>} : vector<32x32xf32>, vector<32x8xf32>, vector<32x8xf32> -> vector<32x8xf32>
    %c2_83 = arith.constant 2 : index
    %c0_84 = arith.constant 0 : index
    %c0_85 = arith.constant 0 : index
    %103 = vector.load %arg6[%c2_83, %c0_84, %c0_85] : memref<6x32x1xf32, #tpu.memory_space<vmem>>, vector<1x32x1xf32>
    %104 = vector.shape_cast %103 : vector<1x32x1xf32> to vector<32x1xf32>
    %105 = vector.broadcast %104 : vector<32x1xf32> to vector<32x8xf32>
    %106 = arith.addf %102, %105 : vector<32x8xf32>
    %cst_86 = arith.constant 0.000000e+00 : f32
    %107 = vector.broadcast %cst_86 : f32 to vector<32x8xf32>
    %108 = arith.maximumf %106, %107 : vector<32x8xf32>
    %c2_87 = arith.constant 2 : index
    %c0_88 = arith.constant 0 : index
    %c0_89 = arith.constant 0 : index
    %109 = vector.load %arg7[%c2_87, %c0_88, %c0_89] : memref<6x2x32xf32, #tpu.memory_space<vmem>>, vector<1x2x32xf32>
    %110 = vector.shape_cast %109 : vector<1x2x32xf32> to vector<2x32xf32>
    %cst_90 = arith.constant dense<0.000000e+00> : vector<2x8xf32>
    %111 = tpu.matmul %110, %108, %cst_90 {dimension_numbers = #tpu.dot_dimension_numbers<[1], [0], [0], [1], [0, 0, 1, 1], [], []>} : vector<2x32xf32>, vector<32x8xf32>, vector<2x8xf32> -> vector<2x8xf32>
    %c2_91 = arith.constant 2 : index
    %c0_92 = arith.constant 0 : index
    %c0_93 = arith.constant 0 : index
    %112 = vector.load %arg9[%c2_91, %c0_92, %c0_93] : memref<6x2x1xf32, #tpu.memory_space<vmem>>, vector<1x2x1xf32>
    %113 = vector.shape_cast %112 : vector<1x2x1xf32> to vector<2x1xf32>
    %114 = vector.broadcast %113 : vector<2x1xf32> to vector<2x8xf32>
    %115 = arith.addf %111, %114 : vector<2x8xf32>
    %116 = math.tanh %115 : vector<2x8xf32>
    %c2_94 = arith.constant 2 : index
    %c0_95 = arith.constant 0 : index
    %c0_96 = arith.constant 0 : index
    %117 = vector.load %arg8[%c2_94, %c0_95, %c0_96] : memref<6x2x32xf32, #tpu.memory_space<vmem>>, vector<1x2x32xf32>
    %118 = vector.shape_cast %117 : vector<1x2x32xf32> to vector<2x32xf32>
    %cst_97 = arith.constant dense<0.000000e+00> : vector<2x8xf32>
    %119 = tpu.matmul %118, %108, %cst_97 {dimension_numbers = #tpu.dot_dimension_numbers<[1], [0], [0], [1], [0, 0, 1, 1], [], []>} : vector<2x32xf32>, vector<32x8xf32>, vector<2x8xf32> -> vector<2x8xf32>
    %c2_98 = arith.constant 2 : index
    %c0_99 = arith.constant 0 : index
    %c0_100 = arith.constant 0 : index
    %120 = vector.load %arg10[%c2_98, %c0_99, %c0_100] : memref<6x2x1xf32, #tpu.memory_space<vmem>>, vector<1x2x1xf32>
    %121 = vector.shape_cast %120 : vector<1x2x1xf32> to vector<2x1xf32>
    %122 = vector.broadcast %121 : vector<2x1xf32> to vector<2x8xf32>
    %123 = arith.addf %119, %122 : vector<2x8xf32>
    %124 = math.exp %116 : vector<2x8xf32>
    %125 = arith.mulf %44, %124 : vector<2x8xf32>
    %126 = arith.addf %125, %123 : vector<2x8xf32>
    %127 = arith.addf %86, %116 : vector<2x8xf32>
    %c3 = arith.constant 3 : index
    %c0_101 = arith.constant 0 : index
    %c0_102 = arith.constant 0 : index
    %128 = vector.load %arg2[%c3, %c0_101, %c0_102] : memref<6x32x2xf32, #tpu.memory_space<vmem>>, vector<1x32x2xf32>
    %129 = vector.shape_cast %128 : vector<1x32x2xf32> to vector<32x2xf32>
    %cst_103 = arith.constant dense<0.000000e+00> : vector<32x8xf32>
    %130 = tpu.matmul %129, %126, %cst_103 {dimension_numbers = #tpu.dot_dimension_numbers<[1], [0], [0], [1], [0, 0, 1, 1], [], []>} : vector<32x2xf32>, vector<2x8xf32>, vector<32x8xf32> -> vector<32x8xf32>
    %c3_104 = arith.constant 3 : index
    %c0_105 = arith.constant 0 : index
    %c0_106 = arith.constant 0 : index
    %131 = vector.load %arg3[%c3_104, %c0_105, %c0_106] : memref<6x32x4xf32, #tpu.memory_space<vmem>>, vector<1x32x4xf32>
    %132 = vector.shape_cast %131 : vector<1x32x4xf32> to vector<32x4xf32>
    %cst_107 = arith.constant dense<0.000000e+00> : vector<32x8xf32>
    %133 = tpu.matmul %132, %3, %cst_107 {dimension_numbers = #tpu.dot_dimension_numbers<[1], [0], [0], [1], [0, 0, 1, 1], [], []>} : vector<32x4xf32>, vector<4x8xf32>, vector<32x8xf32> -> vector<32x8xf32>
    %134 = arith.addf %130, %133 : vector<32x8xf32>
    %c3_108 = arith.constant 3 : index
    %c0_109 = arith.constant 0 : index
    %c0_110 = arith.constant 0 : index
    %135 = vector.load %arg4[%c3_108, %c0_109, %c0_110] : memref<6x32x1xf32, #tpu.memory_space<vmem>>, vector<1x32x1xf32>
    %136 = vector.shape_cast %135 : vector<1x32x1xf32> to vector<32x1xf32>
    %137 = vector.broadcast %136 : vector<32x1xf32> to vector<32x8xf32>
    %138 = arith.addf %134, %137 : vector<32x8xf32>
    %cst_111 = arith.constant 0.000000e+00 : f32
    %139 = vector.broadcast %cst_111 : f32 to vector<32x8xf32>
    %140 = arith.maximumf %138, %139 : vector<32x8xf32>
    %c3_112 = arith.constant 3 : index
    %c0_113 = arith.constant 0 : index
    %c0_114 = arith.constant 0 : index
    %141 = vector.load %arg5[%c3_112, %c0_113, %c0_114] : memref<6x32x32xf32, #tpu.memory_space<vmem>>, vector<1x32x32xf32>
    %142 = vector.shape_cast %141 : vector<1x32x32xf32> to vector<32x32xf32>
    %cst_115 = arith.constant dense<0.000000e+00> : vector<32x8xf32>
    %143 = tpu.matmul %142, %140, %cst_115 {dimension_numbers = #tpu.dot_dimension_numbers<[1], [0], [0], [1], [0, 0, 1, 1], [], []>} : vector<32x32xf32>, vector<32x8xf32>, vector<32x8xf32> -> vector<32x8xf32>
    %c3_116 = arith.constant 3 : index
    %c0_117 = arith.constant 0 : index
    %c0_118 = arith.constant 0 : index
    %144 = vector.load %arg6[%c3_116, %c0_117, %c0_118] : memref<6x32x1xf32, #tpu.memory_space<vmem>>, vector<1x32x1xf32>
    %145 = vector.shape_cast %144 : vector<1x32x1xf32> to vector<32x1xf32>
    %146 = vector.broadcast %145 : vector<32x1xf32> to vector<32x8xf32>
    %147 = arith.addf %143, %146 : vector<32x8xf32>
    %cst_119 = arith.constant 0.000000e+00 : f32
    %148 = vector.broadcast %cst_119 : f32 to vector<32x8xf32>
    %149 = arith.maximumf %147, %148 : vector<32x8xf32>
    %c3_120 = arith.constant 3 : index
    %c0_121 = arith.constant 0 : index
    %c0_122 = arith.constant 0 : index
    %150 = vector.load %arg7[%c3_120, %c0_121, %c0_122] : memref<6x2x32xf32, #tpu.memory_space<vmem>>, vector<1x2x32xf32>
    %151 = vector.shape_cast %150 : vector<1x2x32xf32> to vector<2x32xf32>
    %cst_123 = arith.constant dense<0.000000e+00> : vector<2x8xf32>
    %152 = tpu.matmul %151, %149, %cst_123 {dimension_numbers = #tpu.dot_dimension_numbers<[1], [0], [0], [1], [0, 0, 1, 1], [], []>} : vector<2x32xf32>, vector<32x8xf32>, vector<2x8xf32> -> vector<2x8xf32>
    %c3_124 = arith.constant 3 : index
    %c0_125 = arith.constant 0 : index
    %c0_126 = arith.constant 0 : index
    %153 = vector.load %arg9[%c3_124, %c0_125, %c0_126] : memref<6x2x1xf32, #tpu.memory_space<vmem>>, vector<1x2x1xf32>
    %154 = vector.shape_cast %153 : vector<1x2x1xf32> to vector<2x1xf32>
    %155 = vector.broadcast %154 : vector<2x1xf32> to vector<2x8xf32>
    %156 = arith.addf %152, %155 : vector<2x8xf32>
    %157 = math.tanh %156 : vector<2x8xf32>
    %c3_127 = arith.constant 3 : index
    %c0_128 = arith.constant 0 : index
    %c0_129 = arith.constant 0 : index
    %158 = vector.load %arg8[%c3_127, %c0_128, %c0_129] : memref<6x2x32xf32, #tpu.memory_space<vmem>>, vector<1x2x32xf32>
    %159 = vector.shape_cast %158 : vector<1x2x32xf32> to vector<2x32xf32>
    %cst_130 = arith.constant dense<0.000000e+00> : vector<2x8xf32>
    %160 = tpu.matmul %159, %149, %cst_130 {dimension_numbers = #tpu.dot_dimension_numbers<[1], [0], [0], [1], [0, 0, 1, 1], [], []>} : vector<2x32xf32>, vector<32x8xf32>, vector<2x8xf32> -> vector<2x8xf32>
    %c3_131 = arith.constant 3 : index
    %c0_132 = arith.constant 0 : index
    %c0_133 = arith.constant 0 : index
    %161 = vector.load %arg10[%c3_131, %c0_132, %c0_133] : memref<6x2x1xf32, #tpu.memory_space<vmem>>, vector<1x2x1xf32>
    %162 = vector.shape_cast %161 : vector<1x2x1xf32> to vector<2x1xf32>
    %163 = vector.broadcast %162 : vector<2x1xf32> to vector<2x8xf32>
    %164 = arith.addf %160, %163 : vector<2x8xf32>
    %165 = math.exp %157 : vector<2x8xf32>
    %166 = arith.mulf %85, %165 : vector<2x8xf32>
    %167 = arith.addf %166, %164 : vector<2x8xf32>
    %168 = arith.addf %127, %157 : vector<2x8xf32>
    %c4 = arith.constant 4 : index
    %c0_134 = arith.constant 0 : index
    %c0_135 = arith.constant 0 : index
    %169 = vector.load %arg2[%c4, %c0_134, %c0_135] : memref<6x32x2xf32, #tpu.memory_space<vmem>>, vector<1x32x2xf32>
    %170 = vector.shape_cast %169 : vector<1x32x2xf32> to vector<32x2xf32>
    %cst_136 = arith.constant dense<0.000000e+00> : vector<32x8xf32>
    %171 = tpu.matmul %170, %167, %cst_136 {dimension_numbers = #tpu.dot_dimension_numbers<[1], [0], [0], [1], [0, 0, 1, 1], [], []>} : vector<32x2xf32>, vector<2x8xf32>, vector<32x8xf32> -> vector<32x8xf32>
    %c4_137 = arith.constant 4 : index
    %c0_138 = arith.constant 0 : index
    %c0_139 = arith.constant 0 : index
    %172 = vector.load %arg3[%c4_137, %c0_138, %c0_139] : memref<6x32x4xf32, #tpu.memory_space<vmem>>, vector<1x32x4xf32>
    %173 = vector.shape_cast %172 : vector<1x32x4xf32> to vector<32x4xf32>
    %cst_140 = arith.constant dense<0.000000e+00> : vector<32x8xf32>
    %174 = tpu.matmul %173, %3, %cst_140 {dimension_numbers = #tpu.dot_dimension_numbers<[1], [0], [0], [1], [0, 0, 1, 1], [], []>} : vector<32x4xf32>, vector<4x8xf32>, vector<32x8xf32> -> vector<32x8xf32>
    %175 = arith.addf %171, %174 : vector<32x8xf32>
    %c4_141 = arith.constant 4 : index
    %c0_142 = arith.constant 0 : index
    %c0_143 = arith.constant 0 : index
    %176 = vector.load %arg4[%c4_141, %c0_142, %c0_143] : memref<6x32x1xf32, #tpu.memory_space<vmem>>, vector<1x32x1xf32>
    %177 = vector.shape_cast %176 : vector<1x32x1xf32> to vector<32x1xf32>
    %178 = vector.broadcast %177 : vector<32x1xf32> to vector<32x8xf32>
    %179 = arith.addf %175, %178 : vector<32x8xf32>
    %cst_144 = arith.constant 0.000000e+00 : f32
    %180 = vector.broadcast %cst_144 : f32 to vector<32x8xf32>
    %181 = arith.maximumf %179, %180 : vector<32x8xf32>
    %c4_145 = arith.constant 4 : index
    %c0_146 = arith.constant 0 : index
    %c0_147 = arith.constant 0 : index
    %182 = vector.load %arg5[%c4_145, %c0_146, %c0_147] : memref<6x32x32xf32, #tpu.memory_space<vmem>>, vector<1x32x32xf32>
    %183 = vector.shape_cast %182 : vector<1x32x32xf32> to vector<32x32xf32>
    %cst_148 = arith.constant dense<0.000000e+00> : vector<32x8xf32>
    %184 = tpu.matmul %183, %181, %cst_148 {dimension_numbers = #tpu.dot_dimension_numbers<[1], [0], [0], [1], [0, 0, 1, 1], [], []>} : vector<32x32xf32>, vector<32x8xf32>, vector<32x8xf32> -> vector<32x8xf32>
    %c4_149 = arith.constant 4 : index
    %c0_150 = arith.constant 0 : index
    %c0_151 = arith.constant 0 : index
    %185 = vector.load %arg6[%c4_149, %c0_150, %c0_151] : memref<6x32x1xf32, #tpu.memory_space<vmem>>, vector<1x32x1xf32>
    %186 = vector.shape_cast %185 : vector<1x32x1xf32> to vector<32x1xf32>
    %187 = vector.broadcast %186 : vector<32x1xf32> to vector<32x8xf32>
    %188 = arith.addf %184, %187 : vector<32x8xf32>
    %cst_152 = arith.constant 0.000000e+00 : f32
    %189 = vector.broadcast %cst_152 : f32 to vector<32x8xf32>
    %190 = arith.maximumf %188, %189 : vector<32x8xf32>
    %c4_153 = arith.constant 4 : index
    %c0_154 = arith.constant 0 : index
    %c0_155 = arith.constant 0 : index
    %191 = vector.load %arg7[%c4_153, %c0_154, %c0_155] : memref<6x2x32xf32, #tpu.memory_space<vmem>>, vector<1x2x32xf32>
    %192 = vector.shape_cast %191 : vector<1x2x32xf32> to vector<2x32xf32>
    %cst_156 = arith.constant dense<0.000000e+00> : vector<2x8xf32>
    %193 = tpu.matmul %192, %190, %cst_156 {dimension_numbers = #tpu.dot_dimension_numbers<[1], [0], [0], [1], [0, 0, 1, 1], [], []>} : vector<2x32xf32>, vector<32x8xf32>, vector<2x8xf32> -> vector<2x8xf32>
    %c4_157 = arith.constant 4 : index
    %c0_158 = arith.constant 0 : index
    %c0_159 = arith.constant 0 : index
    %194 = vector.load %arg9[%c4_157, %c0_158, %c0_159] : memref<6x2x1xf32, #tpu.memory_space<vmem>>, vector<1x2x1xf32>
    %195 = vector.shape_cast %194 : vector<1x2x1xf32> to vector<2x1xf32>
    %196 = vector.broadcast %195 : vector<2x1xf32> to vector<2x8xf32>
    %197 = arith.addf %193, %196 : vector<2x8xf32>
    %198 = math.tanh %197 : vector<2x8xf32>
    %c4_160 = arith.constant 4 : index
    %c0_161 = arith.constant 0 : index
    %c0_162 = arith.constant 0 : index
    %199 = vector.load %arg8[%c4_160, %c0_161, %c0_162] : memref<6x2x32xf32, #tpu.memory_space<vmem>>, vector<1x2x32xf32>
    %200 = vector.shape_cast %199 : vector<1x2x32xf32> to vector<2x32xf32>
    %cst_163 = arith.constant dense<0.000000e+00> : vector<2x8xf32>
    %201 = tpu.matmul %200, %190, %cst_163 {dimension_numbers = #tpu.dot_dimension_numbers<[1], [0], [0], [1], [0, 0, 1, 1], [], []>} : vector<2x32xf32>, vector<32x8xf32>, vector<2x8xf32> -> vector<2x8xf32>
    %c4_164 = arith.constant 4 : index
    %c0_165 = arith.constant 0 : index
    %c0_166 = arith.constant 0 : index
    %202 = vector.load %arg10[%c4_164, %c0_165, %c0_166] : memref<6x2x1xf32, #tpu.memory_space<vmem>>, vector<1x2x1xf32>
    %203 = vector.shape_cast %202 : vector<1x2x1xf32> to vector<2x1xf32>
    %204 = vector.broadcast %203 : vector<2x1xf32> to vector<2x8xf32>
    %205 = arith.addf %201, %204 : vector<2x8xf32>
    %206 = math.exp %198 : vector<2x8xf32>
    %207 = arith.mulf %126, %206 : vector<2x8xf32>
    %208 = arith.addf %207, %205 : vector<2x8xf32>
    %209 = arith.addf %168, %198 : vector<2x8xf32>
    %c5 = arith.constant 5 : index
    %c0_167 = arith.constant 0 : index
    %c0_168 = arith.constant 0 : index
    %210 = vector.load %arg2[%c5, %c0_167, %c0_168] : memref<6x32x2xf32, #tpu.memory_space<vmem>>, vector<1x32x2xf32>
    %211 = vector.shape_cast %210 : vector<1x32x2xf32> to vector<32x2xf32>
    %cst_169 = arith.constant dense<0.000000e+00> : vector<32x8xf32>
    %212 = tpu.matmul %211, %208, %cst_169 {dimension_numbers = #tpu.dot_dimension_numbers<[1], [0], [0], [1], [0, 0, 1, 1], [], []>} : vector<32x2xf32>, vector<2x8xf32>, vector<32x8xf32> -> vector<32x8xf32>
    %c5_170 = arith.constant 5 : index
    %c0_171 = arith.constant 0 : index
    %c0_172 = arith.constant 0 : index
    %213 = vector.load %arg3[%c5_170, %c0_171, %c0_172] : memref<6x32x4xf32, #tpu.memory_space<vmem>>, vector<1x32x4xf32>
    %214 = vector.shape_cast %213 : vector<1x32x4xf32> to vector<32x4xf32>
    %cst_173 = arith.constant dense<0.000000e+00> : vector<32x8xf32>
    %215 = tpu.matmul %214, %3, %cst_173 {dimension_numbers = #tpu.dot_dimension_numbers<[1], [0], [0], [1], [0, 0, 1, 1], [], []>} : vector<32x4xf32>, vector<4x8xf32>, vector<32x8xf32> -> vector<32x8xf32>
    %216 = arith.addf %212, %215 : vector<32x8xf32>
    %c5_174 = arith.constant 5 : index
    %c0_175 = arith.constant 0 : index
    %c0_176 = arith.constant 0 : index
    %217 = vector.load %arg4[%c5_174, %c0_175, %c0_176] : memref<6x32x1xf32, #tpu.memory_space<vmem>>, vector<1x32x1xf32>
    %218 = vector.shape_cast %217 : vector<1x32x1xf32> to vector<32x1xf32>
    %219 = vector.broadcast %218 : vector<32x1xf32> to vector<32x8xf32>
    %220 = arith.addf %216, %219 : vector<32x8xf32>
    %cst_177 = arith.constant 0.000000e+00 : f32
    %221 = vector.broadcast %cst_177 : f32 to vector<32x8xf32>
    %222 = arith.maximumf %220, %221 : vector<32x8xf32>
    %c5_178 = arith.constant 5 : index
    %c0_179 = arith.constant 0 : index
    %c0_180 = arith.constant 0 : index
    %223 = vector.load %arg5[%c5_178, %c0_179, %c0_180] : memref<6x32x32xf32, #tpu.memory_space<vmem>>, vector<1x32x32xf32>
    %224 = vector.shape_cast %223 : vector<1x32x32xf32> to vector<32x32xf32>
    %cst_181 = arith.constant dense<0.000000e+00> : vector<32x8xf32>
    %225 = tpu.matmul %224, %222, %cst_181 {dimension_numbers = #tpu.dot_dimension_numbers<[1], [0], [0], [1], [0, 0, 1, 1], [], []>} : vector<32x32xf32>, vector<32x8xf32>, vector<32x8xf32> -> vector<32x8xf32>
    %c5_182 = arith.constant 5 : index
    %c0_183 = arith.constant 0 : index
    %c0_184 = arith.constant 0 : index
    %226 = vector.load %arg6[%c5_182, %c0_183, %c0_184] : memref<6x32x1xf32, #tpu.memory_space<vmem>>, vector<1x32x1xf32>
    %227 = vector.shape_cast %226 : vector<1x32x1xf32> to vector<32x1xf32>
    %228 = vector.broadcast %227 : vector<32x1xf32> to vector<32x8xf32>
    %229 = arith.addf %225, %228 : vector<32x8xf32>
    %cst_185 = arith.constant 0.000000e+00 : f32
    %230 = vector.broadcast %cst_185 : f32 to vector<32x8xf32>
    %231 = arith.maximumf %229, %230 : vector<32x8xf32>
    %c5_186 = arith.constant 5 : index
    %c0_187 = arith.constant 0 : index
    %c0_188 = arith.constant 0 : index
    %232 = vector.load %arg7[%c5_186, %c0_187, %c0_188] : memref<6x2x32xf32, #tpu.memory_space<vmem>>, vector<1x2x32xf32>
    %233 = vector.shape_cast %232 : vector<1x2x32xf32> to vector<2x32xf32>
    %cst_189 = arith.constant dense<0.000000e+00> : vector<2x8xf32>
    %234 = tpu.matmul %233, %231, %cst_189 {dimension_numbers = #tpu.dot_dimension_numbers<[1], [0], [0], [1], [0, 0, 1, 1], [], []>} : vector<2x32xf32>, vector<32x8xf32>, vector<2x8xf32> -> vector<2x8xf32>
    %c5_190 = arith.constant 5 : index
    %c0_191 = arith.constant 0 : index
    %c0_192 = arith.constant 0 : index
    %235 = vector.load %arg9[%c5_190, %c0_191, %c0_192] : memref<6x2x1xf32, #tpu.memory_space<vmem>>, vector<1x2x1xf32>
    %236 = vector.shape_cast %235 : vector<1x2x1xf32> to vector<2x1xf32>
    %237 = vector.broadcast %236 : vector<2x1xf32> to vector<2x8xf32>
    %238 = arith.addf %234, %237 : vector<2x8xf32>
    %239 = math.tanh %238 : vector<2x8xf32>
    %c5_193 = arith.constant 5 : index
    %c0_194 = arith.constant 0 : index
    %c0_195 = arith.constant 0 : index
    %240 = vector.load %arg8[%c5_193, %c0_194, %c0_195] : memref<6x2x32xf32, #tpu.memory_space<vmem>>, vector<1x2x32xf32>
    %241 = vector.shape_cast %240 : vector<1x2x32xf32> to vector<2x32xf32>
    %cst_196 = arith.constant dense<0.000000e+00> : vector<2x8xf32>
    %242 = tpu.matmul %241, %231, %cst_196 {dimension_numbers = #tpu.dot_dimension_numbers<[1], [0], [0], [1], [0, 0, 1, 1], [], []>} : vector<2x32xf32>, vector<32x8xf32>, vector<2x8xf32> -> vector<2x8xf32>
    %c5_197 = arith.constant 5 : index
    %c0_198 = arith.constant 0 : index
    %c0_199 = arith.constant 0 : index
    %243 = vector.load %arg10[%c5_197, %c0_198, %c0_199] : memref<6x2x1xf32, #tpu.memory_space<vmem>>, vector<1x2x1xf32>
    %244 = vector.shape_cast %243 : vector<1x2x1xf32> to vector<2x1xf32>
    %245 = vector.broadcast %244 : vector<2x1xf32> to vector<2x8xf32>
    %246 = arith.addf %242, %245 : vector<2x8xf32>
    %247 = math.exp %239 : vector<2x8xf32>
    %248 = arith.mulf %167, %247 : vector<2x8xf32>
    %249 = arith.addf %248, %246 : vector<2x8xf32>
    %250 = arith.addf %209, %239 : vector<2x8xf32>
    %c0_200 = arith.constant 0 : index
    %c0_201 = arith.constant 0 : index
    %251 = vector.load %arg11[%c0_200, %c0_201] : memref<5x8xf32, #tpu.memory_space<vmem>>, vector<2x8xf32>
    tpu.vector_store %arg11[%c0_200, %c0_201], %208 {strides = array<i32>} : memref<5x8xf32, #tpu.memory_space<vmem>>, vector<2x8xf32>,
    %c2_202 = arith.constant 2 : index
    %c0_203 = arith.constant 0 : index
    %252 = vector.load %arg11[%c2_202, %c0_203] : memref<5x8xf32, #tpu.memory_space<vmem>>, vector<2x8xf32>
    tpu.vector_store %arg11[%c2_202, %c0_203], %249 {strides = array<i32>} : memref<5x8xf32, #tpu.memory_space<vmem>>, vector<2x8xf32>,
    %cst_204 = arith.constant dense<0.000000e+00> : vector<8xf32>
    %253 = vector.multi_reduction <add>, %250, %cst_204 [0] : vector<2x8xf32> to vector<8xf32>
    %254 = vector.shape_cast %253 : vector<8xf32> to vector<1x8xf32>
    %c4_205 = arith.constant 4 : index
    %c0_206 = arith.constant 0 : index
    %255 = vector.load %arg11[%c4_205, %c0_206] : memref<5x8xf32, #tpu.memory_space<vmem>>, vector<1x8xf32>
    tpu.vector_store %arg11[%c4_205, %c0_206], %254 {strides = array<i32>} : memref<5x8xf32, #tpu.memory_space<vmem>>, vector<1x8xf32>,
    return
  }
  func.func @transform_0(%arg0: i32) -> (i32, i32) {
    %c0_i32 = arith.constant 0 : i32
    %c0_i32_0 = arith.constant 0 : i32
    return %c0_i32, %arg0 : i32, i32
  }
  func.func @transform_1(%arg0: i32) -> (i32, i32, i32) {
    %c0_i32 = arith.constant 0 : i32
    %c0_i32_0 = arith.constant 0 : i32
    %c0_i32_1 = arith.constant 0 : i32
    %c0_i32_2 = arith.constant 0 : i32
    return %c0_i32, %c0_i32_0, %c0_i32_1 : i32, i32, i32
  }
  func.func @transform_2(%arg0: i32) -> (i32, i32, i32) {
    %c0_i32 = arith.constant 0 : i32
    %c0_i32_0 = arith.constant 0 : i32
    %c0_i32_1 = arith.constant 0 : i32
    %c0_i32_2 = arith.constant 0 : i32
    return %c0_i32, %c0_i32_0, %c0_i32_1 : i32, i32, i32
  }
  func.func @transform_3(%arg0: i32) -> (i32, i32, i32) {
    %c0_i32 = arith.constant 0 : i32
    %c0_i32_0 = arith.constant 0 : i32
    %c0_i32_1 = arith.constant 0 : i32
    %c0_i32_2 = arith.constant 0 : i32
    return %c0_i32, %c0_i32_0, %c0_i32_1 : i32, i32, i32
  }
  func.func @transform_4(%arg0: i32) -> (i32, i32, i32) {
    %c0_i32 = arith.constant 0 : i32
    %c0_i32_0 = arith.constant 0 : i32
    %c0_i32_1 = arith.constant 0 : i32
    %c0_i32_2 = arith.constant 0 : i32
    return %c0_i32, %c0_i32_0, %c0_i32_1 : i32, i32, i32
  }
  func.func @transform_5(%arg0: i32) -> (i32, i32, i32) {
    %c0_i32 = arith.constant 0 : i32
    %c0_i32_0 = arith.constant 0 : i32
    %c0_i32_1 = arith.constant 0 : i32
    %c0_i32_2 = arith.constant 0 : i32
    return %c0_i32, %c0_i32_0, %c0_i32_1 : i32, i32, i32
  }
  func.func @transform_6(%arg0: i32) -> (i32, i32, i32) {
    %c0_i32 = arith.constant 0 : i32
    %c0_i32_0 = arith.constant 0 : i32
    %c0_i32_1 = arith.constant 0 : i32
    %c0_i32_2 = arith.constant 0 : i32
    return %c0_i32, %c0_i32_0, %c0_i32_1 : i32, i32, i32
  }
  func.func @transform_7(%arg0: i32) -> (i32, i32, i32) {
    %c0_i32 = arith.constant 0 : i32
    %c0_i32_0 = arith.constant 0 : i32
    %c0_i32_1 = arith.constant 0 : i32
    %c0_i32_2 = arith.constant 0 : i32
    return %c0_i32, %c0_i32_0, %c0_i32_1 : i32, i32, i32
  }
  func.func @transform_8(%arg0: i32) -> (i32, i32, i32) {
    %c0_i32 = arith.constant 0 : i32
    %c0_i32_0 = arith.constant 0 : i32
    %c0_i32_1 = arith.constant 0 : i32
    %c0_i32_2 = arith.constant 0 : i32
    return %c0_i32, %c0_i32_0, %c0_i32_1 : i32, i32, i32
  }
  func.func @transform_9(%arg0: i32) -> (i32, i32, i32) {
    %c0_i32 = arith.constant 0 : i32
    %c0_i32_0 = arith.constant 0 : i32
    %c0_i32_1 = arith.constant 0 : i32
    %c0_i32_2 = arith.constant 0 : i32
    return %c0_i32, %c0_i32_0, %c0_i32_1 : i32, i32, i32
  }
  func.func @transform_10(%arg0: i32) -> (i32, i32) {
    %c0_i32 = arith.constant 0 : i32
    %c0_i32_0 = arith.constant 0 : i32
    return %c0_i32, %arg0 : i32, i32
  }
}

module attributes {stable_mosaic.version = 11 : i64} {
  func.func @kernel(%arg0: i32, %arg1: memref<8x8xf32, #tpu.memory_space<vmem>>, %arg2: memref<6x32x2xf32, #tpu.memory_space<vmem>>, %arg3: memref<6x32x4xf32, #tpu.memory_space<vmem>>, %arg4: memref<6x32x1xf32, #tpu.memory_space<vmem>>, %arg5: memref<6x32x32xf32, #tpu.memory_space<vmem>>, %arg6: memref<6x32x1xf32, #tpu.memory_space<vmem>>, %arg7: memref<6x2x32xf32, #tpu.memory_space<vmem>>, %arg8: memref<6x2x32xf32, #tpu.memory_space<vmem>>, %arg9: memref<6x2x1xf32, #tpu.memory_space<vmem>>, %arg10: memref<6x2x1xf32, #tpu.memory_space<vmem>>, %arg11: memref<5x8xf32, #tpu.memory_space<vmem>>) attributes {dimension_semantics = [#tpu.dimension_semantics<parallel>], iteration_bounds = array<i64: 1>, scalar_prefetch = 0 : i64, scratch_operands = 0 : i64, tpu.core_type = #tpu.core_type<tc>, window_params = [{transform_indices = @transform_0, window_bounds = array<i64: 8, 8>}, {pipeline_mode = #tpu.pipeline_mode<synchronous>, transform_indices = @transform_1, window_bounds = array<i64: 6, 32, 2>}, {pipeline_mode = #tpu.pipeline_mode<synchronous>, transform_indices = @transform_2, window_bounds = array<i64: 6, 32, 4>}, {pipeline_mode = #tpu.pipeline_mode<synchronous>, transform_indices = @transform_3, window_bounds = array<i64: 6, 32, 1>}, {pipeline_mode = #tpu.pipeline_mode<synchronous>, transform_indices = @transform_4, window_bounds = array<i64: 6, 32, 32>}, {pipeline_mode = #tpu.pipeline_mode<synchronous>, transform_indices = @transform_5, window_bounds = array<i64: 6, 32, 1>}, {pipeline_mode = #tpu.pipeline_mode<synchronous>, transform_indices = @transform_6, window_bounds = array<i64: 6, 2, 32>}, {pipeline_mode = #tpu.pipeline_mode<synchronous>, transform_indices = @transform_7, window_bounds = array<i64: 6, 2, 32>}, {pipeline_mode = #tpu.pipeline_mode<synchronous>, transform_indices = @transform_8, window_bounds = array<i64: 6, 2, 1>}, {pipeline_mode = #tpu.pipeline_mode<synchronous>, transform_indices = @transform_9, window_bounds = array<i64: 6, 2, 1>}, {transform_indices = @transform_10, window_bounds = array<i64: 5, 8>}]} {
    %c0 = arith.constant 0 : index
    %c0_0 = arith.constant 0 : index
    %0 = vector.load %arg1[%c0, %c0_0] : memref<8x8xf32, #tpu.memory_space<vmem>>, vector<8x8xf32>
    %1 = vector.extract_strided_slice %0 {offsets = [0, 0], sizes = [2, 8], strides = [1, 1]} : vector<8x8xf32> to vector<2x8xf32>
    %2 = vector.extract_strided_slice %0 {offsets = [2, 0], sizes = [2, 8], strides = [1, 1]} : vector<8x8xf32> to vector<2x8xf32>
    %3 = vector.extract_strided_slice %0 {offsets = [4, 0], sizes = [4, 8], strides = [1, 1]} : vector<8x8xf32> to vector<4x8xf32>
    %cst = arith.constant 0.000000e+00 : f32
    %4 = vector.broadcast %cst : f32 to vector<2x8xf32>
    %c0_1 = arith.constant 0 : index
    %c0_2 = arith.constant 0 : index
    %c0_3 = arith.constant 0 : index
    %5 = vector.load %arg2[%c0_1, %c0_2, %c0_3] : memref<6x32x2xf32, #tpu.memory_space<vmem>>, vector<1x32x2xf32>
    %6 = vector.shape_cast %5 : vector<1x32x2xf32> to vector<32x2xf32>
    %cst_4 = arith.constant dense<0.000000e+00> : vector<32x8xf32>
    %7 = tpu.matmul %6, %2, %cst_4 {dimension_numbers = #tpu.dot_dimension_numbers<[1], [0], [0], [1], [0, 0, 1, 1], [], []>} : vector<32x2xf32>, vector<2x8xf32>, vector<32x8xf32> -> vector<32x8xf32>
    %c0_5 = arith.constant 0 : index
    %c0_6 = arith.constant 0 : index
    %c0_7 = arith.constant 0 : index
    %8 = vector.load %arg3[%c0_5, %c0_6, %c0_7] : memref<6x32x4xf32, #tpu.memory_space<vmem>>, vector<1x32x4xf32>
    %9 = vector.shape_cast %8 : vector<1x32x4xf32> to vector<32x4xf32>
    %cst_8 = arith.constant dense<0.000000e+00> : vector<32x8xf32>
    %10 = tpu.matmul %9, %3, %cst_8 {dimension_numbers = #tpu.dot_dimension_numbers<[1], [0], [0], [1], [0, 0, 1, 1], [], []>} : vector<32x4xf32>, vector<4x8xf32>, vector<32x8xf32> -> vector<32x8xf32>
    %11 = arith.addf %7, %10 : vector<32x8xf32>
    %c0_9 = arith.constant 0 : index
    %c0_10 = arith.constant 0 : index
    %c0_11 = arith.constant 0 : index
    %12 = vector.load %arg4[%c0_9, %c0_10, %c0_11] : memref<6x32x1xf32, #tpu.memory_space<vmem>>, vector<1x32x1xf32>
    %13 = vector.shape_cast %12 : vector<1x32x1xf32> to vector<32x1xf32>
    %14 = vector.broadcast %13 : vector<32x1xf32> to vector<32x8xf32>
    %15 = arith.addf %11, %14 : vector<32x8xf32>
    %cst_12 = arith.constant 0.000000e+00 : f32
    %16 = vector.broadcast %cst_12 : f32 to vector<32x8xf32>
    %17 = arith.maximumf %15, %16 : vector<32x8xf32>
    %c0_13 = arith.constant 0 : index
    %c0_14 = arith.constant 0 : index
    %c0_15 = arith.constant 0 : index
    %18 = vector.load %arg5[%c0_13, %c0_14, %c0_15] : memref<6x32x32xf32, #tpu.memory_space<vmem>>, vector<1x32x32xf32>
    %19 = vector.shape_cast %18 : vector<1x32x32xf32> to vector<32x32xf32>
    %cst_16 = arith.constant dense<0.000000e+00> : vector<32x8xf32>
    %20 = tpu.matmul %19, %17, %cst_16 {dimension_numbers = #tpu.dot_dimension_numbers<[1], [0], [0], [1], [0, 0, 1, 1], [], []>} : vector<32x32xf32>, vector<32x8xf32>, vector<32x8xf32> -> vector<32x8xf32>
    %c0_17 = arith.constant 0 : index
    %c0_18 = arith.constant 0 : index
    %c0_19 = arith.constant 0 : index
    %21 = vector.load %arg6[%c0_17, %c0_18, %c0_19] : memref<6x32x1xf32, #tpu.memory_space<vmem>>, vector<1x32x1xf32>
    %22 = vector.shape_cast %21 : vector<1x32x1xf32> to vector<32x1xf32>
    %23 = vector.broadcast %22 : vector<32x1xf32> to vector<32x8xf32>
    %24 = arith.addf %20, %23 : vector<32x8xf32>
    %cst_20 = arith.constant 0.000000e+00 : f32
    %25 = vector.broadcast %cst_20 : f32 to vector<32x8xf32>
    %26 = arith.maximumf %24, %25 : vector<32x8xf32>
    %c0_21 = arith.constant 0 : index
    %c0_22 = arith.constant 0 : index
    %c0_23 = arith.constant 0 : index
    %27 = vector.load %arg7[%c0_21, %c0_22, %c0_23] : memref<6x2x32xf32, #tpu.memory_space<vmem>>, vector<1x2x32xf32>
    %28 = vector.shape_cast %27 : vector<1x2x32xf32> to vector<2x32xf32>
    %cst_24 = arith.constant dense<0.000000e+00> : vector<2x8xf32>
    %29 = tpu.matmul %28, %26, %cst_24 {dimension_numbers = #tpu.dot_dimension_numbers<[1], [0], [0], [1], [0, 0, 1, 1], [], []>} : vector<2x32xf32>, vector<32x8xf32>, vector<2x8xf32> -> vector<2x8xf32>
    %c0_25 = arith.constant 0 : index
    %c0_26 = arith.constant 0 : index
    %c0_27 = arith.constant 0 : index
    %30 = vector.load %arg9[%c0_25, %c0_26, %c0_27] : memref<6x2x1xf32, #tpu.memory_space<vmem>>, vector<1x2x1xf32>
    %31 = vector.shape_cast %30 : vector<1x2x1xf32> to vector<2x1xf32>
    %32 = vector.broadcast %31 : vector<2x1xf32> to vector<2x8xf32>
    %33 = arith.addf %29, %32 : vector<2x8xf32>
    %34 = math.tanh %33 : vector<2x8xf32>
    %c0_28 = arith.constant 0 : index
    %c0_29 = arith.constant 0 : index
    %c0_30 = arith.constant 0 : index
    %35 = vector.load %arg8[%c0_28, %c0_29, %c0_30] : memref<6x2x32xf32, #tpu.memory_space<vmem>>, vector<1x2x32xf32>
    %36 = vector.shape_cast %35 : vector<1x2x32xf32> to vector<2x32xf32>
    %cst_31 = arith.constant dense<0.000000e+00> : vector<2x8xf32>
    %37 = tpu.matmul %36, %26, %cst_31 {dimension_numbers = #tpu.dot_dimension_numbers<[1], [0], [0], [1], [0, 0, 1, 1], [], []>} : vector<2x32xf32>, vector<32x8xf32>, vector<2x8xf32> -> vector<2x8xf32>
    %c0_32 = arith.constant 0 : index
    %c0_33 = arith.constant 0 : index
    %c0_34 = arith.constant 0 : index
    %38 = vector.load %arg10[%c0_32, %c0_33, %c0_34] : memref<6x2x1xf32, #tpu.memory_space<vmem>>, vector<1x2x1xf32>
    %39 = vector.shape_cast %38 : vector<1x2x1xf32> to vector<2x1xf32>
    %40 = vector.broadcast %39 : vector<2x1xf32> to vector<2x8xf32>
    %41 = arith.addf %37, %40 : vector<2x8xf32>
    %42 = math.exp %34 : vector<2x8xf32>
    %43 = arith.mulf %1, %42 : vector<2x8xf32>
    %44 = arith.addf %43, %41 : vector<2x8xf32>
    %45 = arith.addf %4, %34 : vector<2x8xf32>
    %c1 = arith.constant 1 : index
    %c0_35 = arith.constant 0 : index
    %c0_36 = arith.constant 0 : index
    %46 = vector.load %arg2[%c1, %c0_35, %c0_36] : memref<6x32x2xf32, #tpu.memory_space<vmem>>, vector<1x32x2xf32>
    %47 = vector.shape_cast %46 : vector<1x32x2xf32> to vector<32x2xf32>
    %cst_37 = arith.constant dense<0.000000e+00> : vector<32x8xf32>
    %48 = tpu.matmul %47, %44, %cst_37 {dimension_numbers = #tpu.dot_dimension_numbers<[1], [0], [0], [1], [0, 0, 1, 1], [], []>} : vector<32x2xf32>, vector<2x8xf32>, vector<32x8xf32> -> vector<32x8xf32>
    %c1_38 = arith.constant 1 : index
    %c0_39 = arith.constant 0 : index
    %c0_40 = arith.constant 0 : index
    %49 = vector.load %arg3[%c1_38, %c0_39, %c0_40] : memref<6x32x4xf32, #tpu.memory_space<vmem>>, vector<1x32x4xf32>
    %50 = vector.shape_cast %49 : vector<1x32x4xf32> to vector<32x4xf32>
    %cst_41 = arith.constant dense<0.000000e+00> : vector<32x8xf32>
    %51 = tpu.matmul %50, %3, %cst_41 {dimension_numbers = #tpu.dot_dimension_numbers<[1], [0], [0], [1], [0, 0, 1, 1], [], []>} : vector<32x4xf32>, vector<4x8xf32>, vector<32x8xf32> -> vector<32x8xf32>
    %52 = arith.addf %48, %51 : vector<32x8xf32>
    %c1_42 = arith.constant 1 : index
    %c0_43 = arith.constant 0 : index
    %c0_44 = arith.constant 0 : index
    %53 = vector.load %arg4[%c1_42, %c0_43, %c0_44] : memref<6x32x1xf32, #tpu.memory_space<vmem>>, vector<1x32x1xf32>
    %54 = vector.shape_cast %53 : vector<1x32x1xf32> to vector<32x1xf32>
    %55 = vector.broadcast %54 : vector<32x1xf32> to vector<32x8xf32>
    %56 = arith.addf %52, %55 : vector<32x8xf32>
    %cst_45 = arith.constant 0.000000e+00 : f32
    %57 = vector.broadcast %cst_45 : f32 to vector<32x8xf32>
    %58 = arith.maximumf %56, %57 : vector<32x8xf32>
    %c1_46 = arith.constant 1 : index
    %c0_47 = arith.constant 0 : index
    %c0_48 = arith.constant 0 : index
    %59 = vector.load %arg5[%c1_46, %c0_47, %c0_48] : memref<6x32x32xf32, #tpu.memory_space<vmem>>, vector<1x32x32xf32>
    %60 = vector.shape_cast %59 : vector<1x32x32xf32> to vector<32x32xf32>
    %cst_49 = arith.constant dense<0.000000e+00> : vector<32x8xf32>
    %61 = tpu.matmul %60, %58, %cst_49 {dimension_numbers = #tpu.dot_dimension_numbers<[1], [0], [0], [1], [0, 0, 1, 1], [], []>} : vector<32x32xf32>, vector<32x8xf32>, vector<32x8xf32> -> vector<32x8xf32>
    %c1_50 = arith.constant 1 : index
    %c0_51 = arith.constant 0 : index
    %c0_52 = arith.constant 0 : index
    %62 = vector.load %arg6[%c1_50, %c0_51, %c0_52] : memref<6x32x1xf32, #tpu.memory_space<vmem>>, vector<1x32x1xf32>
    %63 = vector.shape_cast %62 : vector<1x32x1xf32> to vector<32x1xf32>
    %64 = vector.broadcast %63 : vector<32x1xf32> to vector<32x8xf32>
    %65 = arith.addf %61, %64 : vector<32x8xf32>
    %cst_53 = arith.constant 0.000000e+00 : f32
    %66 = vector.broadcast %cst_53 : f32 to vector<32x8xf32>
    %67 = arith.maximumf %65, %66 : vector<32x8xf32>
    %c1_54 = arith.constant 1 : index
    %c0_55 = arith.constant 0 : index
    %c0_56 = arith.constant 0 : index
    %68 = vector.load %arg7[%c1_54, %c0_55, %c0_56] : memref<6x2x32xf32, #tpu.memory_space<vmem>>, vector<1x2x32xf32>
    %69 = vector.shape_cast %68 : vector<1x2x32xf32> to vector<2x32xf32>
    %cst_57 = arith.constant dense<0.000000e+00> : vector<2x8xf32>
    %70 = tpu.matmul %69, %67, %cst_57 {dimension_numbers = #tpu.dot_dimension_numbers<[1], [0], [0], [1], [0, 0, 1, 1], [], []>} : vector<2x32xf32>, vector<32x8xf32>, vector<2x8xf32> -> vector<2x8xf32>
    %c1_58 = arith.constant 1 : index
    %c0_59 = arith.constant 0 : index
    %c0_60 = arith.constant 0 : index
    %71 = vector.load %arg9[%c1_58, %c0_59, %c0_60] : memref<6x2x1xf32, #tpu.memory_space<vmem>>, vector<1x2x1xf32>
    %72 = vector.shape_cast %71 : vector<1x2x1xf32> to vector<2x1xf32>
    %73 = vector.broadcast %72 : vector<2x1xf32> to vector<2x8xf32>
    %74 = arith.addf %70, %73 : vector<2x8xf32>
    %75 = math.tanh %74 : vector<2x8xf32>
    %c1_61 = arith.constant 1 : index
    %c0_62 = arith.constant 0 : index
    %c0_63 = arith.constant 0 : index
    %76 = vector.load %arg8[%c1_61, %c0_62, %c0_63] : memref<6x2x32xf32, #tpu.memory_space<vmem>>, vector<1x2x32xf32>
    %77 = vector.shape_cast %76 : vector<1x2x32xf32> to vector<2x32xf32>
    %cst_64 = arith.constant dense<0.000000e+00> : vector<2x8xf32>
    %78 = tpu.matmul %77, %67, %cst_64 {dimension_numbers = #tpu.dot_dimension_numbers<[1], [0], [0], [1], [0, 0, 1, 1], [], []>} : vector<2x32xf32>, vector<32x8xf32>, vector<2x8xf32> -> vector<2x8xf32>
    %c1_65 = arith.constant 1 : index
    %c0_66 = arith.constant 0 : index
    %c0_67 = arith.constant 0 : index
    %79 = vector.load %arg10[%c1_65, %c0_66, %c0_67] : memref<6x2x1xf32, #tpu.memory_space<vmem>>, vector<1x2x1xf32>
    %80 = vector.shape_cast %79 : vector<1x2x1xf32> to vector<2x1xf32>
    %81 = vector.broadcast %80 : vector<2x1xf32> to vector<2x8xf32>
    %82 = arith.addf %78, %81 : vector<2x8xf32>
    %83 = math.exp %75 : vector<2x8xf32>
    %84 = arith.mulf %2, %83 : vector<2x8xf32>
    %85 = arith.addf %84, %82 : vector<2x8xf32>
    %86 = arith.addf %45, %75 : vector<2x8xf32>
    %c2 = arith.constant 2 : index
    %c0_68 = arith.constant 0 : index
    %c0_69 = arith.constant 0 : index
    %87 = vector.load %arg2[%c2, %c0_68, %c0_69] : memref<6x32x2xf32, #tpu.memory_space<vmem>>, vector<1x32x2xf32>
    %88 = vector.shape_cast %87 : vector<1x32x2xf32> to vector<32x2xf32>
    %cst_70 = arith.constant dense<0.000000e+00> : vector<32x8xf32>
    %89 = tpu.matmul %88, %85, %cst_70 {dimension_numbers = #tpu.dot_dimension_numbers<[1], [0], [0], [1], [0, 0, 1, 1], [], []>} : vector<32x2xf32>, vector<2x8xf32>, vector<32x8xf32> -> vector<32x8xf32>
    %c2_71 = arith.constant 2 : index
    %c0_72 = arith.constant 0 : index
    %c0_73 = arith.constant 0 : index
    %90 = vector.load %arg3[%c2_71, %c0_72, %c0_73] : memref<6x32x4xf32, #tpu.memory_space<vmem>>, vector<1x32x4xf32>
    %91 = vector.shape_cast %90 : vector<1x32x4xf32> to vector<32x4xf32>
    %cst_74 = arith.constant dense<0.000000e+00> : vector<32x8xf32>
    %92 = tpu.matmul %91, %3, %cst_74 {dimension_numbers = #tpu.dot_dimension_numbers<[1], [0], [0], [1], [0, 0, 1, 1], [], []>} : vector<32x4xf32>, vector<4x8xf32>, vector<32x8xf32> -> vector<32x8xf32>
    %93 = arith.addf %89, %92 : vector<32x8xf32>
    %c2_75 = arith.constant 2 : index
    %c0_76 = arith.constant 0 : index
    %c0_77 = arith.constant 0 : index
    %94 = vector.load %arg4[%c2_75, %c0_76, %c0_77] : memref<6x32x1xf32, #tpu.memory_space<vmem>>, vector<1x32x1xf32>
    %95 = vector.shape_cast %94 : vector<1x32x1xf32> to vector<32x1xf32>
    %96 = vector.broadcast %95 : vector<32x1xf32> to vector<32x8xf32>
    %97 = arith.addf %93, %96 : vector<32x8xf32>
    %cst_78 = arith.constant 0.000000e+00 : f32
    %98 = vector.broadcast %cst_78 : f32 to vector<32x8xf32>
    %99 = arith.maximumf %97, %98 : vector<32x8xf32>
    %c2_79 = arith.constant 2 : index
    %c0_80 = arith.constant 0 : index
    %c0_81 = arith.constant 0 : index
    %100 = vector.load %arg5[%c2_79, %c0_80, %c0_81] : memref<6x32x32xf32, #tpu.memory_space<vmem>>, vector<1x32x32xf32>
    %101 = vector.shape_cast %100 : vector<1x32x32xf32> to vector<32x32xf32>
    %cst_82 = arith.constant dense<0.000000e+00> : vector<32x8xf32>
    %102 = tpu.matmul %101, %99, %cst_82 {dimension_numbers = #tpu.dot_dimension_numbers<[1], [0], [0], [1], [0, 0, 1, 1], [], []>} : vector<32x32xf32>, vector<32x8xf32>, vector<32x8xf32> -> vector<32x8xf32>
    %c2_83 = arith.constant 2 : index
    %c0_84 = arith.constant 0 : index
    %c0_85 = arith.constant 0 : index
    %103 = vector.load %arg6[%c2_83, %c0_84, %c0_85] : memref<6x32x1xf32, #tpu.memory_space<vmem>>, vector<1x32x1xf32>
    %104 = vector.shape_cast %103 : vector<1x32x1xf32> to vector<32x1xf32>
    %105 = vector.broadcast %104 : vector<32x1xf32> to vector<32x8xf32>
    %106 = arith.addf %102, %105 : vector<32x8xf32>
    %cst_86 = arith.constant 0.000000e+00 : f32
    %107 = vector.broadcast %cst_86 : f32 to vector<32x8xf32>
    %108 = arith.maximumf %106, %107 : vector<32x8xf32>
    %c2_87 = arith.constant 2 : index
    %c0_88 = arith.constant 0 : index
    %c0_89 = arith.constant 0 : index
    %109 = vector.load %arg7[%c2_87, %c0_88, %c0_89] : memref<6x2x32xf32, #tpu.memory_space<vmem>>, vector<1x2x32xf32>
    %110 = vector.shape_cast %109 : vector<1x2x32xf32> to vector<2x32xf32>
    %cst_90 = arith.constant dense<0.000000e+00> : vector<2x8xf32>
    %111 = tpu.matmul %110, %108, %cst_90 {dimension_numbers = #tpu.dot_dimension_numbers<[1], [0], [0], [1], [0, 0, 1, 1], [], []>} : vector<2x32xf32>, vector<32x8xf32>, vector<2x8xf32> -> vector<2x8xf32>
    %c2_91 = arith.constant 2 : index
    %c0_92 = arith.constant 0 : index
    %c0_93 = arith.constant 0 : index
    %112 = vector.load %arg9[%c2_91, %c0_92, %c0_93] : memref<6x2x1xf32, #tpu.memory_space<vmem>>, vector<1x2x1xf32>
    %113 = vector.shape_cast %112 : vector<1x2x1xf32> to vector<2x1xf32>
    %114 = vector.broadcast %113 : vector<2x1xf32> to vector<2x8xf32>
    %115 = arith.addf %111, %114 : vector<2x8xf32>
    %116 = math.tanh %115 : vector<2x8xf32>
    %c2_94 = arith.constant 2 : index
    %c0_95 = arith.constant 0 : index
    %c0_96 = arith.constant 0 : index
    %117 = vector.load %arg8[%c2_94, %c0_95, %c0_96] : memref<6x2x32xf32, #tpu.memory_space<vmem>>, vector<1x2x32xf32>
    %118 = vector.shape_cast %117 : vector<1x2x32xf32> to vector<2x32xf32>
    %cst_97 = arith.constant dense<0.000000e+00> : vector<2x8xf32>
    %119 = tpu.matmul %118, %108, %cst_97 {dimension_numbers = #tpu.dot_dimension_numbers<[1], [0], [0], [1], [0, 0, 1, 1], [], []>} : vector<2x32xf32>, vector<32x8xf32>, vector<2x8xf32> -> vector<2x8xf32>
    %c2_98 = arith.constant 2 : index
    %c0_99 = arith.constant 0 : index
    %c0_100 = arith.constant 0 : index
    %120 = vector.load %arg10[%c2_98, %c0_99, %c0_100] : memref<6x2x1xf32, #tpu.memory_space<vmem>>, vector<1x2x1xf32>
    %121 = vector.shape_cast %120 : vector<1x2x1xf32> to vector<2x1xf32>
    %122 = vector.broadcast %121 : vector<2x1xf32> to vector<2x8xf32>
    %123 = arith.addf %119, %122 : vector<2x8xf32>
    %124 = math.exp %116 : vector<2x8xf32>
    %125 = arith.mulf %44, %124 : vector<2x8xf32>
    %126 = arith.addf %125, %123 : vector<2x8xf32>
    %127 = arith.addf %86, %116 : vector<2x8xf32>
    %c3 = arith.constant 3 : index
    %c0_101 = arith.constant 0 : index
    %c0_102 = arith.constant 0 : index
    %128 = vector.load %arg2[%c3, %c0_101, %c0_102] : memref<6x32x2xf32, #tpu.memory_space<vmem>>, vector<1x32x2xf32>
    %129 = vector.shape_cast %128 : vector<1x32x2xf32> to vector<32x2xf32>
    %cst_103 = arith.constant dense<0.000000e+00> : vector<32x8xf32>
    %130 = tpu.matmul %129, %126, %cst_103 {dimension_numbers = #tpu.dot_dimension_numbers<[1], [0], [0], [1], [0, 0, 1, 1], [], []>} : vector<32x2xf32>, vector<2x8xf32>, vector<32x8xf32> -> vector<32x8xf32>
    %c3_104 = arith.constant 3 : index
    %c0_105 = arith.constant 0 : index
    %c0_106 = arith.constant 0 : index
    %131 = vector.load %arg3[%c3_104, %c0_105, %c0_106] : memref<6x32x4xf32, #tpu.memory_space<vmem>>, vector<1x32x4xf32>
    %132 = vector.shape_cast %131 : vector<1x32x4xf32> to vector<32x4xf32>
    %cst_107 = arith.constant dense<0.000000e+00> : vector<32x8xf32>
    %133 = tpu.matmul %132, %3, %cst_107 {dimension_numbers = #tpu.dot_dimension_numbers<[1], [0], [0], [1], [0, 0, 1, 1], [], []>} : vector<32x4xf32>, vector<4x8xf32>, vector<32x8xf32> -> vector<32x8xf32>
    %134 = arith.addf %130, %133 : vector<32x8xf32>
    %c3_108 = arith.constant 3 : index
    %c0_109 = arith.constant 0 : index
    %c0_110 = arith.constant 0 : index
    %135 = vector.load %arg4[%c3_108, %c0_109, %c0_110] : memref<6x32x1xf32, #tpu.memory_space<vmem>>, vector<1x32x1xf32>
    %136 = vector.shape_cast %135 : vector<1x32x1xf32> to vector<32x1xf32>
    %137 = vector.broadcast %136 : vector<32x1xf32> to vector<32x8xf32>
    %138 = arith.addf %134, %137 : vector<32x8xf32>
    %cst_111 = arith.constant 0.000000e+00 : f32
    %139 = vector.broadcast %cst_111 : f32 to vector<32x8xf32>
    %140 = arith.maximumf %138, %139 : vector<32x8xf32>
    %c3_112 = arith.constant 3 : index
    %c0_113 = arith.constant 0 : index
    %c0_114 = arith.constant 0 : index
    %141 = vector.load %arg5[%c3_112, %c0_113, %c0_114] : memref<6x32x32xf32, #tpu.memory_space<vmem>>, vector<1x32x32xf32>
    %142 = vector.shape_cast %141 : vector<1x32x32xf32> to vector<32x32xf32>
    %cst_115 = arith.constant dense<0.000000e+00> : vector<32x8xf32>
    %143 = tpu.matmul %142, %140, %cst_115 {dimension_numbers = #tpu.dot_dimension_numbers<[1], [0], [0], [1], [0, 0, 1, 1], [], []>} : vector<32x32xf32>, vector<32x8xf32>, vector<32x8xf32> -> vector<32x8xf32>
    %c3_116 = arith.constant 3 : index
    %c0_117 = arith.constant 0 : index
    %c0_118 = arith.constant 0 : index
    %144 = vector.load %arg6[%c3_116, %c0_117, %c0_118] : memref<6x32x1xf32, #tpu.memory_space<vmem>>, vector<1x32x1xf32>
    %145 = vector.shape_cast %144 : vector<1x32x1xf32> to vector<32x1xf32>
    %146 = vector.broadcast %145 : vector<32x1xf32> to vector<32x8xf32>
    %147 = arith.addf %143, %146 : vector<32x8xf32>
    %cst_119 = arith.constant 0.000000e+00 : f32
    %148 = vector.broadcast %cst_119 : f32 to vector<32x8xf32>
    %149 = arith.maximumf %147, %148 : vector<32x8xf32>
    %c3_120 = arith.constant 3 : index
    %c0_121 = arith.constant 0 : index
    %c0_122 = arith.constant 0 : index
    %150 = vector.load %arg7[%c3_120, %c0_121, %c0_122] : memref<6x2x32xf32, #tpu.memory_space<vmem>>, vector<1x2x32xf32>
    %151 = vector.shape_cast %150 : vector<1x2x32xf32> to vector<2x32xf32>
    %cst_123 = arith.constant dense<0.000000e+00> : vector<2x8xf32>
    %152 = tpu.matmul %151, %149, %cst_123 {dimension_numbers = #tpu.dot_dimension_numbers<[1], [0], [0], [1], [0, 0, 1, 1], [], []>} : vector<2x32xf32>, vector<32x8xf32>, vector<2x8xf32> -> vector<2x8xf32>
    %c3_124 = arith.constant 3 : index
    %c0_125 = arith.constant 0 : index
    %c0_126 = arith.constant 0 : index
    %153 = vector.load %arg9[%c3_124, %c0_125, %c0_126] : memref<6x2x1xf32, #tpu.memory_space<vmem>>, vector<1x2x1xf32>
    %154 = vector.shape_cast %153 : vector<1x2x1xf32> to vector<2x1xf32>
    %155 = vector.broadcast %154 : vector<2x1xf32> to vector<2x8xf32>
    %156 = arith.addf %152, %155 : vector<2x8xf32>
    %157 = math.tanh %156 : vector<2x8xf32>
    %c3_127 = arith.constant 3 : index
    %c0_128 = arith.constant 0 : index
    %c0_129 = arith.constant 0 : index
    %158 = vector.load %arg8[%c3_127, %c0_128, %c0_129] : memref<6x2x32xf32, #tpu.memory_space<vmem>>, vector<1x2x32xf32>
    %159 = vector.shape_cast %158 : vector<1x2x32xf32> to vector<2x32xf32>
    %cst_130 = arith.constant dense<0.000000e+00> : vector<2x8xf32>
    %160 = tpu.matmul %159, %149, %cst_130 {dimension_numbers = #tpu.dot_dimension_numbers<[1], [0], [0], [1], [0, 0, 1, 1], [], []>} : vector<2x32xf32>, vector<32x8xf32>, vector<2x8xf32> -> vector<2x8xf32>
    %c3_131 = arith.constant 3 : index
    %c0_132 = arith.constant 0 : index
    %c0_133 = arith.constant 0 : index
    %161 = vector.load %arg10[%c3_131, %c0_132, %c0_133] : memref<6x2x1xf32, #tpu.memory_space<vmem>>, vector<1x2x1xf32>
    %162 = vector.shape_cast %161 : vector<1x2x1xf32> to vector<2x1xf32>
    %163 = vector.broadcast %162 : vector<2x1xf32> to vector<2x8xf32>
    %164 = arith.addf %160, %163 : vector<2x8xf32>
    %165 = math.exp %157 : vector<2x8xf32>
    %166 = arith.mulf %85, %165 : vector<2x8xf32>
    %167 = arith.addf %166, %164 : vector<2x8xf32>
    %168 = arith.addf %127, %157 : vector<2x8xf32>
    %c4 = arith.constant 4 : index
    %c0_134 = arith.constant 0 : index
    %c0_135 = arith.constant 0 : index
    %169 = vector.load %arg2[%c4, %c0_134, %c0_135] : memref<6x32x2xf32, #tpu.memory_space<vmem>>, vector<1x32x2xf32>
    %170 = vector.shape_cast %169 : vector<1x32x2xf32> to vector<32x2xf32>
    %cst_136 = arith.constant dense<0.000000e+00> : vector<32x8xf32>
    %171 = tpu.matmul %170, %167, %cst_136 {dimension_numbers = #tpu.dot_dimension_numbers<[1], [0], [0], [1], [0, 0, 1, 1], [], []>} : vector<32x2xf32>, vector<2x8xf32>, vector<32x8xf32> -> vector<32x8xf32>
    %c4_137 = arith.constant 4 : index
    %c0_138 = arith.constant 0 : index
    %c0_139 = arith.constant 0 : index
    %172 = vector.load %arg3[%c4_137, %c0_138, %c0_139] : memref<6x32x4xf32, #tpu.memory_space<vmem>>, vector<1x32x4xf32>
    %173 = vector.shape_cast %172 : vector<1x32x4xf32> to vector<32x4xf32>
    %cst_140 = arith.constant dense<0.000000e+00> : vector<32x8xf32>
    %174 = tpu.matmul %173, %3, %cst_140 {dimension_numbers = #tpu.dot_dimension_numbers<[1], [0], [0], [1], [0, 0, 1, 1], [], []>} : vector<32x4xf32>, vector<4x8xf32>, vector<32x8xf32> -> vector<32x8xf32>
    %175 = arith.addf %171, %174 : vector<32x8xf32>
    %c4_141 = arith.constant 4 : index
    %c0_142 = arith.constant 0 : index
    %c0_143 = arith.constant 0 : index
    %176 = vector.load %arg4[%c4_141, %c0_142, %c0_143] : memref<6x32x1xf32, #tpu.memory_space<vmem>>, vector<1x32x1xf32>
    %177 = vector.shape_cast %176 : vector<1x32x1xf32> to vector<32x1xf32>
    %178 = vector.broadcast %177 : vector<32x1xf32> to vector<32x8xf32>
    %179 = arith.addf %175, %178 : vector<32x8xf32>
    %cst_144 = arith.constant 0.000000e+00 : f32
    %180 = vector.broadcast %cst_144 : f32 to vector<32x8xf32>
    %181 = arith.maximumf %179, %180 : vector<32x8xf32>
    %c4_145 = arith.constant 4 : index
    %c0_146 = arith.constant 0 : index
    %c0_147 = arith.constant 0 : index
    %182 = vector.load %arg5[%c4_145, %c0_146, %c0_147] : memref<6x32x32xf32, #tpu.memory_space<vmem>>, vector<1x32x32xf32>
    %183 = vector.shape_cast %182 : vector<1x32x32xf32> to vector<32x32xf32>
    %cst_148 = arith.constant dense<0.000000e+00> : vector<32x8xf32>
    %184 = tpu.matmul %183, %181, %cst_148 {dimension_numbers = #tpu.dot_dimension_numbers<[1], [0], [0], [1], [0, 0, 1, 1], [], []>} : vector<32x32xf32>, vector<32x8xf32>, vector<32x8xf32> -> vector<32x8xf32>
    %c4_149 = arith.constant 4 : index
    %c0_150 = arith.constant 0 : index
    %c0_151 = arith.constant 0 : index
    %185 = vector.load %arg6[%c4_149, %c0_150, %c0_151] : memref<6x32x1xf32, #tpu.memory_space<vmem>>, vector<1x32x1xf32>
    %186 = vector.shape_cast %185 : vector<1x32x1xf32> to vector<32x1xf32>
    %187 = vector.broadcast %186 : vector<32x1xf32> to vector<32x8xf32>
    %188 = arith.addf %184, %187 : vector<32x8xf32>
    %cst_152 = arith.constant 0.000000e+00 : f32
    %189 = vector.broadcast %cst_152 : f32 to vector<32x8xf32>
    %190 = arith.maximumf %188, %189 : vector<32x8xf32>
    %c4_153 = arith.constant 4 : index
    %c0_154 = arith.constant 0 : index
    %c0_155 = arith.constant 0 : index
    %191 = vector.load %arg7[%c4_153, %c0_154, %c0_155] : memref<6x2x32xf32, #tpu.memory_space<vmem>>, vector<1x2x32xf32>
    %192 = vector.shape_cast %191 : vector<1x2x32xf32> to vector<2x32xf32>
    %cst_156 = arith.constant dense<0.000000e+00> : vector<2x8xf32>
    %193 = tpu.matmul %192, %190, %cst_156 {dimension_numbers = #tpu.dot_dimension_numbers<[1], [0], [0], [1], [0, 0, 1, 1], [], []>} : vector<2x32xf32>, vector<32x8xf32>, vector<2x8xf32> -> vector<2x8xf32>
    %c4_157 = arith.constant 4 : index
    %c0_158 = arith.constant 0 : index
    %c0_159 = arith.constant 0 : index
    %194 = vector.load %arg9[%c4_157, %c0_158, %c0_159] : memref<6x2x1xf32, #tpu.memory_space<vmem>>, vector<1x2x1xf32>
    %195 = vector.shape_cast %194 : vector<1x2x1xf32> to vector<2x1xf32>
    %196 = vector.broadcast %195 : vector<2x1xf32> to vector<2x8xf32>
    %197 = arith.addf %193, %196 : vector<2x8xf32>
    %198 = math.tanh %197 : vector<2x8xf32>
    %c4_160 = arith.constant 4 : index
    %c0_161 = arith.constant 0 : index
    %c0_162 = arith.constant 0 : index
    %199 = vector.load %arg8[%c4_160, %c0_161, %c0_162] : memref<6x2x32xf32, #tpu.memory_space<vmem>>, vector<1x2x32xf32>
    %200 = vector.shape_cast %199 : vector<1x2x32xf32> to vector<2x32xf32>
    %cst_163 = arith.constant dense<0.000000e+00> : vector<2x8xf32>
    %201 = tpu.matmul %200, %190, %cst_163 {dimension_numbers = #tpu.dot_dimension_numbers<[1], [0], [0], [1], [0, 0, 1, 1], [], []>} : vector<2x32xf32>, vector<32x8xf32>, vector<2x8xf32> -> vector<2x8xf32>
    %c4_164 = arith.constant 4 : index
    %c0_165 = arith.constant 0 : index
    %c0_166 = arith.constant 0 : index
    %202 = vector.load %arg10[%c4_164, %c0_165, %c0_166] : memref<6x2x1xf32, #tpu.memory_space<vmem>>, vector<1x2x1xf32>
    %203 = vector.shape_cast %202 : vector<1x2x1xf32> to vector<2x1xf32>
    %204 = vector.broadcast %203 : vector<2x1xf32> to vector<2x8xf32>
    %205 = arith.addf %201, %204 : vector<2x8xf32>
    %206 = math.exp %198 : vector<2x8xf32>
    %207 = arith.mulf %126, %206 : vector<2x8xf32>
    %208 = arith.addf %207, %205 : vector<2x8xf32>
    %209 = arith.addf %168, %198 : vector<2x8xf32>
    %c5 = arith.constant 5 : index
    %c0_167 = arith.constant 0 : index
    %c0_168 = arith.constant 0 : index
    %210 = vector.load %arg2[%c5, %c0_167, %c0_168] : memref<6x32x2xf32, #tpu.memory_space<vmem>>, vector<1x32x2xf32>
    %211 = vector.shape_cast %210 : vector<1x32x2xf32> to vector<32x2xf32>
    %cst_169 = arith.constant dense<0.000000e+00> : vector<32x8xf32>
    %212 = tpu.matmul %211, %208, %cst_169 {dimension_numbers = #tpu.dot_dimension_numbers<[1], [0], [0], [1], [0, 0, 1, 1], [], []>} : vector<32x2xf32>, vector<2x8xf32>, vector<32x8xf32> -> vector<32x8xf32>
    %c5_170 = arith.constant 5 : index
    %c0_171 = arith.constant 0 : index
    %c0_172 = arith.constant 0 : index
    %213 = vector.load %arg3[%c5_170, %c0_171, %c0_172] : memref<6x32x4xf32, #tpu.memory_space<vmem>>, vector<1x32x4xf32>
    %214 = vector.shape_cast %213 : vector<1x32x4xf32> to vector<32x4xf32>
    %cst_173 = arith.constant dense<0.000000e+00> : vector<32x8xf32>
    %215 = tpu.matmul %214, %3, %cst_173 {dimension_numbers = #tpu.dot_dimension_numbers<[1], [0], [0], [1], [0, 0, 1, 1], [], []>} : vector<32x4xf32>, vector<4x8xf32>, vector<32x8xf32> -> vector<32x8xf32>
    %216 = arith.addf %212, %215 : vector<32x8xf32>
    %c5_174 = arith.constant 5 : index
    %c0_175 = arith.constant 0 : index
    %c0_176 = arith.constant 0 : index
    %217 = vector.load %arg4[%c5_174, %c0_175, %c0_176] : memref<6x32x1xf32, #tpu.memory_space<vmem>>, vector<1x32x1xf32>
    %218 = vector.shape_cast %217 : vector<1x32x1xf32> to vector<32x1xf32>
    %219 = vector.broadcast %218 : vector<32x1xf32> to vector<32x8xf32>
    %220 = arith.addf %216, %219 : vector<32x8xf32>
    %cst_177 = arith.constant 0.000000e+00 : f32
    %221 = vector.broadcast %cst_177 : f32 to vector<32x8xf32>
    %222 = arith.maximumf %220, %221 : vector<32x8xf32>
    %c5_178 = arith.constant 5 : index
    %c0_179 = arith.constant 0 : index
    %c0_180 = arith.constant 0 : index
    %223 = vector.load %arg5[%c5_178, %c0_179, %c0_180] : memref<6x32x32xf32, #tpu.memory_space<vmem>>, vector<1x32x32xf32>
    %224 = vector.shape_cast %223 : vector<1x32x32xf32> to vector<32x32xf32>
    %cst_181 = arith.constant dense<0.000000e+00> : vector<32x8xf32>
    %225 = tpu.matmul %224, %222, %cst_181 {dimension_numbers = #tpu.dot_dimension_numbers<[1], [0], [0], [1], [0, 0, 1, 1], [], []>} : vector<32x32xf32>, vector<32x8xf32>, vector<32x8xf32> -> vector<32x8xf32>
    %c5_182 = arith.constant 5 : index
    %c0_183 = arith.constant 0 : index
    %c0_184 = arith.constant 0 : index
    %226 = vector.load %arg6[%c5_182, %c0_183, %c0_184] : memref<6x32x1xf32, #tpu.memory_space<vmem>>, vector<1x32x1xf32>
    %227 = vector.shape_cast %226 : vector<1x32x1xf32> to vector<32x1xf32>
    %228 = vector.broadcast %227 : vector<32x1xf32> to vector<32x8xf32>
    %229 = arith.addf %225, %228 : vector<32x8xf32>
    %cst_185 = arith.constant 0.000000e+00 : f32
    %230 = vector.broadcast %cst_185 : f32 to vector<32x8xf32>
    %231 = arith.maximumf %229, %230 : vector<32x8xf32>
    %c5_186 = arith.constant 5 : index
    %c0_187 = arith.constant 0 : index
    %c0_188 = arith.constant 0 : index
    %232 = vector.load %arg7[%c5_186, %c0_187, %c0_188] : memref<6x2x32xf32, #tpu.memory_space<vmem>>, vector<1x2x32xf32>
    %233 = vector.shape_cast %232 : vector<1x2x32xf32> to vector<2x32xf32>
    %cst_189 = arith.constant dense<0.000000e+00> : vector<2x8xf32>
    %234 = tpu.matmul %233, %231, %cst_189 {dimension_numbers = #tpu.dot_dimension_numbers<[1], [0], [0], [1], [0, 0, 1, 1], [], []>} : vector<2x32xf32>, vector<32x8xf32>, vector<2x8xf32> -> vector<2x8xf32>
    %c5_190 = arith.constant 5 : index
    %c0_191 = arith.constant 0 : index
    %c0_192 = arith.constant 0 : index
    %235 = vector.load %arg9[%c5_190, %c0_191, %c0_192] : memref<6x2x1xf32, #tpu.memory_space<vmem>>, vector<1x2x1xf32>
    %236 = vector.shape_cast %235 : vector<1x2x1xf32> to vector<2x1xf32>
    %237 = vector.broadcast %236 : vector<2x1xf32> to vector<2x8xf32>
    %238 = arith.addf %234, %237 : vector<2x8xf32>
    %239 = math.tanh %238 : vector<2x8xf32>
    %c5_193 = arith.constant 5 : index
    %c0_194 = arith.constant 0 : index
    %c0_195 = arith.constant 0 : index
    %240 = vector.load %arg8[%c5_193, %c0_194, %c0_195] : memref<6x2x32xf32, #tpu.memory_space<vmem>>, vector<1x2x32xf32>
    %241 = vector.shape_cast %240 : vector<1x2x32xf32> to vector<2x32xf32>
    %cst_196 = arith.constant dense<0.000000e+00> : vector<2x8xf32>
    %242 = tpu.matmul %241, %231, %cst_196 {dimension_numbers = #tpu.dot_dimension_numbers<[1], [0], [0], [1], [0, 0, 1, 1], [], []>} : vector<2x32xf32>, vector<32x8xf32>, vector<2x8xf32> -> vector<2x8xf32>
    %c5_197 = arith.constant 5 : index
    %c0_198 = arith.constant 0 : index
    %c0_199 = arith.constant 0 : index
    %243 = vector.load %arg10[%c5_197, %c0_198, %c0_199] : memref<6x2x1xf32, #tpu.memory_space<vmem>>, vector<1x2x1xf32>
    %244 = vector.shape_cast %243 : vector<1x2x1xf32> to vector<2x1xf32>
    %245 = vector.broadcast %244 : vector<2x1xf32> to vector<2x8xf32>
    %246 = arith.addf %242, %245 : vector<2x8xf32>
    %247 = math.exp %239 : vector<2x8xf32>
    %248 = arith.mulf %167, %247 : vector<2x8xf32>
    %249 = arith.addf %248, %246 : vector<2x8xf32>
    %250 = arith.addf %209, %239 : vector<2x8xf32>
    %c0_200 = arith.constant 0 : index
    %c0_201 = arith.constant 0 : index
    %251 = vector.load %arg11[%c0_200, %c0_201] : memref<5x8xf32, #tpu.memory_space<vmem>>, vector<2x8xf32>
    tpu.vector_store %arg11[%c0_200, %c0_201], %208 {strides = array<i32>} : memref<5x8xf32, #tpu.memory_space<vmem>>, vector<2x8xf32>,
    %c2_202 = arith.constant 2 : index
    %c0_203 = arith.constant 0 : index
    %252 = vector.load %arg11[%c2_202, %c0_203] : memref<5x8xf32, #tpu.memory_space<vmem>>, vector<2x8xf32>
    tpu.vector_store %arg11[%c2_202, %c0_203], %249 {strides = array<i32>} : memref<5x8xf32, #tpu.memory_space<vmem>>, vector<2x8xf32>,
    %cst_204 = arith.constant dense<0.000000e+00> : vector<8xf32>
    %253 = vector.multi_reduction <add>, %250, %cst_204 [0] : vector<2x8xf32> to vector<8xf32>
    %254 = vector.shape_cast %253 : vector<8xf32> to vector<1x8xf32>
    %c4_205 = arith.constant 4 : index
    %c0_206 = arith.constant 0 : index
    %255 = vector.load %arg11[%c4_205, %c0_206] : memref<5x8xf32, #tpu.memory_space<vmem>>, vector<1x8xf32>
    tpu.vector_store %arg11[%c4_205, %c0_206], %254 {strides = array<i32>} : memref<5x8xf32, #tpu.memory_space<vmem>>, vector<1x8xf32>,
    return
  }
  func.func @transform_0(%arg0: i32) -> (i32, i32) {
    %c0_i32 = arith.constant 0 : i32
    %c0_i32_0 = arith.constant 0 : i32
    return %c0_i32, %arg0 : i32, i32
  }
  func.func @transform_1(%arg0: i32) -> (i32, i32, i32) {
    %c0_i32 = arith.constant 0 : i32
    %c0_i32_0 = arith.constant 0 : i32
    %c0_i32_1 = arith.constant 0 : i32
    %c0_i32_2 = arith.constant 0 : i32
    return %c0_i32, %c0_i32_0, %c0_i32_1 : i32, i32, i32
  }
  func.func @transform_2(%arg0: i32) -> (i32, i32, i32) {
    %c0_i32 = arith.constant 0 : i32
    %c0_i32_0 = arith.constant 0 : i32
    %c0_i32_1 = arith.constant 0 : i32
    %c0_i32_2 = arith.constant 0 : i32
    return %c0_i32, %c0_i32_0, %c0_i32_1 : i32, i32, i32
  }
  func.func @transform_3(%arg0: i32) -> (i32, i32, i32) {
    %c0_i32 = arith.constant 0 : i32
    %c0_i32_0 = arith.constant 0 : i32
    %c0_i32_1 = arith.constant 0 : i32
    %c0_i32_2 = arith.constant 0 : i32
    return %c0_i32, %c0_i32_0, %c0_i32_1 : i32, i32, i32
  }
  func.func @transform_4(%arg0: i32) -> (i32, i32, i32) {
    %c0_i32 = arith.constant 0 : i32
    %c0_i32_0 = arith.constant 0 : i32
    %c0_i32_1 = arith.constant 0 : i32
    %c0_i32_2 = arith.constant 0 : i32
    return %c0_i32, %c0_i32_0, %c0_i32_1 : i32, i32, i32
  }
  func.func @transform_5(%arg0: i32) -> (i32, i32, i32) {
    %c0_i32 = arith.constant 0 : i32
    %c0_i32_0 = arith.constant 0 : i32
    %c0_i32_1 = arith.constant 0 : i32
    %c0_i32_2 = arith.constant 0 : i32
    return %c0_i32, %c0_i32_0, %c0_i32_1 : i32, i32, i32
  }
  func.func @transform_6(%arg0: i32) -> (i32, i32, i32) {
    %c0_i32 = arith.constant 0 : i32
    %c0_i32_0 = arith.constant 0 : i32
    %c0_i32_1 = arith.constant 0 : i32
    %c0_i32_2 = arith.constant 0 : i32
    return %c0_i32, %c0_i32_0, %c0_i32_1 : i32, i32, i32
  }
  func.func @transform_7(%arg0: i32) -> (i32, i32, i32) {
    %c0_i32 = arith.constant 0 : i32
    %c0_i32_0 = arith.constant 0 : i32
    %c0_i32_1 = arith.constant 0 : i32
    %c0_i32_2 = arith.constant 0 : i32
    return %c0_i32, %c0_i32_0, %c0_i32_1 : i32, i32, i32
  }
  func.func @transform_8(%arg0: i32) -> (i32, i32, i32) {
    %c0_i32 = arith.constant 0 : i32
    %c0_i32_0 = arith.constant 0 : i32
    %c0_i32_1 = arith.constant 0 : i32
    %c0_i32_2 = arith.constant 0 : i32
    return %c0_i32, %c0_i32_0, %c0_i32_1 : i32, i32, i32
  }
  func.func @transform_9(%arg0: i32) -> (i32, i32, i32) {
    %c0_i32 = arith.constant 0 : i32
    %c0_i32_0 = arith.constant 0 : i32
    %c0_i32_1 = arith.constant 0 : i32
    %c0_i32_2 = arith.constant 0 : i32
    return %c0_i32, %c0_i32_0, %c0_i32_1 : i32, i32, i32
  }
  func.func @transform_10(%arg0: i32) -> (i32, i32) {
    %c0_i32 = arith.constant 0 : i32
    %c0_i32_0 = arith.constant 0 : i32
    return %c0_i32, %arg0 : i32, i32
  }
}

</mosaic_0001>

<bundles_post_ra>
// kernel: tpu_custom_call.1
= control target key start
LH: loop header
LB: loop body
LE: loop exit
PB: predicated region body
PF: predicated region fallthrough
CT: control target
= control target key end

     0   :  { %vm60_vm0 = vcmask 1043456   ;;  %vm162_vm1 = vcmask 1041408   ;;  %v4078_v3 = vmov 0   ;;  %vm47_vm2 = vcmask 31744   ;;  %s4812_s0 = inlined_call_operand.vmem [shape: f32[8,8], index: 0, kind: input, shape index: {}]   ;;  %s4813_s1 = inlined_call_operand.vmem [shape: f32[6,32,2], index: 1, kind: input, shape index: {}]   ;;  %s4814_s2 = inlined_call_operand.vmem [shape: f32[6,32,4], index: 2, kind: input, shape index: {}]   ;;  %s4815_s3 = inlined_call_operand.vmem [shape: f32[6,32,1], index: 3, kind: input, shape index: {}]   ;;  %s4816_s4 = inlined_call_operand.vmem [shape: f32[6,32,32], index: 4, kind: input, shape index: {}]   ;;  %s4817_s5 = inlined_call_operand.vmem [shape: f32[6,32,1], index: 5, kind: input, shape index: {}]   ;;  %s4818_s6 = inlined_call_operand.vmem [shape: f32[6,2,32], index: 6, kind: input, shape index: {}]   ;;  %s4819_s7 = inlined_call_operand.vmem [shape: f32[6,2,32], index: 7, kind: input, shape index: {}]   ;;  %s4820_s8 = inlined_call_operand.vmem [shape: f32[6,2,1], index: 8, kind: input, shape index: {}]   ;;  %s4821_s9 = inlined_call_operand.vmem [shape: f32[6,2,1], index: 9, kind: input, shape index: {}]   ;;  %s4822_s10 = inlined_call_operand.hbm [shape: f32[5,8], index: 10, kind: output, shape index: {}]  }
   0x1   :  { %v253_v0 = vld [vmem:[%s4815_s3 + $0x18] sm:$0xff]  ;;  %v251_v1 = vld [vmem:[%s4815_s3 + $0x8] sm:$0xff]  ;;  %v4146_v2 = vld [vmem:[%s4812_s0] sm:$0xff]  ;;  %4031 = vset.pattern.permute.xlu1 %v4078_v3  ;;  %4030 = vset.pattern.permute.xlu0 %v4078_v3  ;;  %vm149_vm3 = vcmask 15360  }
   0x2   :  { %v4149_v4 = vrot.slane %v4146_v2, 4  ;;  %v148_v5 = vrot.slane %v4146_v2, 2  ;;  %v41_v6 = vld [vmem:[%s4814_s2] sm:$0xff]  ;;  %271 = vperm.xlu0 %4030, %v253_v0   ;;  %261 = vperm.xlu1 %4031, %v251_v1   ;;  %v42_v8 = vld [vmem:[%s4814_s2 + $0x8] sm:$0xff]  ;;  %v252_v10 = vld [vmem:[%s4815_s3 + $0x10] sm:$0xff] }
   0x3   :  { %v37_v7 = vld [vmem:[%s4813_s1] sm:$0xff]  ;;  %v38_v9 = vld [vmem:[%s4813_s1 + $0x8] sm:$0xff]  ;;  %3716 = vmatprep.mubr.msk.f32.mxu0 %vm47_vm2, %v41_v6  ;;  %v43_v12 = vld [vmem:[%s4814_s2 + $0x10] sm:$0xff] }
   0x4   :  { %3714 = vmatprep.subr.msk.mxu0 %vm60_vm0, %v4149_v4  ;;  %3722 = vmatprep.subr.msk.mxu1 %vm162_vm1, %v148_v5  ;;  %v250_v11 = vld [vmem:[%s4815_s3] sm:$0xff]  ;;  %v39_v13 = vld [vmem:[%s4813_s1 + $0x10] sm:$0xff]  ;;  %v44_v14 = vld [vmem:[%s4814_s2 + $0x18] sm:$0xff] }
   0x5   :  { %3715 = vmatpush3.msk.msra.mxu0 %vm60_vm0, %v4149_v4  ;;  %3723 = vmatpush3.msk.msra.mxu1 %vm162_vm1, %v148_v5  ;;  %v40_v15 = vld [vmem:[%s4813_s1 + $0x18] sm:$0xff]  ;;  %v288_v17 = vld [vmem:[%s4817_s5 + $0x10] sm:$0xff]  ;;  %v287_v18 = vld [vmem:[%s4817_s5 + $0x8] sm:$0xff] }
   0x6   :  { %3724 = vmatprep.mubr.msk.f32.mxu1 %vm149_vm3, %v37_v7  ;;  %3717 = vmatmul.mubr.msk.f32.vlgmr.msra.gmra.mxu0 %vm47_vm2, %v42_v8  ;;  %v289_v16 = vld [vmem:[%s4817_s5 + $0x18] sm:$0xff]  ;;  %v286_v19 = vld [vmem:[%s4817_s5] sm:$0xff]  ;;  %v3366_v23 = vld [vmem:[%s4815_s3 + $0x30] sm:$0xff] }
   0x7   :  { %3725 = vmatmul.mubr.msk.f32.vlgmr.msra.gmra.mxu1 %vm149_vm3, %v38_v9  ;;  %266 = vperm.xlu0 %4030, %v252_v10   ;;  %v413_v20 = vld [vmem:[%s4820_s8] sm:$0x3]  ;;  %v3367_v22 = vld [vmem:[%s4815_s3 + $0x38] sm:$0xff] }
   0x8   :  { %256 = vperm.xlu1 %4031, %v250_v11   ;;  %3719 = vmatprep.mubr.msk.f32.mxu0 %vm47_vm2, %v43_v12  ;;  %v494_v21 = vld [vmem:[%s4821_s9] sm:$0x3] }
   0x9   :  { %3727 = vmatprep.mubr.msk.f32.mxu1 %vm149_vm3, %v39_v13 }
   0xa   :  { %3720 = vmatmul.mubr.msk.f32.gmra.mxu0 %vm47_vm2, %v44_v14 }
   0xb   :  { %3728 = vmatmul.mubr.msk.f32.gmra.mxu1 %vm149_vm3, %v40_v15  ;;  %307 = vperm.xlu0 %4030, %v289_v16  }
   0xc   :  { %302 = vperm.xlu1 %4031, %v288_v17  }
   0xf   :  { %297 = vperm.xlu0 %4030, %v287_v18  }
  0x10   :  { %292 = vperm.xlu1 %4031, %v286_v19  }
  0x13   :  { %416 = vperm.xlu0 %4030, %v413_v20  }
  0x14   :  { %497 = vperm.xlu1 %4031, %v494_v21  }
  0x17   :  { %807 = vperm.xlu0 %4030, %v3367_v22  }
  0x18   :  { %802 = vperm.xlu1 %4031, %v3366_v23  }
  0x19   :  { %15 = vsyncpa [#allocation3], 0  ;;  %v3365_v24 = vld [vmem:[%s4815_s3 + $0x28] sm:$0xff]  ;;  %v3364_v25 = vld [vmem:[%s4815_s3 + $0x20] sm:$0xff]  ;;  %vm310_vm4 = vcmask 261120   ;;  %vm4080_vm5 = vmmov 0  }
  0x1a   :  { %v3375_v26 = vld [vmem:[%s4817_s5 + $0x38] sm:$0xff]  ;;  %v3374_v27 = vld [vmem:[%s4817_s5 + $0x30] sm:$0xff]  ;;  %v3373_v28 = vld [vmem:[%s4817_s5 + $0x28] sm:$0xff]  ;;  %vm3303_vm6 = vcmask 58368   ;;  %vm3314_vm7 = vcmask 57344   ;;  %vm3305_vm8 = vcmask 60418  }
  0x1b   :  { %797 = vperm.xlu0 %4030, %v3365_v24   ;;  %v3372_v29 = vld [vmem:[%s4817_s5 + $0x20] sm:$0xff]  ;;  %v3407_v32 = vld [vmem:[%s4815_s3 + $0x58] sm:$0xff]  ;;  %v3406_v33 = vld [vmem:[%s4815_s3 + $0x50] sm:$0xff] }
  0x1c   :  { %792 = vperm.xlu1 %4031, %v3364_v25   ;;  %v3381_v30 = vld [vmem:[%s4820_s8 + $0x2] sm:$0x3]  ;;  %v3405_v34 = vld [vmem:[%s4815_s3 + $0x48] sm:$0xff]  ;;  %v3415_v36 = vld [vmem:[%s4817_s5 + $0x58] sm:$0xff] }
  0x1d   :  { %v3384_v31 = vld [vmem:[%s4821_s9 + $0x2] sm:$0x3]  ;;  %v3414_v37 = vld [vmem:[%s4817_s5 + $0x50] sm:$0xff]  ;;  %v3413_v38 = vld [vmem:[%s4817_s5 + $0x48] sm:$0xff] }
  0x1e   :  { %v3404_v35 = vld [vmem:[%s4815_s3 + $0x40] sm:$0xff]  ;;  %v3447_v42 = vld [vmem:[%s4815_s3 + $0x78] sm:$0xff]  ;;  %v3446_v43 = vld [vmem:[%s4815_s3 + $0x70] sm:$0xff] }
  0x1f   :  { %845 = vperm.xlu0 %4030, %v3375_v26   ;;  %v3412_v39 = vld [vmem:[%s4817_s5 + $0x40] sm:$0xff]  ;;  %v3445_v44 = vld [vmem:[%s4815_s3 + $0x68] sm:$0xff]  ;;  %v3455_v46 = vld [vmem:[%s4817_s5 + $0x78] sm:$0xff] }
  0x20   :  { %840 = vperm.xlu1 %4031, %v3374_v27   ;;  %v3421_v40 = vld [vmem:[%s4820_s8 + $0x4] sm:$0x3]  ;;  %v3454_v47 = vld [vmem:[%s4817_s5 + $0x70] sm:$0xff]  ;;  %v3453_v48 = vld [vmem:[%s4817_s5 + $0x68] sm:$0xff] }
  0x21   :  { %v3424_v41 = vld [vmem:[%s4821_s9 + $0x4] sm:$0x3]  ;;  %v3461_v50 = vld [vmem:[%s4820_s8 + $0x6] sm:$0x3]  ;;  %v3487_v52 = vld [vmem:[%s4815_s3 + $0x98] sm:$0xff] }
  0x22   :  { %v3444_v45 = vld [vmem:[%s4815_s3 + $0x60] sm:$0xff]  ;;  %v3486_v53 = vld [vmem:[%s4815_s3 + $0x90] sm:$0xff]  ;;  %v3485_v54 = vld [vmem:[%s4815_s3 + $0x88] sm:$0xff] }
  0x23   :  { %835 = vperm.xlu0 %4030, %v3373_v28   ;;  %v3452_v49 = vld [vmem:[%s4817_s5 + $0x60] sm:$0xff]  ;;  %v3495_v56 = vld [vmem:[%s4817_s5 + $0x98] sm:$0xff]  ;;  %v3494_v57 = vld [vmem:[%s4817_s5 + $0x90] sm:$0xff] }
  0x24   :  { %830 = vperm.xlu1 %4031, %v3372_v29   ;;  %v3464_v51 = vld [vmem:[%s4821_s9 + $0x6] sm:$0x3]  ;;  %v3493_v59 = vld [vmem:[%s4817_s5 + $0x88] sm:$0xff]  ;;  %v3527_v63 = vld [vmem:[%s4815_s3 + $0xb8] sm:$0xff] }
  0x25   :  { %v3484_v55 = vld [vmem:[%s4815_s3 + $0x80] sm:$0xff]  ;;  %v3501_v61 = vld [vmem:[%s4820_s8 + $0x8] sm:$0x3]  ;;  %v3526_v0 = vld [vmem:[%s4815_s3 + $0xb0] sm:$0xff] }
  0x26   :  { %v282_v58 = vld [vmem:[%s4816_s4] sm:$0xff]  ;;  %v3504_v62 = vld [vmem:[%s4821_s9 + $0x8] sm:$0x3]  ;;  %v3535_v5 = vld [vmem:[%s4817_s5 + $0xb8] sm:$0xff] }
  0x27   :  { %955 = vperm.xlu0 %4030, %v3381_v30   ;;  %3738 = vmatprep.mubr.msk.f32.mxu0 %vm310_vm4, %v282_v58  ;;  %v3492_v60 = vld [vmem:[%s4817_s5 + $0x80] sm:$0xff]  ;;  %v3525_v1 = vld [vmem:[%s4815_s3 + $0xa8] sm:$0xff]  ;;  %v3534_v6 = vld [vmem:[%s4817_s5 + $0xb0] sm:$0xff] }
  0x28   :  { %1038 = vperm.xlu1 %4031, %v3384_v31   ;;  %v3524_v3 = vld [vmem:[%s4815_s3 + $0xa0] sm:$0xff]  ;;  %v3533_v7 = vld [vmem:[%s4817_s5 + $0xa8] sm:$0xff] }
  0x29   :  { %v3532_v8 = vld [vmem:[%s4817_s5 + $0xa0] sm:$0xff]  ;;  %v3541_v9 = vld [vmem:[%s4820_s8 + $0xa] sm:$0x3] }
  0x2a   :  { %v3544_v10 = vld [vmem:[%s4821_s9 + $0xa] sm:$0x3] }
  0x2b   :  { %1355 = vperm.xlu0 %4030, %v3407_v32   ;;  %v3351_v58 = vld [vmem:[%s4814_s2 + $0x28] sm:$0xff] }
  0x2c   :  { %1350 = vperm.xlu1 %4031, %v3406_v33  }
  0x2f   :  { %1345 = vperm.xlu0 %4030, %v3405_v34  }
  0x30   :  { %1340 = vperm.xlu1 %4031, %v3404_v35   ;;  %v283_v35 = vld [vmem:[%s4816_s4 + $0x8] sm:$0xff] }
  0x33   :  { %1393 = vperm.xlu0 %4030, %v3415_v36   ;;  %v284_v36 = vld [vmem:[%s4816_s4 + $0x10] sm:$0xff] }
  0x34   :  { %1388 = vperm.xlu1 %4031, %v3414_v37   ;;  %v285_v37 = vld [vmem:[%s4816_s4 + $0x18] sm:$0xff] }
  0x37   :  { %1383 = vperm.xlu0 %4030, %v3413_v38   ;;  %v4079_v38 = vmov 0.0  }
  0x38   :  { %1378 = vperm.xlu1 %4031, %v3412_v39   ;;  %3744 = vmatprep.subr.mxu1 %v4079_v38 }
  0x39   :  { %3752 = vmatprep.mubr.msk.f32.mxu1 %vm4080_vm5, %v4079_v38 }
  0x3b   :  { %1503 = vperm.xlu0 %4030, %v3421_v40  }
  0x3c   :  { %1586 = vperm.xlu1 %4031, %v3424_v41  }
  0x3f   :  { %1896 = vperm.xlu0 %4030, %v3447_v42  }
  0x40   :  { %1891 = vperm.xlu1 %4031, %v3446_v43  }
  0x43   :  { %1886 = vperm.xlu0 %4030, %v3445_v44  }
  0x44   :  { %1881 = vperm.xlu1 %4031, %v3444_v45  }
  0x47   :  { %1934 = vperm.xlu0 %4030, %v3455_v46  }
  0x48   :  { %1929 = vperm.xlu1 %4031, %v3454_v47  }
  0x4b   :  { %1924 = vperm.xlu0 %4030, %v3453_v48  }
  0x4c   :  { %1919 = vperm.xlu1 %4031, %v3452_v49  }
  0x4f   :  { %2044 = vperm.xlu0 %4030, %v3461_v50  }
  0x50   :  { %2127 = vperm.xlu1 %4031, %v3464_v51  }
  0x53   :  { %2444 = vperm.xlu0 %4030, %v3487_v52  }
  0x54   :  { %2439 = vperm.xlu1 %4031, %v3486_v53  }
  0x57   :  { %2434 = vperm.xlu0 %4030, %v3485_v54  }
  0x58   :  { %2429 = vperm.xlu1 %4031, %v3484_v55   ;;  %v412_v55 = vld [vmem:[%s4818_s6] sm:$0x3] }
  0x5b   :  { %2482 = vperm.xlu0 %4030, %v3495_v56   ;;  %v493_v56 = vld [vmem:[%s4819_s7] sm:$0x3] }
  0x5c   :  { %2477 = vperm.xlu1 %4031, %v3494_v57   ;;  %v3350_v57 = vld [vmem:[%s4814_s2 + $0x20] sm:$0xff] }
  0x5f   :  { %2472 = vperm.xlu0 %4030, %v3493_v59   ;;  %v3346_v59 = vld [vmem:[%s4813_s1 + $0x20] sm:$0xff] }
  0x60   :  { %2467 = vperm.xlu1 %4031, %v3492_v60   ;;  %v3352_v60 = vld [vmem:[%s4814_s2 + $0x30] sm:$0xff] }
  0x63   :  { %2592 = vperm.xlu0 %4030, %v3501_v61   ;;  %v3353_v61 = vld [vmem:[%s4814_s2 + $0x38] sm:$0xff] }
  0x64   :  { %2675 = vperm.xlu1 %4031, %v3504_v62  }
  0x67   :  { %2985 = vperm.xlu0 %4030, %v3527_v63  }
  0x68   :  { %2980 = vperm.xlu1 %4031, %v3526_v0  }
  0x6b   :  { %2975 = vperm.xlu0 %4030, %v3525_v1  }
  0x6c   :  { %2970 = vperm.xlu1 %4031, %v3524_v3  }
  0x6f   :  { %3023 = vperm.xlu0 %4030, %v3535_v5  }
  0x70   :  { %3018 = vperm.xlu1 %4031, %v3534_v6  }
  0x73   :  { %3013 = vperm.xlu0 %4030, %v3533_v7  }
  0x74   :  { %3008 = vperm.xlu1 %4031, %v3532_v8  }
  0x77   :  { %3133 = vperm.xlu0 %4030, %v3541_v9  }
  0x78   :  { %3216 = vperm.xlu1 %4031, %v3544_v10  }
  0x7d   :  { %v272_v13 = vpop.permute.xlu0 %271  ;;  %v262_v16 = vpop.permute.xlu1 %261 }
  0x82   :  { %v267_v26 = vpop.permute.xlu0 %266 }
  0x83   :  { %v257_v30 = vpop.permute.xlu1 %256 }
  0x86   :  { %v308_v39 = vpop.permute.xlu0 %307 }
  0x87   :  { %v303_v41 = vpop.permute.xlu1 %302 }
  0x8a   :  { %v298_v45 = vpop.permute.xlu0 %297 }
  0x8b   :  { %v293_v50 = vpop.permute.xlu1 %292 }
  0x8e   :  { %v417_v62 = vpop.permute.xlu0 %416 }
  0x8f   :  { %v498_v9 = vpop.permute.xlu1 %497 }
  0xc6   :  { %v3718_v11 = vpop.f32.mrf.mxu0 }
  0xc7   :  { %v3726_v12 = vpop.f32.mrf.mxu1 }
  0xc8   :  { %v129_v14 = vpop.f32.mrf.mxu0  ;;  %v237_v19 = vadd.f32 %v3726_v12, %v3718_v11 }
  0xc9   :  { %v231_v15 = vpop.f32.mrf.mxu1 }
  0xca   :  { %v3721_v17 = vpop.f32.mrf.mxu0  ;;  %v232_v23 = vadd.f32 %v231_v15, %v129_v14  ;;  %v275_v27 = vadd.f32 %v262_v16, %v237_v19  ;;  %v3348_v14 = vld [vmem:[%s4813_s1 + $0x30] sm:$0xff]  ;;  %v3349_v15 = vld [vmem:[%s4813_s1 + $0x38] sm:$0xff]  ;;  %v3368_v16 = vld [vmem:[%s4816_s4 + $0x20] sm:$0xff] }
  0xcb   :  { %v3729_v18 = vpop.f32.mrf.mxu1 }
  0xcc   :  { %v247_v20 = vadd.f32 %v3729_v18, %v3721_v17  ;;  %v139_v21 = vpop.f32.mrf.mxu0  ;;  %v274_v31 = vadd.f32 %v257_v30, %v232_v23  ;;  %v279_v33 = vmax.f32 %v275_v27, 0.0  ;;  %v803_v23 = vpop.permute.xlu1 %802 }
  0xcd   :  { %v241_v22 = vpop.f32.mrf.mxu1 }
  0xce   :  { %v277_v24 = vadd.f32 %v272_v13, %v247_v20  ;;  %v242_v25 = vadd.f32 %v241_v22, %v139_v21  ;;  %v278_v34 = vmax.f32 %v274_v31, 0.0  ;;  %v3347_v13 = vld [vmem:[%s4813_s1 + $0x28] sm:$0xff]  ;;  %v808_v20 = vpop.permute.xlu0 %807 }
  0xd0   :  { %v281_v28 = vmax.f32 %v277_v24, 0.0  ;;  %v276_v29 = vadd.f32 %v267_v26, %v242_v25 }
  0xd2   :  { %v280_v32 = vmax.f32 %v276_v29, 0.0  ;;  %3730 = vmatprep.subr.mxu0 %v281_v28 }
  0xd3   :  { %3731 = vmatpush3.msra.mxu0 %v281_v28 }
  0xd4   :  { %3732 = vmatprep.subr.mxu0 %v280_v32 }
  0xd5   :  { %3733 = vmatpush3.msra.mxu0 %v280_v32  ;;  %v798_v32 = vpop.permute.xlu0 %797 }
  0xd6   :  { %3734 = vmatprep.subr.mxu0 %v279_v33 }
  0xd7   :  { %3735 = vmatpush3.msra.mxu0 %v279_v33 }
  0xd8   :  { %3736 = vmatprep.subr.mxu0 %v278_v34 }
  0xd9   :  { %3737 = vmatpush3.msra.mxu0 %v278_v34 }
  0xda   :  { %3739 = vmatmul.mubr.msk.f32.vlgmr.msra.gmra.mxu0 %vm310_vm4, %v283_v35  ;;  %3755 = vmatprep.subr.mxu0 %v4079_v38 }
  0xdb   :  { %3741 = vmatprep.mubr.msk.f32.mxu0 %vm310_vm4, %v284_v36  ;;  %v793_v36 = vpop.permute.xlu1 %792 }
  0xde   :  { %3742 = vmatmul.mubr.msk.f32.gmra.mxu0 %vm310_vm4, %v285_v37 }
  0xdf   :  { %3763 = vmatprep.mubr.msk.f32.mxu0 %vm4080_vm5, %v4079_v38 }
 0x19a   :  { %v3740_v40 = vpop.f32.mrf.mxu0 }
 0x19b   :  { %v395_v47 = vadd.f32 %v3740_v40, %v298_v45  ;;  %v846_v45 = vpop.permute.xlu0 %845 }
 0x19c   :  { %v389_v42 = vpop.f32.mrf.mxu0 }
 0x19d   :  { %v390_v51 = vadd.f32 %v389_v42, %v293_v50  ;;  %v409_v53 = vmax.f32 %v395_v47, 0.0  ;;  %v3369_v42 = vld [vmem:[%s4816_s4 + $0x28] sm:$0xff]  ;;  %v841_v47 = vpop.permute.xlu1 %840 }
 0x19e   :  { %v3743_v43 = vpop.f32.mrf.mxu0 }
 0x19f   :  { %v405_v44 = vadd.f32 %v3743_v43, %v308_v39  ;;  %v408_v54 = vmax.f32 %v390_v51, 0.0  ;;  %v3370_v43 = vld [vmem:[%s4816_s4 + $0x30] sm:$0xff]  ;;  %v836_v51 = vpop.permute.xlu0 %835 }
 0x1a0   :  { %v399_v46 = vpop.f32.mrf.mxu0 }
 0x1a1   :  { %v411_v48 = vmax.f32 %v405_v44, 0.0  ;;  %v400_v49 = vadd.f32 %v399_v46, %v303_v41  ;;  %v3371_v44 = vld [vmem:[%s4816_s4 + $0x38] sm:$0xff] }
 0x1a3   :  { %v410_v52 = vmax.f32 %v400_v49, 0.0  ;;  %3745 = vmatpush3.msra.mxu1 %v411_v48  ;;  %3756 = vmatpush3.msra.mxu0 %v411_v48 }
 0x1a4   :  { %3746 = vmatprep.subr.mxu1 %v4079_v38  ;;  %3757 = vmatprep.subr.mxu0 %v4079_v38 }
 0x1a5   :  { %3747 = vmatpush3.msra.mxu1 %v410_v52  ;;  %3758 = vmatpush3.msra.mxu0 %v410_v52 }
 0x1a6   :  { %3748 = vmatprep.subr.mxu1 %v4079_v38  ;;  %3759 = vmatprep.subr.mxu0 %v4079_v38 }
 0x1a7   :  { %3749 = vmatpush3.msra.mxu1 %v409_v53  ;;  %3760 = vmatpush3.msra.mxu0 %v409_v53 }
 0x1a8   :  { %3750 = vmatprep.subr.mxu1 %v4079_v38  ;;  %3761 = vmatprep.subr.mxu0 %v4079_v38 }
 0x1a9   :  { %3751 = vmatpush3.msra.mxu1 %v408_v54  ;;  %3762 = vmatpush3.msra.mxu0 %v408_v54 }
 0x1aa   :  { %3753 = vmatmul.mubr.msk.f32.vlgmr.msra.gmra.mxu1 %vm310_vm4, %v412_v55  ;;  %3764 = vmatmul.mubr.msk.f32.vlgmr.msra.gmra.mxu0 %vm310_vm4, %v493_v56  ;;  %v831_v56 = vpop.permute.xlu1 %830 }
 0x1ab   :  { %3766 = vmatprep.subr.msk.mxu1 %vm60_vm0, %v4149_v4  ;;  %3768 = vmatprep.mubr.msk.f32.mxu1 %vm47_vm2, %v3350_v57 }
 0x1ac   :  { %3767 = vmatpush3.msk.msra.mxu1 %vm60_vm0, %v4149_v4  ;;  %3776 = vmatprep.mubr.msk.f32.mxu0 %vm149_vm3, %v3346_v59 }
 0x1ae   :  { %3769 = vmatmul.mubr.msk.f32.vlgmr.msra.gmra.mxu1 %vm47_vm2, %v3351_v58 }
 0x1af   :  { %3771 = vmatprep.mubr.msk.f32.mxu1 %vm47_vm2, %v3352_v60 }
 0x1b2   :  { %3772 = vmatmul.mubr.msk.f32.gmra.mxu1 %vm47_vm2, %v3353_v61  ;;  %v3380_v61 = vld [vmem:[%s4818_s6 + $0x2] sm:$0x3] }
 0x1b3   :  { %3790 = vmatprep.mubr.msk.f32.mxu1 %vm310_vm4, %v3368_v16  ;;  %v1039_v16 = vpop.permute.xlu1 %1038 }
 0x26a   :  { %v488_v63 = vpop.f32.mrf.mxu1  ;;  %v569_v0 = vpop.f32.mrf.mxu0 }
 0x26b   :  { %v489_v1 = vadd.f32 %v488_v63, %v417_v62  ;;  %v570_v10 = vadd.f32 %v569_v0, %v498_v9  ;;  %v3383_v62 = vld [vmem:[%s4819_s7 + $0x2] sm:$0x3]  ;;  %v3391_v0 = vld [vmem:[%s4814_s2 + $0x48] sm:$0xff] }
 0x26c   :  { %v3754_v3 = vpop.f32.mrf.mxu1  ;;  %v3765_v5 = vpop.f32.mrf.mxu0  ;;  %v3390_v63 = vld [vmem:[%s4814_s2 + $0x40] sm:$0xff] }
 0x26d   :  { %4032 = vtanh.f32 %v489_v1  ;;  %v3386_v1 = vld [vmem:[%s4813_s1 + $0x40] sm:$0xff]  ;;  %v3392_v3 = vld [vmem:[%s4814_s2 + $0x50] sm:$0xff]  ;;  %v3393_v5 = vld [vmem:[%s4814_s2 + $0x58] sm:$0xff] }
 0x26e   :  { %v3770_v17 = vpop.f32.mrf.mxu1 }
 0x270   :  { %v666_v18 = vpop.f32.mrf.mxu1 }
 0x272   :  { %v3773_v21 = vpop.f32.mrf.mxu1 }
 0x274   :  { %v676_v27 = vpop.f32.mrf.mxu1 }
 0x27a   :  { %v4424_v6 = vpop.eup %4032 }
 0x27b   :  { %v573_v7 = vmul.f32 1.442695, %v4424_v6 }
 0x27d   :  { %4034 = vpow2.f32 %v573_v7  ;;  %v956_v7 = vpop.permute.xlu0 %955 }
 0x28a   :  { %v4035_v8 = vpop.eup %4034 }
 0x28b   :  { %v575_v11 = vmul.f32 %v4035_v8, %v4146_v2 }
 0x28d   :  { %v4428_v12 = vadd.f32 %v575_v11, %v570_v10 }
 0x28f   :  { %3774 = vmatprep.subr.msk.mxu0 %vm162_vm1, %v4428_v12 }
 0x290   :  { %3775 = vmatpush3.msk.msra.mxu0 %vm162_vm1, %v4428_v12 }
 0x291   :  { %3777 = vmatmul.mubr.msk.f32.vlgmr.msra.gmra.mxu0 %vm149_vm3, %v3347_v13  ;;  %3796 = vmatprep.subr.mxu0 %v4079_v38 }
 0x292   :  { %3779 = vmatprep.mubr.msk.f32.mxu0 %vm149_vm3, %v3348_v14 }
 0x295   :  { %3780 = vmatmul.mubr.msk.f32.gmra.mxu0 %vm149_vm3, %v3349_v15 }
 0x296   :  { %3804 = vmatprep.mubr.msk.f32.mxu0 %vm4080_vm5, %v4079_v38 }
 0x351   :  { %v3778_v19 = vpop.f32.mrf.mxu0 }
 0x352   :  { %v772_v25 = vadd.f32 %v3778_v19, %v3770_v17 }
 0x353   :  { %v766_v22 = vpop.f32.mrf.mxu0 }
 0x354   :  { %v767_v29 = vadd.f32 %v766_v22, %v666_v18  ;;  %v811_v33 = vadd.f32 %v798_v32, %v772_v25  ;;  %v3388_v25 = vld [vmem:[%s4813_s1 + $0x50] sm:$0xff] }
 0x355   :  { %v3781_v24 = vpop.f32.mrf.mxu0 }
 0x356   :  { %v782_v26 = vadd.f32 %v3781_v24, %v3773_v21  ;;  %v810_v37 = vadd.f32 %v793_v36, %v767_v29  ;;  %v815_v40 = vmax.f32 %v811_v33, 0.0  ;;  %v3387_v24 = vld [vmem:[%s4813_s1 + $0x48] sm:$0xff]  ;;  %v1351_v33 = vpop.permute.xlu1 %1350 }
 0x357   :  { %v776_v28 = vpop.f32.mrf.mxu0 }
 0x358   :  { %v813_v30 = vadd.f32 %v808_v20, %v782_v26  ;;  %v777_v31 = vadd.f32 %v776_v28, %v676_v27  ;;  %v814_v41 = vmax.f32 %v810_v37, 0.0  ;;  %v3408_v26 = vld [vmem:[%s4816_s4 + $0x40] sm:$0xff] }
 0x35a   :  { %v817_v34 = vmax.f32 %v813_v30, 0.0  ;;  %v812_v35 = vadd.f32 %v803_v23, %v777_v31  ;;  %v1356_v30 = vpop.permute.xlu0 %1355 }
 0x35c   :  { %v816_v39 = vmax.f32 %v812_v35, 0.0  ;;  %3782 = vmatprep.subr.mxu1 %v817_v34 }
 0x35d   :  { %3783 = vmatpush3.msra.mxu1 %v817_v34 }
 0x35e   :  { %3784 = vmatprep.subr.mxu1 %v816_v39 }
 0x35f   :  { %3785 = vmatpush3.msra.mxu1 %v816_v39 }
 0x360   :  { %3786 = vmatprep.subr.mxu1 %v815_v40 }
 0x361   :  { %3787 = vmatpush3.msra.mxu1 %v815_v40 }
 0x362   :  { %3788 = vmatprep.subr.mxu1 %v814_v41 }
 0x363   :  { %3789 = vmatpush3.msra.mxu1 %v814_v41 }
 0x364   :  { %3791 = vmatmul.mubr.msk.f32.vlgmr.msra.gmra.mxu1 %vm310_vm4, %v3369_v42  ;;  %3807 = vmatprep.subr.mxu1 %v4079_v38 }
 0x365   :  { %3793 = vmatprep.mubr.msk.f32.mxu1 %vm310_vm4, %v3370_v43  ;;  %v1346_v43 = vpop.permute.xlu0 %1345 }
 0x368   :  { %3794 = vmatmul.mubr.msk.f32.gmra.mxu1 %vm310_vm4, %v3371_v44 }
 0x369   :  { %3815 = vmatprep.mubr.msk.f32.mxu1 %vm4080_vm5, %v4079_v38 }
 0x424   :  { %v3792_v46 = vpop.f32.mrf.mxu1 }
 0x425   :  { %v932_v53 = vadd.f32 %v3792_v46, %v836_v51 }
 0x426   :  { %v926_v48 = vpop.f32.mrf.mxu1 }
 0x427   :  { %v927_v57 = vadd.f32 %v926_v48, %v831_v56  ;;  %v946_v59 = vmax.f32 %v932_v53, 0.0  ;;  %v3410_v53 = vld [vmem:[%s4816_s4 + $0x50] sm:$0xff] }
 0x428   :  { %v3795_v49 = vpop.f32.mrf.mxu1 }
 0x429   :  { %v942_v50 = vadd.f32 %v3795_v49, %v846_v45  ;;  %v945_v60 = vmax.f32 %v927_v57, 0.0 }
 0x42a   :  { %v936_v52 = vpop.f32.mrf.mxu1 }
 0x42b   :  { %v948_v54 = vmax.f32 %v942_v50, 0.0  ;;  %v937_v55 = vadd.f32 %v936_v52, %v841_v47  ;;  %v1341_v47 = vpop.permute.xlu1 %1340  ;;  %v3409_v52 = vld [vmem:[%s4816_s4 + $0x48] sm:$0xff] }
 0x42d   :  { %v947_v58 = vmax.f32 %v937_v55, 0.0  ;;  %3797 = vmatpush3.msra.mxu0 %v948_v54  ;;  %3808 = vmatpush3.msra.mxu1 %v948_v54  ;;  %v3411_v54 = vld [vmem:[%s4816_s4 + $0x58] sm:$0xff]  ;;  %v1394_v55 = vpop.permute.xlu0 %1393 }
 0x42e   :  { %3798 = vmatprep.subr.mxu0 %v4079_v38  ;;  %3809 = vmatprep.subr.mxu1 %v4079_v38 }
 0x42f   :  { %3799 = vmatpush3.msra.mxu0 %v947_v58  ;;  %3810 = vmatpush3.msra.mxu1 %v947_v58  ;;  %v1389_v57 = vpop.permute.xlu1 %1388 }
 0x430   :  { %3800 = vmatprep.subr.mxu0 %v4079_v38  ;;  %3811 = vmatprep.subr.mxu1 %v4079_v38 }
 0x431   :  { %3801 = vmatpush3.msra.mxu0 %v946_v59  ;;  %3812 = vmatpush3.msra.mxu1 %v946_v59 }
 0x432   :  { %3802 = vmatprep.subr.mxu0 %v4079_v38  ;;  %3813 = vmatprep.subr.mxu1 %v4079_v38 }
 0x433   :  { %3803 = vmatpush3.msra.mxu0 %v945_v60  ;;  %3814 = vmatpush3.msra.mxu1 %v945_v60 }
 0x434   :  { %3805 = vmatmul.mubr.msk.f32.vlgmr.msra.gmra.mxu0 %vm310_vm4, %v3380_v61  ;;  %3816 = vmatmul.mubr.msk.f32.vlgmr.msra.gmra.mxu1 %vm310_vm4, %v3383_v62  ;;  %v1384_v61 = vpop.permute.xlu0 %1383 }
 0x435   :  { %3818 = vmatprep.subr.msk.mxu0 %vm60_vm0, %v4149_v4  ;;  %3820 = vmatprep.mubr.msk.f32.mxu0 %vm47_vm2, %v3390_v63 }
 0x436   :  { %3819 = vmatpush3.msk.msra.mxu0 %vm60_vm0, %v4149_v4  ;;  %3828 = vmatprep.mubr.msk.f32.mxu1 %vm149_vm3, %v3386_v1 }
 0x438   :  { %3821 = vmatmul.mubr.msk.f32.vlgmr.msra.gmra.mxu0 %vm47_vm2, %v3391_v0 }
 0x439   :  { %3823 = vmatprep.mubr.msk.f32.mxu0 %vm47_vm2, %v3392_v3  ;;  %v1379_v3 = vpop.permute.xlu1 %1378 }
 0x43c   :  { %3824 = vmatmul.mubr.msk.f32.gmra.mxu0 %vm47_vm2, %v3393_v5 }
 0x43d   :  { %3842 = vmatprep.mubr.msk.f32.mxu0 %vm310_vm4, %v3408_v26 }
 0x4f4   :  { %v1027_v8 = vpop.f32.mrf.mxu0  ;;  %v1110_v9 = vpop.f32.mrf.mxu1 }
 0x4f5   :  { %v1028_v10 = vadd.f32 %v1027_v8, %v956_v7  ;;  %v1111_v17 = vadd.f32 %v1110_v9, %v1039_v16  ;;  %v3426_v16 = vld [vmem:[%s4813_s1 + $0x60] sm:$0xff] }
 0x4f6   :  { %v3806_v11 = vpop.f32.mrf.mxu0  ;;  %v3817_v13 = vpop.f32.mrf.mxu1 }
 0x4f7   :  { %4036 = vtanh.f32 %v1028_v10  ;;  %v1121_v21 = vrot.slane %v1111_v17, 6  ;;  %v3420_v10 = vld [vmem:[%s4818_s6 + $0x4] sm:$0x3]  ;;  %v3432_v17 = vld [vmem:[%s4814_s2 + $0x70] sm:$0xff] }
 0x4f8   :  { %v3822_v27 = vpop.f32.mrf.mxu0  ;;  %v3423_v11 = vld [vmem:[%s4819_s7 + $0x4] sm:$0x3] }
 0x4f9   :  { %v3430_v13 = vld [vmem:[%s4814_s2 + $0x60] sm:$0xff] }
 0x4fa   :  { %v1213_v28 = vpop.f32.mrf.mxu0 }
 0x4fc   :  { %v3825_v31 = vpop.f32.mrf.mxu0 }
 0x4fe   :  { %v1223_v37 = vpop.f32.mrf.mxu0 }
 0x504   :  { %v4506_v14 = vpop.eup %4036 }
 0x505   :  { %v1114_v15 = vmul.f32 1.442695, %v4506_v14 }
 0x507   :  { %4038 = vpow2.f32 %v1114_v15  ;;  %v3431_v15 = vld [vmem:[%s4814_s2 + $0x68] sm:$0xff] }
 0x514   :  { %v4039_v18 = vpop.eup %4038 }
 0x515   :  { %v1117_v19 = vrot.slane %v4039_v18, 6  ;;  %v3433_v18 = vld [vmem:[%s4814_s2 + $0x78] sm:$0xff] }
 0x517   :  { %v1119_v20 = vmul.f32 %v1117_v19, %v4146_v2  ;;  %v3389_v2 = vld [vmem:[%s4813_s1 + $0x58] sm:$0xff]  ;;  %v1504_v19 = vpop.permute.xlu0 %1503 }
 0x519   :  { %v4510_v22 = vadd.f32 %v1121_v21, %v1119_v20 }
 0x51b   :  { %v1233_v23 = vrot.slane %v4510_v22, 2 }
 0x51d   :  { %3826 = vmatprep.subr.msk.mxu1 %vm162_vm1, %v1233_v23 }
 0x51e   :  { %3827 = vmatpush3.msk.msra.mxu1 %vm162_vm1, %v1233_v23 }
 0x51f   :  { %3829 = vmatmul.mubr.msk.f32.vlgmr.msra.gmra.mxu1 %vm149_vm3, %v3387_v24  ;;  %3848 = vmatprep.subr.mxu1 %v4079_v38 }
 0x520   :  { %3831 = vmatprep.mubr.msk.f32.mxu1 %vm149_vm3, %v3388_v25 }
 0x523   :  { %3832 = vmatmul.mubr.msk.f32.gmra.mxu1 %vm149_vm3, %v3389_v2  ;;  %v1124_v2 = vadd.f32 %v4506_v14, %v4424_v6  ;;  %v3428_v6 = vld [vmem:[%s4813_s1 + $0x70] sm:$0xff]  ;;  %v3448_v14 = vld [vmem:[%s4816_s4 + $0x60] sm:$0xff] }
 0x524   :  { %3856 = vmatprep.mubr.msk.f32.mxu1 %vm4080_vm5, %v4079_v38 }
 0x5df   :  { %v3830_v29 = vpop.f32.mrf.mxu1 }
 0x5e0   :  { %v1320_v35 = vadd.f32 %v3830_v29, %v3822_v27 }
 0x5e1   :  { %v1314_v32 = vpop.f32.mrf.mxu1 }
 0x5e2   :  { %v1315_v40 = vadd.f32 %v1314_v32, %v1213_v28  ;;  %v1359_v44 = vadd.f32 %v1346_v43, %v1320_v35 }
 0x5e3   :  { %v3833_v34 = vpop.f32.mrf.mxu1 }
 0x5e4   :  { %v1330_v36 = vadd.f32 %v3833_v34, %v3825_v31  ;;  %v1358_v48 = vadd.f32 %v1341_v47, %v1315_v40  ;;  %v1363_v50 = vmax.f32 %v1359_v44, 0.0  ;;  %v3427_v34 = vld [vmem:[%s4813_s1 + $0x68] sm:$0xff] }
 0x5e5   :  { %v1324_v39 = vpop.f32.mrf.mxu1 }
 0x5e6   :  { %v1361_v41 = vadd.f32 %v1356_v30, %v1330_v36  ;;  %v1325_v42 = vadd.f32 %v1324_v39, %v1223_v37  ;;  %v1362_v51 = vmax.f32 %v1358_v48, 0.0  ;;  %v1587_v30 = vpop.permute.xlu1 %1586  ;;  %v1897_v39 = vpop.permute.xlu0 %1896 }
 0x5e8   :  { %v1365_v45 = vmax.f32 %v1361_v41, 0.0  ;;  %v1360_v46 = vadd.f32 %v1351_v33, %v1325_v42 }
 0x5ea   :  { %v1364_v49 = vmax.f32 %v1360_v46, 0.0  ;;  %3834 = vmatprep.subr.mxu0 %v1365_v45  ;;  %v1892_v42 = vpop.permute.xlu1 %1891 }
 0x5eb   :  { %3835 = vmatpush3.msra.mxu0 %v1365_v45 }
 0x5ec   :  { %3836 = vmatprep.subr.mxu0 %v1364_v49 }
 0x5ed   :  { %3837 = vmatpush3.msra.mxu0 %v1364_v49 }
 0x5ee   :  { %3838 = vmatprep.subr.mxu0 %v1363_v50 }
 0x5ef   :  { %3839 = vmatpush3.msra.mxu0 %v1363_v50 }
 0x5f0   :  { %3840 = vmatprep.subr.mxu0 %v1362_v51 }
 0x5f1   :  { %3841 = vmatpush3.msra.mxu0 %v1362_v51  ;;  %v1887_v51 = vpop.permute.xlu0 %1886 }
 0x5f2   :  { %3843 = vmatmul.mubr.msk.f32.vlgmr.msra.gmra.mxu0 %vm310_vm4, %v3409_v52  ;;  %3859 = vmatprep.subr.mxu0 %v4079_v38 }
 0x5f3   :  { %3845 = vmatprep.mubr.msk.f32.mxu0 %vm310_vm4, %v3410_v53 }
 0x5f6   :  { %3846 = vmatmul.mubr.msk.f32.gmra.mxu0 %vm310_vm4, %v3411_v54 }
 0x5f7   :  { %3867 = vmatprep.mubr.msk.f32.mxu0 %vm4080_vm5, %v4079_v38 }
 0x6b2   :  { %v3844_v56 = vpop.f32.mrf.mxu0 }
 0x6b3   :  { %v1480_v63 = vadd.f32 %v3844_v56, %v1384_v61  ;;  %v3450_v61 = vld [vmem:[%s4816_s4 + $0x70] sm:$0xff] }
 0x6b4   :  { %v1474_v58 = vpop.f32.mrf.mxu0 }
 0x6b5   :  { %v1475_v5 = vadd.f32 %v1474_v58, %v1379_v3  ;;  %v1494_v8 = vmax.f32 %v1480_v63, 0.0  ;;  %v1935_v63 = vpop.permute.xlu0 %1934 }
 0x6b6   :  { %v3847_v59 = vpop.f32.mrf.mxu0 }
 0x6b7   :  { %v1490_v60 = vadd.f32 %v3847_v59, %v1394_v55  ;;  %v1493_v9 = vmax.f32 %v1475_v5, 0.0  ;;  %v1882_v55 = vpop.permute.xlu1 %1881 }
 0x6b8   :  { %v1484_v62 = vpop.f32.mrf.mxu0 }
 0x6b9   :  { %v1496_v0 = vmax.f32 %v1490_v60, 0.0  ;;  %v1485_v1 = vadd.f32 %v1484_v62, %v1389_v57  ;;  %v3449_v60 = vld [vmem:[%s4816_s4 + $0x68] sm:$0xff]  ;;  %v3451_v62 = vld [vmem:[%s4816_s4 + $0x78] sm:$0xff] }
 0x6bb   :  { %v1495_v7 = vmax.f32 %v1485_v1, 0.0  ;;  %3849 = vmatpush3.msra.mxu1 %v1496_v0  ;;  %3860 = vmatpush3.msra.mxu0 %v1496_v0  ;;  %v1930_v1 = vpop.permute.xlu1 %1929 }
 0x6bc   :  { %3850 = vmatprep.subr.mxu1 %v4079_v38  ;;  %3861 = vmatprep.subr.mxu0 %v4079_v38 }
 0x6bd   :  { %3851 = vmatpush3.msra.mxu1 %v1495_v7  ;;  %3862 = vmatpush3.msra.mxu0 %v1495_v7 }
 0x6be   :  { %3852 = vmatprep.subr.mxu1 %v4079_v38  ;;  %3863 = vmatprep.subr.mxu0 %v4079_v38 }
 0x6bf   :  { %3853 = vmatpush3.msra.mxu1 %v1494_v8  ;;  %3864 = vmatpush3.msra.mxu0 %v1494_v8  ;;  %v1925_v8 = vpop.permute.xlu0 %1924 }
 0x6c0   :  { %3854 = vmatprep.subr.mxu1 %v4079_v38  ;;  %3865 = vmatprep.subr.mxu0 %v4079_v38 }
 0x6c1   :  { %3855 = vmatpush3.msra.mxu1 %v1493_v9  ;;  %3866 = vmatpush3.msra.mxu0 %v1493_v9 }
 0x6c2   :  { %3857 = vmatmul.mubr.msk.f32.vlgmr.msra.gmra.mxu1 %vm310_vm4, %v3420_v10  ;;  %3868 = vmatmul.mubr.msk.f32.vlgmr.msra.gmra.mxu0 %vm310_vm4, %v3423_v11 }
 0x6c3   :  { %3870 = vmatprep.subr.msk.mxu1 %vm60_vm0, %v4149_v4  ;;  %3872 = vmatprep.mubr.msk.f32.mxu1 %vm47_vm2, %v3430_v13 }
 0x6c4   :  { %3871 = vmatpush3.msk.msra.mxu1 %vm60_vm0, %v4149_v4  ;;  %3880 = vmatprep.mubr.msk.f32.mxu0 %vm149_vm3, %v3426_v16 }
 0x6c6   :  { %3873 = vmatmul.mubr.msk.f32.vlgmr.msra.gmra.mxu1 %vm47_vm2, %v3431_v15  ;;  %v1920_v15 = vpop.permute.xlu1 %1919 }
 0x6c7   :  { %3875 = vmatprep.mubr.msk.f32.mxu1 %vm47_vm2, %v3432_v17 }
 0x6ca   :  { %3876 = vmatmul.mubr.msk.f32.gmra.mxu1 %vm47_vm2, %v3433_v18 }
 0x6cb   :  { %3894 = vmatprep.mubr.msk.f32.mxu1 %vm310_vm4, %v3448_v14 }
 0x782   :  { %v1575_v20 = vpop.f32.mrf.mxu1  ;;  %v1658_v21 = vpop.f32.mrf.mxu0 }
 0x783   :  { %v1576_v23 = vadd.f32 %v1575_v20, %v1504_v19  ;;  %v1659_v31 = vadd.f32 %v1658_v21, %v1587_v30  ;;  %v3460_v20 = vld [vmem:[%s4818_s6 + $0x6] sm:$0x3] }
 0x784   :  { %v3858_v24 = vpop.f32.mrf.mxu1  ;;  %v3869_v25 = vpop.f32.mrf.mxu0  ;;  %v3463_v21 = vld [vmem:[%s4819_s7 + $0x6] sm:$0x3] }
 0x785   :  { %4040 = vtanh.f32 %v1576_v23  ;;  %v3470_v23 = vld [vmem:[%s4814_s2 + $0x80] sm:$0xff]  ;;  %v3471_v24 = vld [vmem:[%s4814_s2 + $0x88] sm:$0xff] }
 0x786   :  { %v3874_v35 = vpop.f32.mrf.mxu1  ;;  %v3466_v25 = vld [vmem:[%s4813_s1 + $0x80] sm:$0xff] }
 0x788   :  { %v1755_v36 = vpop.f32.mrf.mxu1 }
 0x78a   :  { %v3877_v40 = vpop.f32.mrf.mxu1 }
 0x78c   :  { %v1765_v46 = vpop.f32.mrf.mxu1 }
 0x792   :  { %v4041_v26 = vpop.eup %4040 }
 0x793   :  { %v1662_v27 = vmul.f32 1.442695, %v4041_v26  ;;  %v4589_v28 = vadd.f32 %v4041_v26, %v1124_v2  ;;  %v3472_v2 = vld [vmem:[%s4814_s2 + $0x90] sm:$0xff]  ;;  %v3473_v26 = vld [vmem:[%s4814_s2 + $0x98] sm:$0xff] }
 0x795   :  { %4042 = vpow2.f32 %v1662_v27  ;;  %v2045_v27 = vpop.permute.xlu0 %2044 }
 0x7a2   :  { %v4043_v29 = vpop.eup %4042 }
 0x7a3   :  { %v1664_v32 = vmul.f32 %v4043_v29, %v4428_v12  ;;  %v3429_v12 = vld [vmem:[%s4813_s1 + $0x78] sm:$0xff] }
 0x7a5   :  { %v4592_v33 = vadd.f32 %v1664_v32, %v1659_v31 }
 0x7a7   :  { %3878 = vmatprep.subr.msk.mxu0 %vm162_vm1, %v4592_v33 }
 0x7a8   :  { %3879 = vmatpush3.msk.msra.mxu0 %vm162_vm1, %v4592_v33 }
 0x7a9   :  { %3881 = vmatmul.mubr.msk.f32.vlgmr.msra.gmra.mxu0 %vm149_vm3, %v3427_v34  ;;  %3900 = vmatprep.subr.mxu0 %v4079_v38 }
 0x7aa   :  { %3883 = vmatprep.mubr.msk.f32.mxu0 %vm149_vm3, %v3428_v6 }
 0x7ad   :  { %3884 = vmatmul.mubr.msk.f32.gmra.mxu0 %vm149_vm3, %v3429_v12 }
 0x7ae   :  { %3908 = vmatprep.mubr.msk.f32.mxu0 %vm4080_vm5, %v4079_v38 }
 0x869   :  { %v3882_v37 = vpop.f32.mrf.mxu0 }
 0x86a   :  { %v1861_v44 = vadd.f32 %v3882_v37, %v3874_v35  ;;  %v2128_v35 = vpop.permute.xlu1 %2127 }
 0x86b   :  { %v1855_v41 = vpop.f32.mrf.mxu0 }
 0x86c   :  { %v1856_v48 = vadd.f32 %v1855_v41, %v1755_v36  ;;  %v1900_v52 = vadd.f32 %v1887_v51, %v1861_v44  ;;  %v3467_v44 = vld [vmem:[%s4813_s1 + $0x88] sm:$0xff] }
 0x86d   :  { %v3885_v43 = vpop.f32.mrf.mxu0 }
 0x86e   :  { %v1871_v45 = vadd.f32 %v3885_v43, %v3877_v40  ;;  %v1899_v56 = vadd.f32 %v1882_v55, %v1856_v48  ;;  %v1904_v58 = vmax.f32 %v1900_v52, 0.0  ;;  %v2440_v52 = vpop.permute.xlu1 %2439 }
 0x86f   :  { %v1865_v47 = vpop.f32.mrf.mxu0 }
 0x870   :  { %v1902_v49 = vadd.f32 %v1897_v39, %v1871_v45  ;;  %v1866_v50 = vadd.f32 %v1865_v47, %v1765_v46  ;;  %v1903_v59 = vmax.f32 %v1899_v56, 0.0  ;;  %v3488_v45 = vld [vmem:[%s4816_s4 + $0x80] sm:$0xff] }
 0x872   :  { %v1906_v53 = vmax.f32 %v1902_v49, 0.0  ;;  %v1901_v54 = vadd.f32 %v1892_v42, %v1866_v50  ;;  %v2445_v49 = vpop.permute.xlu0 %2444 }
 0x874   :  { %v1905_v57 = vmax.f32 %v1901_v54, 0.0  ;;  %3886 = vmatprep.subr.mxu1 %v1906_v53 }
 0x875   :  { %3887 = vmatpush3.msra.mxu1 %v1906_v53 }
 0x876   :  { %3888 = vmatprep.subr.mxu1 %v1905_v57 }
 0x877   :  { %3889 = vmatpush3.msra.mxu1 %v1905_v57 }
 0x878   :  { %3890 = vmatprep.subr.mxu1 %v1904_v58 }
 0x879   :  { %3891 = vmatpush3.msra.mxu1 %v1904_v58 }
 0x87a   :  { %3892 = vmatprep.subr.mxu1 %v1903_v59 }
 0x87b   :  { %3893 = vmatpush3.msra.mxu1 %v1903_v59 }
 0x87c   :  { %3895 = vmatmul.mubr.msk.f32.vlgmr.msra.gmra.mxu1 %vm310_vm4, %v3449_v60  ;;  %3911 = vmatprep.subr.mxu1 %v4079_v38 }
 0x87d   :  { %3897 = vmatprep.mubr.msk.f32.mxu1 %vm310_vm4, %v3450_v61  ;;  %v2435_v61 = vpop.permute.xlu0 %2434 }
 0x880   :  { %3898 = vmatmul.mubr.msk.f32.gmra.mxu1 %vm310_vm4, %v3451_v62 }
 0x881   :  { %3919 = vmatprep.mubr.msk.f32.mxu1 %vm4080_vm5, %v4079_v38 }
 0x93c   :  { %v3896_v0 = vpop.f32.mrf.mxu1 }
 0x93d   :  { %v2021_v10 = vadd.f32 %v3896_v0, %v1925_v8 }
 0x93e   :  { %v2015_v3 = vpop.f32.mrf.mxu1 }
 0x93f   :  { %v2016_v16 = vadd.f32 %v2015_v3, %v1920_v15  ;;  %v2035_v18 = vmax.f32 %v2021_v10, 0.0  ;;  %v3490_v10 = vld [vmem:[%s4816_s4 + $0x90] sm:$0xff] }
 0x940   :  { %v3899_v5 = vpop.f32.mrf.mxu1 }
 0x941   :  { %v2031_v7 = vadd.f32 %v3899_v5, %v1935_v63  ;;  %v2034_v19 = vmax.f32 %v2016_v16, 0.0 }
 0x942   :  { %v2025_v9 = vpop.f32.mrf.mxu1 }
 0x943   :  { %v2037_v11 = vmax.f32 %v2031_v7, 0.0  ;;  %v2026_v13 = vadd.f32 %v2025_v9, %v1930_v1  ;;  %v2430_v1 = vpop.permute.xlu1 %2429  ;;  %v3489_v9 = vld [vmem:[%s4816_s4 + $0x88] sm:$0xff] }
 0x945   :  { %v2036_v17 = vmax.f32 %v2026_v13, 0.0  ;;  %3901 = vmatpush3.msra.mxu0 %v2037_v11  ;;  %3912 = vmatpush3.msra.mxu1 %v2037_v11  ;;  %v3491_v11 = vld [vmem:[%s4816_s4 + $0x98] sm:$0xff]  ;;  %v2483_v13 = vpop.permute.xlu0 %2482 }
 0x946   :  { %3902 = vmatprep.subr.mxu0 %v4079_v38  ;;  %3913 = vmatprep.subr.mxu1 %v4079_v38 }
 0x947   :  { %3903 = vmatpush3.msra.mxu0 %v2036_v17  ;;  %3914 = vmatpush3.msra.mxu1 %v2036_v17  ;;  %v2478_v16 = vpop.permute.xlu1 %2477 }
 0x948   :  { %3904 = vmatprep.subr.mxu0 %v4079_v38  ;;  %3915 = vmatprep.subr.mxu1 %v4079_v38 }
 0x949   :  { %3905 = vmatpush3.msra.mxu0 %v2035_v18  ;;  %3916 = vmatpush3.msra.mxu1 %v2035_v18 }
 0x94a   :  { %3906 = vmatprep.subr.mxu0 %v4079_v38  ;;  %3917 = vmatprep.subr.mxu1 %v4079_v38 }
 0x94b   :  { %3907 = vmatpush3.msra.mxu0 %v2034_v19  ;;  %3918 = vmatpush3.msra.mxu1 %v2034_v19 }
 0x94c   :  { %3909 = vmatmul.mubr.msk.f32.vlgmr.msra.gmra.mxu0 %vm310_vm4, %v3460_v20  ;;  %3920 = vmatmul.mubr.msk.f32.vlgmr.msra.gmra.mxu1 %vm310_vm4, %v3463_v21  ;;  %v2473_v20 = vpop.permute.xlu0 %2472 }
 0x94d   :  { %3922 = vmatprep.subr.msk.mxu0 %vm60_vm0, %v4149_v4  ;;  %3924 = vmatprep.mubr.msk.f32.mxu0 %vm47_vm2, %v3470_v23 }
 0x94e   :  { %3923 = vmatpush3.msk.msra.mxu0 %vm60_vm0, %v4149_v4  ;;  %3932 = vmatprep.mubr.msk.f32.mxu1 %vm149_vm3, %v3466_v25 }
 0x950   :  { %3925 = vmatmul.mubr.msk.f32.vlgmr.msra.gmra.mxu0 %vm47_vm2, %v3471_v24 }
 0x951   :  { %3927 = vmatprep.mubr.msk.f32.mxu0 %vm47_vm2, %v3472_v2  ;;  %v2468_v2 = vpop.permute.xlu1 %2467 }
 0x954   :  { %3928 = vmatmul.mubr.msk.f32.gmra.mxu0 %vm47_vm2, %v3473_v26 }
 0x955   :  { %3946 = vmatprep.mubr.msk.f32.mxu0 %vm310_vm4, %v3488_v45 }
 0xa0c   :  { %v2116_v29 = vpop.f32.mrf.mxu0  ;;  %v2199_v30 = vpop.f32.mrf.mxu1 }
 0xa0d   :  { %v2117_v31 = vadd.f32 %v2116_v29, %v2045_v27  ;;  %v2200_v36 = vadd.f32 %v2199_v30, %v2128_v35  ;;  %v3513_v35 = vld [vmem:[%s4814_s2 + $0xb8] sm:$0xff] }
 0xa0e   :  { %v3910_v32 = vpop.f32.mrf.mxu0  ;;  %v3921_v34 = vpop.f32.mrf.mxu1 }
 0xa0f   :  { %4044 = vtanh.f32 %v2117_v31  ;;  %v2210_v41 = vrot.slane %v2200_v36, 6  ;;  %v3500_v31 = vld [vmem:[%s4818_s6 + $0x8] sm:$0x3]  ;;  %v3510_v34 = vld [vmem:[%s4814_s2 + $0xa0] sm:$0xff]  ;;  %v2593_v36 = vpop.permute.xlu0 %2592 }
 0xa10   :  { %v3926_v46 = vpop.f32.mrf.mxu0  ;;  %v3503_v32 = vld [vmem:[%s4819_s7 + $0x8] sm:$0x3] }
 0xa12   :  { %v2302_v47 = vpop.f32.mrf.mxu0 }
 0xa14   :  { %v3929_v50 = vpop.f32.mrf.mxu0 }
 0xa16   :  { %v2312_v56 = vpop.f32.mrf.mxu0 }
 0xa1c   :  { %v4045_v6 = vpop.eup %4044 }
 0xa1d   :  { %v2203_v12 = vmul.f32 1.442695, %v4045_v6  ;;  %v4671_v14 = vadd.f32 %v4045_v6, %v4589_v28  ;;  %v3468_v28 = vld [vmem:[%s4813_s1 + $0x90] sm:$0xff]  ;;  %v3511_v6 = vld [vmem:[%s4814_s2 + $0xa8] sm:$0xff] }
 0xa1f   :  { %4046 = vpow2.f32 %v2203_v12  ;;  %v3506_v12 = vld [vmem:[%s4813_s1 + $0xa0] sm:$0xff] }
 0xa2c   :  { %v4047_v37 = vpop.eup %4046 }
 0xa2d   :  { %v2206_v39 = vrot.slane %v4047_v37, 6 }
 0xa2f   :  { %v2208_v40 = vmul.f32 %v2206_v39, %v4510_v22  ;;  %v3469_v22 = vld [vmem:[%s4813_s1 + $0x98] sm:$0xff] }
 0xa31   :  { %v4674_v42 = vadd.f32 %v2210_v41, %v2208_v40 }
 0xa33   :  { %v2322_v43 = vrot.slane %v4674_v42, 2 }
 0xa35   :  { %3930 = vmatprep.subr.msk.mxu1 %vm162_vm1, %v2322_v43 }
 0xa36   :  { %3931 = vmatpush3.msk.msra.mxu1 %vm162_vm1, %v2322_v43 }
 0xa37   :  { %3933 = vmatmul.mubr.msk.f32.vlgmr.msra.gmra.mxu1 %vm149_vm3, %v3467_v44  ;;  %3952 = vmatprep.subr.mxu1 %v4079_v38 }
 0xa38   :  { %3935 = vmatprep.mubr.msk.f32.mxu1 %vm149_vm3, %v3468_v28 }
 0xa3b   :  { %3936 = vmatmul.mubr.msk.f32.gmra.mxu1 %vm149_vm3, %v3469_v22 }
 0xa3c   :  { %3960 = vmatprep.mubr.msk.f32.mxu1 %vm4080_vm5, %v4079_v38 }
 0xaf7   :  { %v3934_v48 = vpop.f32.mrf.mxu1 }
 0xaf8   :  { %v2409_v54 = vadd.f32 %v3934_v48, %v3926_v46  ;;  %v2676_v46 = vpop.permute.xlu1 %2675 }
 0xaf9   :  { %v2403_v51 = vpop.f32.mrf.mxu1 }
 0xafa   :  { %v2404_v58 = vadd.f32 %v2403_v51, %v2302_v47  ;;  %v2448_v62 = vadd.f32 %v2435_v61, %v2409_v54  ;;  %v3508_v51 = vld [vmem:[%s4813_s1 + $0xb0] sm:$0xff] }
 0xafb   :  { %v3937_v53 = vpop.f32.mrf.mxu1 }
 0xafc   :  { %v2419_v55 = vadd.f32 %v3937_v53, %v3929_v50  ;;  %v2447_v3 = vadd.f32 %v2430_v1, %v2404_v58  ;;  %v2452_v7 = vmax.f32 %v2448_v62, 0.0  ;;  %v3507_v50 = vld [vmem:[%s4813_s1 + $0xa8] sm:$0xff]  ;;  %v2981_v58 = vpop.permute.xlu1 %2980 }
 0xafd   :  { %v2413_v57 = vpop.f32.mrf.mxu1 }
 0xafe   :  { %v2450_v59 = vadd.f32 %v2445_v49, %v2419_v55  ;;  %v2414_v60 = vadd.f32 %v2413_v57, %v2312_v56  ;;  %v2451_v8 = vmax.f32 %v2447_v3, 0.0  ;;  %v2986_v55 = vpop.permute.xlu0 %2985 }
 0xb00   :  { %v2454_v63 = vmax.f32 %v2450_v59, 0.0  ;;  %v2449_v0 = vadd.f32 %v2440_v52, %v2414_v60 }
 0xb02   :  { %v2453_v5 = vmax.f32 %v2449_v0, 0.0  ;;  %3938 = vmatprep.subr.mxu0 %v2454_v63 }
 0xb03   :  { %3939 = vmatpush3.msra.mxu0 %v2454_v63 }
 0xb04   :  { %3940 = vmatprep.subr.mxu0 %v2453_v5 }
 0xb05   :  { %3941 = vmatpush3.msra.mxu0 %v2453_v5  ;;  %v2976_v5 = vpop.permute.xlu0 %2975 }
 0xb06   :  { %3942 = vmatprep.subr.mxu0 %v2452_v7 }
 0xb07   :  { %3943 = vmatpush3.msra.mxu0 %v2452_v7 }
 0xb08   :  { %3944 = vmatprep.subr.mxu0 %v2451_v8 }
 0xb09   :  { %3945 = vmatpush3.msra.mxu0 %v2451_v8 }
 0xb0a   :  { %3947 = vmatmul.mubr.msk.f32.vlgmr.msra.gmra.mxu0 %vm310_vm4, %v3489_v9  ;;  %3963 = vmatprep.subr.mxu0 %v4079_v38 }
 0xb0b   :  { %3949 = vmatprep.mubr.msk.f32.mxu0 %vm310_vm4, %v3490_v10  ;;  %v2971_v10 = vpop.permute.xlu1 %2970 }
 0xb0e   :  { %3950 = vmatmul.mubr.msk.f32.gmra.mxu0 %vm310_vm4, %v3491_v11 }
 0xb0f   :  { %3971 = vmatprep.mubr.msk.f32.mxu0 %vm4080_vm5, %v4079_v38 }
 0xbca   :  { %v3948_v15 = vpop.f32.mrf.mxu0 }
 0xbcb   :  { %v2569_v23 = vadd.f32 %v3948_v15, %v2473_v20  ;;  %v3024_v20 = vpop.permute.xlu0 %3023 }
 0xbcc   :  { %v2563_v17 = vpop.f32.mrf.mxu0 }
 0xbcd   :  { %v2564_v26 = vadd.f32 %v2563_v17, %v2468_v2  ;;  %v2583_v29 = vmax.f32 %v2569_v23, 0.0  ;;  %v3529_v17 = vld [vmem:[%s4816_s4 + $0xa8] sm:$0xff]  ;;  %v3019_v23 = vpop.permute.xlu1 %3018 }
 0xbce   :  { %v3951_v18 = vpop.f32.mrf.mxu0 }
 0xbcf   :  { %v2579_v19 = vadd.f32 %v3951_v18, %v2483_v13  ;;  %v2582_v30 = vmax.f32 %v2564_v26, 0.0  ;;  %v3530_v18 = vld [vmem:[%s4816_s4 + $0xb0] sm:$0xff]  ;;  %v3014_v26 = vpop.permute.xlu0 %3013 }
 0xbd0   :  { %v2573_v21 = vpop.f32.mrf.mxu0 }
 0xbd1   :  { %v2585_v24 = vmax.f32 %v2579_v19, 0.0  ;;  %v2574_v25 = vadd.f32 %v2573_v21, %v2478_v16  ;;  %v3531_v19 = vld [vmem:[%s4816_s4 + $0xb8] sm:$0xff] }
 0xbd3   :  { %v2584_v27 = vmax.f32 %v2574_v25, 0.0  ;;  %3953 = vmatpush3.msra.mxu1 %v2585_v24  ;;  %3964 = vmatpush3.msra.mxu0 %v2585_v24 }
 0xbd4   :  { %3954 = vmatprep.subr.mxu1 %v4079_v38  ;;  %3965 = vmatprep.subr.mxu0 %v4079_v38 }
 0xbd5   :  { %3955 = vmatpush3.msra.mxu1 %v2584_v27  ;;  %3966 = vmatpush3.msra.mxu0 %v2584_v27 }
 0xbd6   :  { %3956 = vmatprep.subr.mxu1 %v4079_v38  ;;  %3967 = vmatprep.subr.mxu0 %v4079_v38 }
 0xbd7   :  { %3957 = vmatpush3.msra.mxu1 %v2583_v29  ;;  %3968 = vmatpush3.msra.mxu0 %v2583_v29 }
 0xbd8   :  { %3958 = vmatprep.subr.mxu1 %v4079_v38  ;;  %3969 = vmatprep.subr.mxu0 %v4079_v38 }
 0xbd9   :  { %3959 = vmatpush3.msra.mxu1 %v2582_v30  ;;  %3970 = vmatpush3.msra.mxu0 %v2582_v30 }
 0xbda   :  { %3961 = vmatmul.mubr.msk.f32.vlgmr.msra.gmra.mxu1 %vm310_vm4, %v3500_v31  ;;  %3972 = vmatmul.mubr.msk.f32.vlgmr.msra.gmra.mxu0 %vm310_vm4, %v3503_v32  ;;  %v3009_v32 = vpop.permute.xlu1 %3008 }
 0xbdb   :  { %3974 = vmatprep.subr.msk.mxu1 %vm60_vm0, %v4149_v4  ;;  %3976 = vmatprep.mubr.msk.f32.mxu1 %vm47_vm2, %v3510_v34 }
 0xbdc   :  { %3975 = vmatpush3.msk.msra.mxu1 %vm60_vm0, %v4149_v4  ;;  %3984 = vmatprep.mubr.msk.f32.mxu0 %vm149_vm3, %v3506_v12  ;;  %v3512_v4 = vld [vmem:[%s4814_s2 + $0xb0] sm:$0xff] }
 0xbde   :  { %3977 = vmatmul.mubr.msk.f32.vlgmr.msra.gmra.mxu1 %vm47_vm2, %v3511_v6 }
 0xbdf   :  { %3979 = vmatprep.mubr.msk.f32.mxu1 %vm47_vm2, %v3512_v4 }
 0xbe2   :  { %3980 = vmatmul.mubr.msk.f32.gmra.mxu1 %vm47_vm2, %v3513_v35  ;;  %v3540_v35 = vld [vmem:[%s4818_s6 + $0xa] sm:$0x3]  ;;  %s4081_s6 = smov [#allocation2]  }
 0xc9a   :  { %v2664_v37 = vpop.f32.mrf.mxu1  ;;  %v2747_v39 = vpop.f32.mrf.mxu0 }
 0xc9b   :  { %v2665_v40 = vadd.f32 %v2664_v37, %v2593_v36  ;;  %v2748_v47 = vadd.f32 %v2747_v39, %v2676_v46  ;;  %v3543_v36 = vld [vmem:[%s4819_s7 + $0xa] sm:$0x3]  ;;  %v3134_v37 = vpop.permute.xlu0 %3133  ;;  %s3322_s7 = sshll.u32 %s4081_s6, 4  ;;  %s3323_s7 = int_to_ptr.vmem [resolvable:$true] %s3322_s7 }
 0xc9c   :  { %v3962_v41 = vpop.f32.mrf.mxu1  ;;  %v3973_v43 = vpop.f32.mrf.mxu0  ;;  %s4056_s22 = scalar_lea.vmem %s3323_s7, 128  ;;  %p4061_p1 = scmp.lt.s32.totalorder %s3323_s7, %s3323_s7 }
 0xc9d   :  { %4048 = vtanh.f32 %v2665_v40  ;;  %p4057_p0 = scmp.ne.s32.totalorder %s3323_s7, %s4056_s22  ;;  %p4062_p2 = scmp.lt.s32.totalorder %s4056_s22, %s4056_s22 }
 0xc9e   :  { %v3978_v52 = vpop.f32.mrf.mxu1 }
 0xc9f   :  { %p4063_p3 = por %p4062_p2, %p4061_p1 }
 0xca0   :  { %v2844_v53 = vpop.f32.mrf.mxu1 }
 0xca1   :  { %p4064_p4 = pnand %p4063_p3, %p4057_p0 }
 0xca2   :  { %v3981_v57 = vpop.f32.mrf.mxu1 }
 0xca4   :  { %v2854_v62 = vpop.f32.mrf.mxu1 }
 0xcaa   :  { %v4049_v44 = vpop.eup %4048 }
 0xcab   :  { %v2751_v28 = vmul.f32 1.442695, %v4049_v44  ;;  %v4752_v22 = vadd.f32 %v4049_v44, %v4671_v14  ;;  %v3528_v14 = vld [vmem:[%s4816_s4 + $0xa0] sm:$0xff] }
 0xcac   :  { %3998 = vmatprep.mubr.msk.f32.mxu1 %vm310_vm4, %v3528_v14 }
 0xcad   :  { %4050 = vpow2.f32 %v2751_v28 }
 0xcba   :  { %v4051_v45 = vpop.eup %4050 }
 0xcbb   :  { %v2753_v48 = vmul.f32 %v4051_v45, %v4592_v33  ;;  %v3509_v33 = vld [vmem:[%s4813_s1 + $0xb8] sm:$0xff] }
 0xcbd   :  { %v2754_v49 = vadd.f32 %v2753_v48, %v2748_v47 }
 0xcbf   :  { %3982 = vmatprep.subr.msk.mxu0 %vm162_vm1, %v2754_v49  ;;  %3304 = vst.msk [vmem:[#allocation2] sm:$0x3] %vm3303_vm6, %v2754_v49 }
 0xcc0   :  { %3983 = vmatpush3.msk.msra.mxu0 %vm162_vm1, %v2754_v49 }
 0xcc1   :  { %3985 = vmatmul.mubr.msk.f32.vlgmr.msra.gmra.mxu0 %vm149_vm3, %v3507_v50  ;;  %4004 = vmatprep.subr.mxu0 %v4079_v38 }
 0xcc2   :  { %3987 = vmatprep.mubr.msk.f32.mxu0 %vm149_vm3, %v3508_v51 }
 0xcc5   :  { %3988 = vmatmul.mubr.msk.f32.gmra.mxu0 %vm149_vm3, %v3509_v33  ;;  %v3217_v33 = vpop.permute.xlu1 %3216 }
 0xcc6   :  { %4012 = vmatprep.mubr.msk.f32.mxu0 %vm4080_vm5, %v4079_v38 }
 0xd81   :  { %v3986_v54 = vpop.f32.mrf.mxu0 }
 0xd82   :  { %v2950_v60 = vadd.f32 %v3986_v54, %v3978_v52 }
 0xd83   :  { %v2944_v56 = vpop.f32.mrf.mxu0 }
 0xd84   :  { %v2945_v0 = vadd.f32 %v2944_v56, %v2844_v53  ;;  %v2989_v7 = vadd.f32 %v2976_v5, %v2950_v60 }
 0xd85   :  { %v3989_v59 = vpop.f32.mrf.mxu0 }
 0xd86   :  { %v2960_v61 = vadd.f32 %v3989_v59, %v3981_v57  ;;  %v2988_v11 = vadd.f32 %v2971_v10, %v2945_v0  ;;  %v2993_v15 = vmax.f32 %v2989_v7, 0.0 }
 0xd87   :  { %v2954_v63 = vpop.f32.mrf.mxu0 }
 0xd88   :  { %v2991_v1 = vadd.f32 %v2986_v55, %v2960_v61  ;;  %v2955_v3 = vadd.f32 %v2954_v63, %v2854_v62  ;;  %v2992_v16 = vmax.f32 %v2988_v11, 0.0 }
 0xd8a   :  { %v2995_v8 = vmax.f32 %v2991_v1, 0.0  ;;  %v2990_v9 = vadd.f32 %v2981_v58, %v2955_v3 }
 0xd8c   :  { %v2994_v13 = vmax.f32 %v2990_v9, 0.0  ;;  %3990 = vmatprep.subr.mxu1 %v2995_v8 }
 0xd8d   :  { %3991 = vmatpush3.msra.mxu1 %v2995_v8 }
 0xd8e   :  { %3992 = vmatprep.subr.mxu1 %v2994_v13 }
 0xd8f   :  { %3993 = vmatpush3.msra.mxu1 %v2994_v13 }
 0xd90   :  { %3994 = vmatprep.subr.mxu1 %v2993_v15 }
 0xd91   :  { %3995 = vmatpush3.msra.mxu1 %v2993_v15 }
 0xd92   :  { %3996 = vmatprep.subr.mxu1 %v2992_v16 }
 0xd93   :  { %3997 = vmatpush3.msra.mxu1 %v2992_v16 }
 0xd94   :  { %3999 = vmatmul.mubr.msk.f32.vlgmr.msra.gmra.mxu1 %vm310_vm4, %v3529_v17  ;;  %4015 = vmatprep.subr.mxu1 %v4079_v38 }
 0xd95   :  { %4001 = vmatprep.mubr.msk.f32.mxu1 %vm310_vm4, %v3530_v18 }
 0xd98   :  { %4002 = vmatmul.mubr.msk.f32.gmra.mxu1 %vm310_vm4, %v3531_v19 }
 0xd99   :  { %4023 = vmatprep.mubr.msk.f32.mxu1 %vm4080_vm5, %v4079_v38 }
 0xe54   :  { %v4000_v21 = vpop.f32.mrf.mxu1 }
 0xe55   :  { %v3110_v29 = vadd.f32 %v4000_v21, %v3014_v26 }
 0xe56   :  { %v3104_v24 = vpop.f32.mrf.mxu1 }
 0xe57   :  { %v3105_v34 = vadd.f32 %v3104_v24, %v3009_v32  ;;  %v3124_v12 = vmax.f32 %v3110_v29, 0.0 }
 0xe58   :  { %v4003_v25 = vpop.f32.mrf.mxu1 }
 0xe59   :  { %v3120_v2 = vadd.f32 %v4003_v25, %v3024_v20  ;;  %v3123_v4 = vmax.f32 %v3105_v34, 0.0 }
 0xe5a   :  { %v3114_v27 = vpop.f32.mrf.mxu1 }
 0xe5b   :  { %v3126_v30 = vmax.f32 %v3120_v2, 0.0  ;;  %v3115_v31 = vadd.f32 %v3114_v27, %v3019_v23 }
 0xe5d   :  { %v3125_v6 = vmax.f32 %v3115_v31, 0.0  ;;  %4005 = vmatpush3.msra.mxu0 %v3126_v30  ;;  %4016 = vmatpush3.msra.mxu1 %v3126_v30 }
 0xe5e   :  { %4006 = vmatprep.subr.mxu0 %v4079_v38  ;;  %4017 = vmatprep.subr.mxu1 %v4079_v38 }
 0xe5f   :  { %4007 = vmatpush3.msra.mxu0 %v3125_v6  ;;  %4018 = vmatpush3.msra.mxu1 %v3125_v6 }
 0xe60   :  { %4008 = vmatprep.subr.mxu0 %v4079_v38  ;;  %4019 = vmatprep.subr.mxu1 %v4079_v38 }
 0xe61   :  { %4009 = vmatpush3.msra.mxu0 %v3124_v12  ;;  %4020 = vmatpush3.msra.mxu1 %v3124_v12 }
 0xe62   :  { %4010 = vmatprep.subr.mxu0 %v4079_v38  ;;  %4021 = vmatprep.subr.mxu1 %v4079_v38 }
 0xe63   :  { %4011 = vmatpush3.msra.mxu0 %v3123_v4  ;;  %4022 = vmatpush3.msra.mxu1 %v3123_v4 }
 0xe64   :  { %4013 = vmatmul.mubr.msk.f32.vlgmr.msra.gmra.mxu0 %vm310_vm4, %v3540_v35  ;;  %4024 = vmatmul.mubr.msk.f32.vlgmr.msra.gmra.mxu1 %vm310_vm4, %v3543_v36 }
 0xf24   :  { %v3205_v39 = vpop.f32.mrf.mxu0  ;;  %v3288_v40 = vpop.f32.mrf.mxu1 }
 0xf25   :  { %v3206_v41 = vadd.f32 %v3205_v39, %v3134_v37  ;;  %v3289_v52 = vadd.f32 %v3288_v40, %v3217_v33 }
 0xf26   :  { %v4014_v43 = vpop.f32.mrf.mxu0  ;;  %v4025_v44 = vpop.f32.mrf.mxu1 }
 0xf27   :  { %4052 = vtanh.f32 %v3206_v41 }
 0xf34   :  { %v4053_v28 = vpop.eup %4052 }
 0xf35   :  { %v3292_v45 = vmul.f32 1.442695, %v4053_v28  ;;  %v3302_v46 = vadd.f32 %v4053_v28, %v4752_v22  ;;  %v3299_v22 = vrot.slane %v3289_v52, 6 }
 0xf37   :  { %4054 = vpow2.f32 %v3292_v45  ;;  %v3307_v38 = vsel %vm3303_vm6, %v3302_v46, 0.0 }
 0xf38   :  { %v3308_v47 = vrot.slane %v3307_v38, 4 }
 0xf3a   :  { %v3309_v48 = vadd.f32 %v3308_v47, %v3307_v38 }
 0xf3c   :  { %v3310_v49 = vrot.slane %v3309_v48, 2 }
 0xf3e   :  { %v3311_v50 = vadd.f32 %v3310_v49, %v3309_v48 }
 0xf40   :  { %v3312_v51 = vrot.slane %v3311_v50, 1 }
 0xf42   :  { %v3313_v14 = vadd.f32 %v3312_v51, %v3311_v50 }
 0xf44   :  { %v4055_v53 = vpop.eup %4054  ;;  %3315 = vst.msk [vmem:[#allocation2 + $0x4] sm:$0x1] %vm3314_vm7, %v3313_v14 }
 0xf45   :  { %v3295_v54 = vrot.slane %v4055_v53, 6 }
 0xf47   :  { %v3297_v55 = vmul.f32 %v3295_v54, %v4674_v42 }
 0xf49   :  { %v3301_v56 = vadd.f32 %v3299_v22, %v3297_v55 }
 0xf4b   :  { %3306 = vst.msk [vmem:[#allocation2] sm:$0xc] %vm3305_vm8, %v3301_v56 }
 0xf4c   :  { %4067 = shalt.err (!%p4064_p4)
}
 0xf4d   :  { %3325 = dma.vmem_to_hbm [thread:$0]  %s3323_s7, 128, %s4822_s10, [#allocation3]  }
 0xf4e   :  { %4076 = dma.done.wait [#allocation3], 128  }
 0xf4f   :  { %4077 = vsyncadd [#allocation3], 4294967168 }
 0xf50   :  { %3329 = vsyncpa [#allocation3], 1 }

// kernel: tpu_custom_call.1
= control target key start
LH: loop header
LB: loop body
LE: loop exit
PB: predicated region body
PF: predicated region fallthrough
CT: control target
= control target key end

     0   :  { %vm60_vm0 = vcmask 1043456   ;;  %vm162_vm1 = vcmask 1041408   ;;  %v4078_v3 = vmov 0   ;;  %vm47_vm2 = vcmask 31744   ;;  %s4812_s0 = inlined_call_operand.vmem [shape: f32[8,8], index: 0, kind: input, shape index: {}]   ;;  %s4813_s1 = inlined_call_operand.vmem [shape: f32[6,32,2], index: 1, kind: input, shape index: {}]   ;;  %s4814_s2 = inlined_call_operand.vmem [shape: f32[6,32,4], index: 2, kind: input, shape index: {}]   ;;  %s4815_s3 = inlined_call_operand.vmem [shape: f32[6,32,1], index: 3, kind: input, shape index: {}]   ;;  %s4816_s4 = inlined_call_operand.vmem [shape: f32[6,32,32], index: 4, kind: input, shape index: {}]   ;;  %s4817_s5 = inlined_call_operand.vmem [shape: f32[6,32,1], index: 5, kind: input, shape index: {}]   ;;  %s4818_s6 = inlined_call_operand.vmem [shape: f32[6,2,32], index: 6, kind: input, shape index: {}]   ;;  %s4819_s7 = inlined_call_operand.vmem [shape: f32[6,2,32], index: 7, kind: input, shape index: {}]   ;;  %s4820_s8 = inlined_call_operand.vmem [shape: f32[6,2,1], index: 8, kind: input, shape index: {}]   ;;  %s4821_s9 = inlined_call_operand.vmem [shape: f32[6,2,1], index: 9, kind: input, shape index: {}]   ;;  %s4822_s10 = inlined_call_operand.hbm [shape: f32[5,8], index: 10, kind: output, shape index: {}]  }
   0x1   :  { %v253_v0 = vld [vmem:[%s4815_s3 + $0x18] sm:$0xff]  ;;  %v251_v1 = vld [vmem:[%s4815_s3 + $0x8] sm:$0xff]  ;;  %v4146_v2 = vld [vmem:[%s4812_s0] sm:$0xff]  ;;  %4031 = vset.pattern.permute.xlu1 %v4078_v3  ;;  %4030 = vset.pattern.permute.xlu0 %v4078_v3  ;;  %vm149_vm3 = vcmask 15360  }
   0x2   :  { %v4149_v4 = vrot.slane %v4146_v2, 4  ;;  %v148_v5 = vrot.slane %v4146_v2, 2  ;;  %v41_v6 = vld [vmem:[%s4814_s2] sm:$0xff]  ;;  %271 = vperm.xlu0 %4030, %v253_v0   ;;  %261 = vperm.xlu1 %4031, %v251_v1   ;;  %v42_v8 = vld [vmem:[%s4814_s2 + $0x8] sm:$0xff]  ;;  %v252_v10 = vld [vmem:[%s4815_s3 + $0x10] sm:$0xff] }
   0x3   :  { %v37_v7 = vld [vmem:[%s4813_s1] sm:$0xff]  ;;  %v38_v9 = vld [vmem:[%s4813_s1 + $0x8] sm:$0xff]  ;;  %3716 = vmatprep.mubr.msk.f32.mxu0 %vm47_vm2, %v41_v6  ;;  %v43_v12 = vld [vmem:[%s4814_s2 + $0x10] sm:$0xff] }
   0x4   :  { %3714 = vmatprep.subr.msk.mxu0 %vm60_vm0, %v4149_v4  ;;  %3722 = vmatprep.subr.msk.mxu1 %vm162_vm1, %v148_v5  ;;  %v250_v11 = vld [vmem:[%s4815_s3] sm:$0xff]  ;;  %v39_v13 = vld [vmem:[%s4813_s1 + $0x10] sm:$0xff]  ;;  %v44_v14 = vld [vmem:[%s4814_s2 + $0x18] sm:$0xff] }
   0x5   :  { %3715 = vmatpush3.msk.msra.mxu0 %vm60_vm0, %v4149_v4  ;;  %3723 = vmatpush3.msk.msra.mxu1 %vm162_vm1, %v148_v5  ;;  %v40_v15 = vld [vmem:[%s4813_s1 + $0x18] sm:$0xff]  ;;  %v288_v17 = vld [vmem:[%s4817_s5 + $0x10] sm:$0xff]  ;;  %v287_v18 = vld [vmem:[%s4817_s5 + $0x8] sm:$0xff] }
   0x6   :  { %3724 = vmatprep.mubr.msk.f32.mxu1 %vm149_vm3, %v37_v7  ;;  %3717 = vmatmul.mubr.msk.f32.vlgmr.msra.gmra.mxu0 %vm47_vm2, %v42_v8  ;;  %v289_v16 = vld [vmem:[%s4817_s5 + $0x18] sm:$0xff]  ;;  %v286_v19 = vld [vmem:[%s4817_s5] sm:$0xff]  ;;  %v3366_v23 = vld [vmem:[%s4815_s3 + $0x30] sm:$0xff] }
   0x7   :  { %3725 = vmatmul.mubr.msk.f32.vlgmr.msra.gmra.mxu1 %vm149_vm3, %v38_v9  ;;  %266 = vperm.xlu0 %4030, %v252_v10   ;;  %v413_v20 = vld [vmem:[%s4820_s8] sm:$0x3]  ;;  %v3367_v22 = vld [vmem:[%s4815_s3 + $0x38] sm:$0xff] }
   0x8   :  { %256 = vperm.xlu1 %4031, %v250_v11   ;;  %3719 = vmatprep.mubr.msk.f32.mxu0 %vm47_vm2, %v43_v12  ;;  %v494_v21 = vld [vmem:[%s4821_s9] sm:$0x3] }
   0x9   :  { %3727 = vmatprep.mubr.msk.f32.mxu1 %vm149_vm3, %v39_v13 }
   0xa   :  { %3720 = vmatmul.mubr.msk.f32.gmra.mxu0 %vm47_vm2, %v44_v14 }
   0xb   :  { %3728 = vmatmul.mubr.msk.f32.gmra.mxu1 %vm149_vm3, %v40_v15  ;;  %307 = vperm.xlu0 %4030, %v289_v16  }
   0xc   :  { %302 = vperm.xlu1 %4031, %v288_v17  }
   0xf   :  { %297 = vperm.xlu0 %4030, %v287_v18  }
  0x10   :  { %292 = vperm.xlu1 %4031, %v286_v19  }
  0x13   :  { %416 = vperm.xlu0 %4030, %v413_v20  }
  0x14   :  { %497 = vperm.xlu1 %4031, %v494_v21  }
  0x17   :  { %807 = vperm.xlu0 %4030, %v3367_v22  }
  0x18   :  { %802 = vperm.xlu1 %4031, %v3366_v23  }
  0x19   :  { %15 = vsyncpa [#allocation3], 0  ;;  %v3365_v24 = vld [vmem:[%s4815_s3 + $0x28] sm:$0xff]  ;;  %v3364_v25 = vld [vmem:[%s4815_s3 + $0x20] sm:$0xff]  ;;  %vm310_vm4 = vcmask 261120   ;;  %vm4080_vm5 = vmmov 0  }
  0x1a   :  { %v3375_v26 = vld [vmem:[%s4817_s5 + $0x38] sm:$0xff]  ;;  %v3374_v27 = vld [vmem:[%s4817_s5 + $0x30] sm:$0xff]  ;;  %v3373_v28 = vld [vmem:[%s4817_s5 + $0x28] sm:$0xff]  ;;  %vm3303_vm6 = vcmask 58368   ;;  %vm3314_vm7 = vcmask 57344   ;;  %vm3305_vm8 = vcmask 60418  }
  0x1b   :  { %797 = vperm.xlu0 %4030, %v3365_v24   ;;  %v3372_v29 = vld [vmem:[%s4817_s5 + $0x20] sm:$0xff]  ;;  %v3407_v32 = vld [vmem:[%s4815_s3 + $0x58] sm:$0xff]  ;;  %v3406_v33 = vld [vmem:[%s4815_s3 + $0x50] sm:$0xff] }
  0x1c   :  { %792 = vperm.xlu1 %4031, %v3364_v25   ;;  %v3381_v30 = vld [vmem:[%s4820_s8 + $0x2] sm:$0x3]  ;;  %v3405_v34 = vld [vmem:[%s4815_s3 + $0x48] sm:$0xff]  ;;  %v3415_v36 = vld [vmem:[%s4817_s5 + $0x58] sm:$0xff] }
  0x1d   :  { %v3384_v31 = vld [vmem:[%s4821_s9 + $0x2] sm:$0x3]  ;;  %v3414_v37 = vld [vmem:[%s4817_s5 + $0x50] sm:$0xff]  ;;  %v3413_v38 = vld [vmem:[%s4817_s5 + $0x48] sm:$0xff] }
  0x1e   :  { %v3404_v35 = vld [vmem:[%s4815_s3 + $0x40] sm:$0xff]  ;;  %v3447_v42 = vld [vmem:[%s4815_s3 + $0x78] sm:$0xff]  ;;  %v3446_v43 = vld [vmem:[%s4815_s3 + $0x70] sm:$0xff] }
  0x1f   :  { %845 = vperm.xlu0 %4030, %v3375_v26   ;;  %v3412_v39 = vld [vmem:[%s4817_s5 + $0x40] sm:$0xff]  ;;  %v3445_v44 = vld [vmem:[%s4815_s3 + $0x68] sm:$0xff]  ;;  %v3455_v46 = vld [vmem:[%s4817_s5 + $0x78] sm:$0xff] }
  0x20   :  { %840 = vperm.xlu1 %4031, %v3374_v27   ;;  %v3421_v40 = vld [vmem:[%s4820_s8 + $0x4] sm:$0x3]  ;;  %v3454_v47 = vld [vmem:[%s4817_s5 + $0x70] sm:$0xff]  ;;  %v3453_v48 = vld [vmem:[%s4817_s5 + $0x68] sm:$0xff] }
  0x21   :  { %v3424_v41 = vld [vmem:[%s4821_s9 + $0x4] sm:$0x3]  ;;  %v3461_v50 = vld [vmem:[%s4820_s8 + $0x6] sm:$0x3]  ;;  %v3487_v52 = vld [vmem:[%s4815_s3 + $0x98] sm:$0xff] }
  0x22   :  { %v3444_v45 = vld [vmem:[%s4815_s3 + $0x60] sm:$0xff]  ;;  %v3486_v53 = vld [vmem:[%s4815_s3 + $0x90] sm:$0xff]  ;;  %v3485_v54 = vld [vmem:[%s4815_s3 + $0x88] sm:$0xff] }
  0x23   :  { %835 = vperm.xlu0 %4030, %v3373_v28   ;;  %v3452_v49 = vld [vmem:[%s4817_s5 + $0x60] sm:$0xff]  ;;  %v3495_v56 = vld [vmem:[%s4817_s5 + $0x98] sm:$0xff]  ;;  %v3494_v57 = vld [vmem:[%s4817_s5 + $0x90] sm:$0xff] }
  0x24   :  { %830 = vperm.xlu1 %4031, %v3372_v29   ;;  %v3464_v51 = vld [vmem:[%s4821_s9 + $0x6] sm:$0x3]  ;;  %v3493_v59 = vld [vmem:[%s4817_s5 + $0x88] sm:$0xff]  ;;  %v3527_v63 = vld [vmem:[%s4815_s3 + $0xb8] sm:$0xff] }
  0x25   :  { %v3484_v55 = vld [vmem:[%s4815_s3 + $0x80] sm:$0xff]  ;;  %v3501_v61 = vld [vmem:[%s4820_s8 + $0x8] sm:$0x3]  ;;  %v3526_v0 = vld [vmem:[%s4815_s3 + $0xb0] sm:$0xff] }
  0x26   :  { %v282_v58 = vld [vmem:[%s4816_s4] sm:$0xff]  ;;  %v3504_v62 = vld [vmem:[%s4821_s9 + $0x8] sm:$0x3]  ;;  %v3535_v5 = vld [vmem:[%s4817_s5 + $0xb8] sm:$0xff] }
  0x27   :  { %955 = vperm.xlu0 %4030, %v3381_v30   ;;  %3738 = vmatprep.mubr.msk.f32.mxu0 %vm310_vm4, %v282_v58  ;;  %v3492_v60 = vld [vmem:[%s4817_s5 + $0x80] sm:$0xff]  ;;  %v3525_v1 = vld [vmem:[%s4815_s3 + $0xa8] sm:$0xff]  ;;  %v3534_v6 = vld [vmem:[%s4817_s5 + $0xb0] sm:$0xff] }
  0x28   :  { %1038 = vperm.xlu1 %4031, %v3384_v31   ;;  %v3524_v3 = vld [vmem:[%s4815_s3 + $0xa0] sm:$0xff]  ;;  %v3533_v7 = vld [vmem:[%s4817_s5 + $0xa8] sm:$0xff] }
  0x29   :  { %v3532_v8 = vld [vmem:[%s4817_s5 + $0xa0] sm:$0xff]  ;;  %v3541_v9 = vld [vmem:[%s4820_s8 + $0xa] sm:$0x3] }
  0x2a   :  { %v3544_v10 = vld [vmem:[%s4821_s9 + $0xa] sm:$0x3] }
  0x2b   :  { %1355 = vperm.xlu0 %4030, %v3407_v32   ;;  %v3351_v58 = vld [vmem:[%s4814_s2 + $0x28] sm:$0xff] }
  0x2c   :  { %1350 = vperm.xlu1 %4031, %v3406_v33  }
  0x2f   :  { %1345 = vperm.xlu0 %4030, %v3405_v34  }
  0x30   :  { %1340 = vperm.xlu1 %4031, %v3404_v35   ;;  %v283_v35 = vld [vmem:[%s4816_s4 + $0x8] sm:$0xff] }
  0x33   :  { %1393 = vperm.xlu0 %4030, %v3415_v36   ;;  %v284_v36 = vld [vmem:[%s4816_s4 + $0x10] sm:$0xff] }
  0x34   :  { %1388 = vperm.xlu1 %4031, %v3414_v37   ;;  %v285_v37 = vld [vmem:[%s4816_s4 + $0x18] sm:$0xff] }
  0x37   :  { %1383 = vperm.xlu0 %4030, %v3413_v38   ;;  %v4079_v38 = vmov 0.0  }
  0x38   :  { %1378 = vperm.xlu1 %4031, %v3412_v39   ;;  %3744 = vmatprep.subr.mxu1 %v4079_v38 }
  0x39   :  { %3752 = vmatprep.mubr.msk.f32.mxu1 %vm4080_vm5, %v4079_v38 }
  0x3b   :  { %1503 = vperm.xlu0 %4030, %v3421_v40  }
  0x3c   :  { %1586 = vperm.xlu1 %4031, %v3424_v41  }
  0x3f   :  { %1896 = vperm.xlu0 %4030, %v3447_v42  }
  0x40   :  { %1891 = vperm.xlu1 %4031, %v3446_v43  }
  0x43   :  { %1886 = vperm.xlu0 %4030, %v3445_v44  }
  0x44   :  { %1881 = vperm.xlu1 %4031, %v3444_v45  }
  0x47   :  { %1934 = vperm.xlu0 %4030, %v3455_v46  }
  0x48   :  { %1929 = vperm.xlu1 %4031, %v3454_v47  }
  0x4b   :  { %1924 = vperm.xlu0 %4030, %v3453_v48  }
  0x4c   :  { %1919 = vperm.xlu1 %4031, %v3452_v49  }
  0x4f   :  { %2044 = vperm.xlu0 %4030, %v3461_v50  }
  0x50   :  { %2127 = vperm.xlu1 %4031, %v3464_v51  }
  0x53   :  { %2444 = vperm.xlu0 %4030, %v3487_v52  }
  0x54   :  { %2439 = vperm.xlu1 %4031, %v3486_v53  }
  0x57   :  { %2434 = vperm.xlu0 %4030, %v3485_v54  }
  0x58   :  { %2429 = vperm.xlu1 %4031, %v3484_v55   ;;  %v412_v55 = vld [vmem:[%s4818_s6] sm:$0x3] }
  0x5b   :  { %2482 = vperm.xlu0 %4030, %v3495_v56   ;;  %v493_v56 = vld [vmem:[%s4819_s7] sm:$0x3] }
  0x5c   :  { %2477 = vperm.xlu1 %4031, %v3494_v57   ;;  %v3350_v57 = vld [vmem:[%s4814_s2 + $0x20] sm:$0xff] }
  0x5f   :  { %2472 = vperm.xlu0 %4030, %v3493_v59   ;;  %v3346_v59 = vld [vmem:[%s4813_s1 + $0x20] sm:$0xff] }
  0x60   :  { %2467 = vperm.xlu1 %4031, %v3492_v60   ;;  %v3352_v60 = vld [vmem:[%s4814_s2 + $0x30] sm:$0xff] }
  0x63   :  { %2592 = vperm.xlu0 %4030, %v3501_v61   ;;  %v3353_v61 = vld [vmem:[%s4814_s2 + $0x38] sm:$0xff] }
  0x64   :  { %2675 = vperm.xlu1 %4031, %v3504_v62  }
  0x67   :  { %2985 = vperm.xlu0 %4030, %v3527_v63  }
  0x68   :  { %2980 = vperm.xlu1 %4031, %v3526_v0  }
  0x6b   :  { %2975 = vperm.xlu0 %4030, %v3525_v1  }
  0x6c   :  { %2970 = vperm.xlu1 %4031, %v3524_v3  }
  0x6f   :  { %3023 = vperm.xlu0 %4030, %v3535_v5  }
  0x70   :  { %3018 = vperm.xlu1 %4031, %v3534_v6  }
  0x73   :  { %3013 = vperm.xlu0 %4030, %v3533_v7  }
  0x74   :  { %3008 = vperm.xlu1 %4031, %v3532_v8  }
  0x77   :  { %3133 = vperm.xlu0 %4030, %v3541_v9  }
  0x78   :  { %3216 = vperm.xlu1 %4031, %v3544_v10  }
  0x7d   :  { %v272_v13 = vpop.permute.xlu0 %271  ;;  %v262_v16 = vpop.permute.xlu1 %261 }
  0x82   :  { %v267_v26 = vpop.permute.xlu0 %266 }
  0x83   :  { %v257_v30 = vpop.permute.xlu1 %256 }
  0x86   :  { %v308_v39 = vpop.permute.xlu0 %307 }
  0x87   :  { %v303_v41 = vpop.permute.xlu1 %302 }
  0x8a   :  { %v298_v45 = vpop.permute.xlu0 %297 }
  0x8b   :  { %v293_v50 = vpop.permute.xlu1 %292 }
  0x8e   :  { %v417_v62 = vpop.permute.xlu0 %416 }
  0x8f   :  { %v498_v9 = vpop.permute.xlu1 %497 }
  0xc6   :  { %v3718_v11 = vpop.f32.mrf.mxu0 }
  0xc7   :  { %v3726_v12 = vpop.f32.mrf.mxu1 }
  0xc8   :  { %v129_v14 = vpop.f32.mrf.mxu0  ;;  %v237_v19 = vadd.f32 %v3726_v12, %v3718_v11 }
  0xc9   :  { %v231_v15 = vpop.f32.mrf.mxu1 }
  0xca   :  { %v3721_v17 = vpop.f32.mrf.mxu0  ;;  %v232_v23 = vadd.f32 %v231_v15, %v129_v14  ;;  %v275_v27 = vadd.f32 %v262_v16, %v237_v19  ;;  %v3348_v14 = vld [vmem:[%s4813_s1 + $0x30] sm:$0xff]  ;;  %v3349_v15 = vld [vmem:[%s4813_s1 + $0x38] sm:$0xff]  ;;  %v3368_v16 = vld [vmem:[%s4816_s4 + $0x20] sm:$0xff] }
  0xcb   :  { %v3729_v18 = vpop.f32.mrf.mxu1 }
  0xcc   :  { %v247_v20 = vadd.f32 %v3729_v18, %v3721_v17  ;;  %v139_v21 = vpop.f32.mrf.mxu0  ;;  %v274_v31 = vadd.f32 %v257_v30, %v232_v23  ;;  %v279_v33 = vmax.f32 %v275_v27, 0.0  ;;  %v803_v23 = vpop.permute.xlu1 %802 }
  0xcd   :  { %v241_v22 = vpop.f32.mrf.mxu1 }
  0xce   :  { %v277_v24 = vadd.f32 %v272_v13, %v247_v20  ;;  %v242_v25 = vadd.f32 %v241_v22, %v139_v21  ;;  %v278_v34 = vmax.f32 %v274_v31, 0.0  ;;  %v3347_v13 = vld [vmem:[%s4813_s1 + $0x28] sm:$0xff]  ;;  %v808_v20 = vpop.permute.xlu0 %807 }
  0xd0   :  { %v281_v28 = vmax.f32 %v277_v24, 0.0  ;;  %v276_v29 = vadd.f32 %v267_v26, %v242_v25 }
  0xd2   :  { %v280_v32 = vmax.f32 %v276_v29, 0.0  ;;  %3730 = vmatprep.subr.mxu0 %v281_v28 }
  0xd3   :  { %3731 = vmatpush3.msra.mxu0 %v281_v28 }
  0xd4   :  { %3732 = vmatprep.subr.mxu0 %v280_v32 }
  0xd5   :  { %3733 = vmatpush3.msra.mxu0 %v280_v32  ;;  %v798_v32 = vpop.permute.xlu0 %797 }
  0xd6   :  { %3734 = vmatprep.subr.mxu0 %v279_v33 }
  0xd7   :  { %3735 = vmatpush3.msra.mxu0 %v279_v33 }
  0xd8   :  { %3736 = vmatprep.subr.mxu0 %v278_v34 }
  0xd9   :  { %3737 = vmatpush3.msra.mxu0 %v278_v34 }
  0xda   :  { %3739 = vmatmul.mubr.msk.f32.vlgmr.msra.gmra.mxu0 %vm310_vm4, %v283_v35  ;;  %3755 = vmatprep.subr.mxu0 %v4079_v38 }
  0xdb   :  { %3741 = vmatprep.mubr.msk.f32.mxu0 %vm310_vm4, %v284_v36  ;;  %v793_v36 = vpop.permute.xlu1 %792 }
  0xde   :  { %3742 = vmatmul.mubr.msk.f32.gmra.mxu0 %vm310_vm4, %v285_v37 }
  0xdf   :  { %3763 = vmatprep.mubr.msk.f32.mxu0 %vm4080_vm5, %v4079_v38 }
 0x19a   :  { %v3740_v40 = vpop.f32.mrf.mxu0 }
 0x19b   :  { %v395_v47 = vadd.f32 %v3740_v40, %v298_v45  ;;  %v846_v45 = vpop.permute.xlu0 %845 }
 0x19c   :  { %v389_v42 = vpop.f32.mrf.mxu0 }
 0x19d   :  { %v390_v51 = vadd.f32 %v389_v42, %v293_v50  ;;  %v409_v53 = vmax.f32 %v395_v47, 0.0  ;;  %v3369_v42 = vld [vmem:[%s4816_s4 + $0x28] sm:$0xff]  ;;  %v841_v47 = vpop.permute.xlu1 %840 }
 0x19e   :  { %v3743_v43 = vpop.f32.mrf.mxu0 }
 0x19f   :  { %v405_v44 = vadd.f32 %v3743_v43, %v308_v39  ;;  %v408_v54 = vmax.f32 %v390_v51, 0.0  ;;  %v3370_v43 = vld [vmem:[%s4816_s4 + $0x30] sm:$0xff]  ;;  %v836_v51 = vpop.permute.xlu0 %835 }
 0x1a0   :  { %v399_v46 = vpop.f32.mrf.mxu0 }
 0x1a1   :  { %v411_v48 = vmax.f32 %v405_v44, 0.0  ;;  %v400_v49 = vadd.f32 %v399_v46, %v303_v41  ;;  %v3371_v44 = vld [vmem:[%s4816_s4 + $0x38] sm:$0xff] }
 0x1a3   :  { %v410_v52 = vmax.f32 %v400_v49, 0.0  ;;  %3745 = vmatpush3.msra.mxu1 %v411_v48  ;;  %3756 = vmatpush3.msra.mxu0 %v411_v48 }
 0x1a4   :  { %3746 = vmatprep.subr.mxu1 %v4079_v38  ;;  %3757 = vmatprep.subr.mxu0 %v4079_v38 }
 0x1a5   :  { %3747 = vmatpush3.msra.mxu1 %v410_v52  ;;  %3758 = vmatpush3.msra.mxu0 %v410_v52 }
 0x1a6   :  { %3748 = vmatprep.subr.mxu1 %v4079_v38  ;;  %3759 = vmatprep.subr.mxu0 %v4079_v38 }
 0x1a7   :  { %3749 = vmatpush3.msra.mxu1 %v409_v53  ;;  %3760 = vmatpush3.msra.mxu0 %v409_v53 }
 0x1a8   :  { %3750 = vmatprep.subr.mxu1 %v4079_v38  ;;  %3761 = vmatprep.subr.mxu0 %v4079_v38 }
 0x1a9   :  { %3751 = vmatpush3.msra.mxu1 %v408_v54  ;;  %3762 = vmatpush3.msra.mxu0 %v408_v54 }
 0x1aa   :  { %3753 = vmatmul.mubr.msk.f32.vlgmr.msra.gmra.mxu1 %vm310_vm4, %v412_v55  ;;  %3764 = vmatmul.mubr.msk.f32.vlgmr.msra.gmra.mxu0 %vm310_vm4, %v493_v56  ;;  %v831_v56 = vpop.permute.xlu1 %830 }
 0x1ab   :  { %3766 = vmatprep.subr.msk.mxu1 %vm60_vm0, %v4149_v4  ;;  %3768 = vmatprep.mubr.msk.f32.mxu1 %vm47_vm2, %v3350_v57 }
 0x1ac   :  { %3767 = vmatpush3.msk.msra.mxu1 %vm60_vm0, %v4149_v4  ;;  %3776 = vmatprep.mubr.msk.f32.mxu0 %vm149_vm3, %v3346_v59 }
 0x1ae   :  { %3769 = vmatmul.mubr.msk.f32.vlgmr.msra.gmra.mxu1 %vm47_vm2, %v3351_v58 }
 0x1af   :  { %3771 = vmatprep.mubr.msk.f32.mxu1 %vm47_vm2, %v3352_v60 }
 0x1b2   :  { %3772 = vmatmul.mubr.msk.f32.gmra.mxu1 %vm47_vm2, %v3353_v61  ;;  %v3380_v61 = vld [vmem:[%s4818_s6 + $0x2] sm:$0x3] }
 0x1b3   :  { %3790 = vmatprep.mubr.msk.f32.mxu1 %vm310_vm4, %v3368_v16  ;;  %v1039_v16 = vpop.permute.xlu1 %1038 }
 0x26a   :  { %v488_v63 = vpop.f32.mrf.mxu1  ;;  %v569_v0 = vpop.f32.mrf.mxu0 }
 0x26b   :  { %v489_v1 = vadd.f32 %v488_v63, %v417_v62  ;;  %v570_v10 = vadd.f32 %v569_v0, %v498_v9  ;;  %v3383_v62 = vld [vmem:[%s4819_s7 + $0x2] sm:$0x3]  ;;  %v3391_v0 = vld [vmem:[%s4814_s2 + $0x48] sm:$0xff] }
 0x26c   :  { %v3754_v3 = vpop.f32.mrf.mxu1  ;;  %v3765_v5 = vpop.f32.mrf.mxu0  ;;  %v3390_v63 = vld [vmem:[%s4814_s2 + $0x40] sm:$0xff] }
 0x26d   :  { %4032 = vtanh.f32 %v489_v1  ;;  %v3386_v1 = vld [vmem:[%s4813_s1 + $0x40] sm:$0xff]  ;;  %v3392_v3 = vld [vmem:[%s4814_s2 + $0x50] sm:$0xff]  ;;  %v3393_v5 = vld [vmem:[%s4814_s2 + $0x58] sm:$0xff] }
 0x26e   :  { %v3770_v17 = vpop.f32.mrf.mxu1 }
 0x270   :  { %v666_v18 = vpop.f32.mrf.mxu1 }
 0x272   :  { %v3773_v21 = vpop.f32.mrf.mxu1 }
 0x274   :  { %v676_v27 = vpop.f32.mrf.mxu1 }
 0x27a   :  { %v4424_v6 = vpop.eup %4032 }
 0x27b   :  { %v573_v7 = vmul.f32 1.442695, %v4424_v6 }
 0x27d   :  { %4034 = vpow2.f32 %v573_v7  ;;  %v956_v7 = vpop.permute.xlu0 %955 }
 0x28a   :  { %v4035_v8 = vpop.eup %4034 }
 0x28b   :  { %v575_v11 = vmul.f32 %v4035_v8, %v4146_v2 }
 0x28d   :  { %v4428_v12 = vadd.f32 %v575_v11, %v570_v10 }
 0x28f   :  { %3774 = vmatprep.subr.msk.mxu0 %vm162_vm1, %v4428_v12 }
 0x290   :  { %3775 = vmatpush3.msk.msra.mxu0 %vm162_vm1, %v4428_v12 }
 0x291   :  { %3777 = vmatmul.mubr.msk.f32.vlgmr.msra.gmra.mxu0 %vm149_vm3, %v3347_v13  ;;  %3796 = vmatprep.subr.mxu0 %v4079_v38 }
 0x292   :  { %3779 = vmatprep.mubr.msk.f32.mxu0 %vm149_vm3, %v3348_v14 }
 0x295   :  { %3780 = vmatmul.mubr.msk.f32.gmra.mxu0 %vm149_vm3, %v3349_v15 }
 0x296   :  { %3804 = vmatprep.mubr.msk.f32.mxu0 %vm4080_vm5, %v4079_v38 }
 0x351   :  { %v3778_v19 = vpop.f32.mrf.mxu0 }
 0x352   :  { %v772_v25 = vadd.f32 %v3778_v19, %v3770_v17 }
 0x353   :  { %v766_v22 = vpop.f32.mrf.mxu0 }
 0x354   :  { %v767_v29 = vadd.f32 %v766_v22, %v666_v18  ;;  %v811_v33 = vadd.f32 %v798_v32, %v772_v25  ;;  %v3388_v25 = vld [vmem:[%s4813_s1 + $0x50] sm:$0xff] }
 0x355   :  { %v3781_v24 = vpop.f32.mrf.mxu0 }
 0x356   :  { %v782_v26 = vadd.f32 %v3781_v24, %v3773_v21  ;;  %v810_v37 = vadd.f32 %v793_v36, %v767_v29  ;;  %v815_v40 = vmax.f32 %v811_v33, 0.0  ;;  %v3387_v24 = vld [vmem:[%s4813_s1 + $0x48] sm:$0xff]  ;;  %v1351_v33 = vpop.permute.xlu1 %1350 }
 0x357   :  { %v776_v28 = vpop.f32.mrf.mxu0 }
 0x358   :  { %v813_v30 = vadd.f32 %v808_v20, %v782_v26  ;;  %v777_v31 = vadd.f32 %v776_v28, %v676_v27  ;;  %v814_v41 = vmax.f32 %v810_v37, 0.0  ;;  %v3408_v26 = vld [vmem:[%s4816_s4 + $0x40] sm:$0xff] }
 0x35a   :  { %v817_v34 = vmax.f32 %v813_v30, 0.0  ;;  %v812_v35 = vadd.f32 %v803_v23, %v777_v31  ;;  %v1356_v30 = vpop.permute.xlu0 %1355 }
 0x35c   :  { %v816_v39 = vmax.f32 %v812_v35, 0.0  ;;  %3782 = vmatprep.subr.mxu1 %v817_v34 }
 0x35d   :  { %3783 = vmatpush3.msra.mxu1 %v817_v34 }
 0x35e   :  { %3784 = vmatprep.subr.mxu1 %v816_v39 }
 0x35f   :  { %3785 = vmatpush3.msra.mxu1 %v816_v39 }
 0x360   :  { %3786 = vmatprep.subr.mxu1 %v815_v40 }
 0x361   :  { %3787 = vmatpush3.msra.mxu1 %v815_v40 }
 0x362   :  { %3788 = vmatprep.subr.mxu1 %v814_v41 }
 0x363   :  { %3789 = vmatpush3.msra.mxu1 %v814_v41 }
 0x364   :  { %3791 = vmatmul.mubr.msk.f32.vlgmr.msra.gmra.mxu1 %vm310_vm4, %v3369_v42  ;;  %3807 = vmatprep.subr.mxu1 %v4079_v38 }
 0x365   :  { %3793 = vmatprep.mubr.msk.f32.mxu1 %vm310_vm4, %v3370_v43  ;;  %v1346_v43 = vpop.permute.xlu0 %1345 }
 0x368   :  { %3794 = vmatmul.mubr.msk.f32.gmra.mxu1 %vm310_vm4, %v3371_v44 }
 0x369   :  { %3815 = vmatprep.mubr.msk.f32.mxu1 %vm4080_vm5, %v4079_v38 }
 0x424   :  { %v3792_v46 = vpop.f32.mrf.mxu1 }
 0x425   :  { %v932_v53 = vadd.f32 %v3792_v46, %v836_v51 }
 0x426   :  { %v926_v48 = vpop.f32.mrf.mxu1 }
 0x427   :  { %v927_v57 = vadd.f32 %v926_v48, %v831_v56  ;;  %v946_v59 = vmax.f32 %v932_v53, 0.0  ;;  %v3410_v53 = vld [vmem:[%s4816_s4 + $0x50] sm:$0xff] }
 0x428   :  { %v3795_v49 = vpop.f32.mrf.mxu1 }
 0x429   :  { %v942_v50 = vadd.f32 %v3795_v49, %v846_v45  ;;  %v945_v60 = vmax.f32 %v927_v57, 0.0 }
 0x42a   :  { %v936_v52 = vpop.f32.mrf.mxu1 }
 0x42b   :  { %v948_v54 = vmax.f32 %v942_v50, 0.0  ;;  %v937_v55 = vadd.f32 %v936_v52, %v841_v47  ;;  %v1341_v47 = vpop.permute.xlu1 %1340  ;;  %v3409_v52 = vld [vmem:[%s4816_s4 + $0x48] sm:$0xff] }
 0x42d   :  { %v947_v58 = vmax.f32 %v937_v55, 0.0  ;;  %3797 = vmatpush3.msra.mxu0 %v948_v54  ;;  %3808 = vmatpush3.msra.mxu1 %v948_v54  ;;  %v3411_v54 = vld [vmem:[%s4816_s4 + $0x58] sm:$0xff]  ;;  %v1394_v55 = vpop.permute.xlu0 %1393 }
 0x42e   :  { %3798 = vmatprep.subr.mxu0 %v4079_v38  ;;  %3809 = vmatprep.subr.mxu1 %v4079_v38 }
 0x42f   :  { %3799 = vmatpush3.msra.mxu0 %v947_v58  ;;  %3810 = vmatpush3.msra.mxu1 %v947_v58  ;;  %v1389_v57 = vpop.permute.xlu1 %1388 }
 0x430   :  { %3800 = vmatprep.subr.mxu0 %v4079_v38  ;;  %3811 = vmatprep.subr.mxu1 %v4079_v38 }
 0x431   :  { %3801 = vmatpush3.msra.mxu0 %v946_v59  ;;  %3812 = vmatpush3.msra.mxu1 %v946_v59 }
 0x432   :  { %3802 = vmatprep.subr.mxu0 %v4079_v38  ;;  %3813 = vmatprep.subr.mxu1 %v4079_v38 }
 0x433   :  { %3803 = vmatpush3.msra.mxu0 %v945_v60  ;;  %3814 = vmatpush3.msra.mxu1 %v945_v60 }
 0x434   :  { %3805 = vmatmul.mubr.msk.f32.vlgmr.msra.gmra.mxu0 %vm310_vm4, %v3380_v61  ;;  %3816 = vmatmul.mubr.msk.f32.vlgmr.msra.gmra.mxu1 %vm310_vm4, %v3383_v62  ;;  %v1384_v61 = vpop.permute.xlu0 %1383 }
 0x435   :  { %3818 = vmatprep.subr.msk.mxu0 %vm60_vm0, %v4149_v4  ;;  %3820 = vmatprep.mubr.msk.f32.mxu0 %vm47_vm2, %v3390_v63 }
 0x436   :  { %3819 = vmatpush3.msk.msra.mxu0 %vm60_vm0, %v4149_v4  ;;  %3828 = vmatprep.mubr.msk.f32.mxu1 %vm149_vm3, %v3386_v1 }
 0x438   :  { %3821 = vmatmul.mubr.msk.f32.vlgmr.msra.gmra.mxu0 %vm47_vm2, %v3391_v0 }
 0x439   :  { %3823 = vmatprep.mubr.msk.f32.mxu0 %vm47_vm2, %v3392_v3  ;;  %v1379_v3 = vpop.permute.xlu1 %1378 }
 0x43c   :  { %3824 = vmatmul.mubr.msk.f32.gmra.mxu0 %vm47_vm2, %v3393_v5 }
 0x43d   :  { %3842 = vmatprep.mubr.msk.f32.mxu0 %vm310_vm4, %v3408_v26 }
 0x4f4   :  { %v1027_v8 = vpop.f32.mrf.mxu0  ;;  %v1110_v9 = vpop.f32.mrf.mxu1 }
 0x4f5   :  { %v1028_v10 = vadd.f32 %v1027_v8, %v956_v7  ;;  %v1111_v17 = vadd.f32 %v1110_v9, %v1039_v16  ;;  %v3426_v16 = vld [vmem:[%s4813_s1 + $0x60] sm:$0xff] }
 0x4f6   :  { %v3806_v11 = vpop.f32.mrf.mxu0  ;;  %v3817_v13 = vpop.f32.mrf.mxu1 }
 0x4f7   :  { %4036 = vtanh.f32 %v1028_v10  ;;  %v1121_v21 = vrot.slane %v1111_v17, 6  ;;  %v3420_v10 = vld [vmem:[%s4818_s6 + $0x4] sm:$0x3]  ;;  %v3432_v17 = vld [vmem:[%s4814_s2 + $0x70] sm:$0xff] }
 0x4f8   :  { %v3822_v27 = vpop.f32.mrf.mxu0  ;;  %v3423_v11 = vld [vmem:[%s4819_s7 + $0x4] sm:$0x3] }
 0x4f9   :  { %v3430_v13 = vld [vmem:[%s4814_s2 + $0x60] sm:$0xff] }
 0x4fa   :  { %v1213_v28 = vpop.f32.mrf.mxu0 }
 0x4fc   :  { %v3825_v31 = vpop.f32.mrf.mxu0 }
 0x4fe   :  { %v1223_v37 = vpop.f32.mrf.mxu0 }
 0x504   :  { %v4506_v14 = vpop.eup %4036 }
 0x505   :  { %v1114_v15 = vmul.f32 1.442695, %v4506_v14 }
 0x507   :  { %4038 = vpow2.f32 %v1114_v15  ;;  %v3431_v15 = vld [vmem:[%s4814_s2 + $0x68] sm:$0xff] }
 0x514   :  { %v4039_v18 = vpop.eup %4038 }
 0x515   :  { %v1117_v19 = vrot.slane %v4039_v18, 6  ;;  %v3433_v18 = vld [vmem:[%s4814_s2 + $0x78] sm:$0xff] }
 0x517   :  { %v1119_v20 = vmul.f32 %v1117_v19, %v4146_v2  ;;  %v3389_v2 = vld [vmem:[%s4813_s1 + $0x58] sm:$0xff]  ;;  %v1504_v19 = vpop.permute.xlu0 %1503 }
 0x519   :  { %v4510_v22 = vadd.f32 %v1121_v21, %v1119_v20 }
 0x51b   :  { %v1233_v23 = vrot.slane %v4510_v22, 2 }
 0x51d   :  { %3826 = vmatprep.subr.msk.mxu1 %vm162_vm1, %v1233_v23 }
 0x51e   :  { %3827 = vmatpush3.msk.msra.mxu1 %vm162_vm1, %v1233_v23 }
 0x51f   :  { %3829 = vmatmul.mubr.msk.f32.vlgmr.msra.gmra.mxu1 %vm149_vm3, %v3387_v24  ;;  %3848 = vmatprep.subr.mxu1 %v4079_v38 }
 0x520   :  { %3831 = vmatprep.mubr.msk.f32.mxu1 %vm149_vm3, %v3388_v25 }
 0x523   :  { %3832 = vmatmul.mubr.msk.f32.gmra.mxu1 %vm149_vm3, %v3389_v2  ;;  %v1124_v2 = vadd.f32 %v4506_v14, %v4424_v6  ;;  %v3428_v6 = vld [vmem:[%s4813_s1 + $0x70] sm:$0xff]  ;;  %v3448_v14 = vld [vmem:[%s4816_s4 + $0x60] sm:$0xff] }
 0x524   :  { %3856 = vmatprep.mubr.msk.f32.mxu1 %vm4080_vm5, %v4079_v38 }
 0x5df   :  { %v3830_v29 = vpop.f32.mrf.mxu1 }
 0x5e0   :  { %v1320_v35 = vadd.f32 %v3830_v29, %v3822_v27 }
 0x5e1   :  { %v1314_v32 = vpop.f32.mrf.mxu1 }
 0x5e2   :  { %v1315_v40 = vadd.f32 %v1314_v32, %v1213_v28  ;;  %v1359_v44 = vadd.f32 %v1346_v43, %v1320_v35 }
 0x5e3   :  { %v3833_v34 = vpop.f32.mrf.mxu1 }
 0x5e4   :  { %v1330_v36 = vadd.f32 %v3833_v34, %v3825_v31  ;;  %v1358_v48 = vadd.f32 %v1341_v47, %v1315_v40  ;;  %v1363_v50 = vmax.f32 %v1359_v44, 0.0  ;;  %v3427_v34 = vld [vmem:[%s4813_s1 + $0x68] sm:$0xff] }
 0x5e5   :  { %v1324_v39 = vpop.f32.mrf.mxu1 }
 0x5e6   :  { %v1361_v41 = vadd.f32 %v1356_v30, %v1330_v36  ;;  %v1325_v42 = vadd.f32 %v1324_v39, %v1223_v37  ;;  %v1362_v51 = vmax.f32 %v1358_v48, 0.0  ;;  %v1587_v30 = vpop.permute.xlu1 %1586  ;;  %v1897_v39 = vpop.permute.xlu0 %1896 }
 0x5e8   :  { %v1365_v45 = vmax.f32 %v1361_v41, 0.0  ;;  %v1360_v46 = vadd.f32 %v1351_v33, %v1325_v42 }
 0x5ea   :  { %v1364_v49 = vmax.f32 %v1360_v46, 0.0  ;;  %3834 = vmatprep.subr.mxu0 %v1365_v45  ;;  %v1892_v42 = vpop.permute.xlu1 %1891 }
 0x5eb   :  { %3835 = vmatpush3.msra.mxu0 %v1365_v45 }
 0x5ec   :  { %3836 = vmatprep.subr.mxu0 %v1364_v49 }
 0x5ed   :  { %3837 = vmatpush3.msra.mxu0 %v1364_v49 }
 0x5ee   :  { %3838 = vmatprep.subr.mxu0 %v1363_v50 }
 0x5ef   :  { %3839 = vmatpush3.msra.mxu0 %v1363_v50 }
 0x5f0   :  { %3840 = vmatprep.subr.mxu0 %v1362_v51 }
 0x5f1   :  { %3841 = vmatpush3.msra.mxu0 %v1362_v51  ;;  %v1887_v51 = vpop.permute.xlu0 %1886 }
 0x5f2   :  { %3843 = vmatmul.mubr.msk.f32.vlgmr.msra.gmra.mxu0 %vm310_vm4, %v3409_v52  ;;  %3859 = vmatprep.subr.mxu0 %v4079_v38 }
 0x5f3   :  { %3845 = vmatprep.mubr.msk.f32.mxu0 %vm310_vm4, %v3410_v53 }
 0x5f6   :  { %3846 = vmatmul.mubr.msk.f32.gmra.mxu0 %vm310_vm4, %v3411_v54 }
 0x5f7   :  { %3867 = vmatprep.mubr.msk.f32.mxu0 %vm4080_vm5, %v4079_v38 }
 0x6b2   :  { %v3844_v56 = vpop.f32.mrf.mxu0 }
 0x6b3   :  { %v1480_v63 = vadd.f32 %v3844_v56, %v1384_v61  ;;  %v3450_v61 = vld [vmem:[%s4816_s4 + $0x70] sm:$0xff] }
 0x6b4   :  { %v1474_v58 = vpop.f32.mrf.mxu0 }
 0x6b5   :  { %v1475_v5 = vadd.f32 %v1474_v58, %v1379_v3  ;;  %v1494_v8 = vmax.f32 %v1480_v63, 0.0  ;;  %v1935_v63 = vpop.permute.xlu0 %1934 }
 0x6b6   :  { %v3847_v59 = vpop.f32.mrf.mxu0 }
 0x6b7   :  { %v1490_v60 = vadd.f32 %v3847_v59, %v1394_v55  ;;  %v1493_v9 = vmax.f32 %v1475_v5, 0.0  ;;  %v1882_v55 = vpop.permute.xlu1 %1881 }
 0x6b8   :  { %v1484_v62 = vpop.f32.mrf.mxu0 }
 0x6b9   :  { %v1496_v0 = vmax.f32 %v1490_v60, 0.0  ;;  %v1485_v1 = vadd.f32 %v1484_v62, %v1389_v57  ;;  %v3449_v60 = vld [vmem:[%s4816_s4 + $0x68] sm:$0xff]  ;;  %v3451_v62 = vld [vmem:[%s4816_s4 + $0x78] sm:$0xff] }
 0x6bb   :  { %v1495_v7 = vmax.f32 %v1485_v1, 0.0  ;;  %3849 = vmatpush3.msra.mxu1 %v1496_v0  ;;  %3860 = vmatpush3.msra.mxu0 %v1496_v0  ;;  %v1930_v1 = vpop.permute.xlu1 %1929 }
 0x6bc   :  { %3850 = vmatprep.subr.mxu1 %v4079_v38  ;;  %3861 = vmatprep.subr.mxu0 %v4079_v38 }
 0x6bd   :  { %3851 = vmatpush3.msra.mxu1 %v1495_v7  ;;  %3862 = vmatpush3.msra.mxu0 %v1495_v7 }
 0x6be   :  { %3852 = vmatprep.subr.mxu1 %v4079_v38  ;;  %3863 = vmatprep.subr.mxu0 %v4079_v38 }
 0x6bf   :  { %3853 = vmatpush3.msra.mxu1 %v1494_v8  ;;  %3864 = vmatpush3.msra.mxu0 %v1494_v8  ;;  %v1925_v8 = vpop.permute.xlu0 %1924 }
 0x6c0   :  { %3854 = vmatprep.subr.mxu1 %v4079_v38  ;;  %3865 = vmatprep.subr.mxu0 %v4079_v38 }
 0x6c1   :  { %3855 = vmatpush3.msra.mxu1 %v1493_v9  ;;  %3866 = vmatpush3.msra.mxu0 %v1493_v9 }
 0x6c2   :  { %3857 = vmatmul.mubr.msk.f32.vlgmr.msra.gmra.mxu1 %vm310_vm4, %v3420_v10  ;;  %3868 = vmatmul.mubr.msk.f32.vlgmr.msra.gmra.mxu0 %vm310_vm4, %v3423_v11 }
 0x6c3   :  { %3870 = vmatprep.subr.msk.mxu1 %vm60_vm0, %v4149_v4  ;;  %3872 = vmatprep.mubr.msk.f32.mxu1 %vm47_vm2, %v3430_v13 }
 0x6c4   :  { %3871 = vmatpush3.msk.msra.mxu1 %vm60_vm0, %v4149_v4  ;;  %3880 = vmatprep.mubr.msk.f32.mxu0 %vm149_vm3, %v3426_v16 }
 0x6c6   :  { %3873 = vmatmul.mubr.msk.f32.vlgmr.msra.gmra.mxu1 %vm47_vm2, %v3431_v15  ;;  %v1920_v15 = vpop.permute.xlu1 %1919 }
 0x6c7   :  { %3875 = vmatprep.mubr.msk.f32.mxu1 %vm47_vm2, %v3432_v17 }
 0x6ca   :  { %3876 = vmatmul.mubr.msk.f32.gmra.mxu1 %vm47_vm2, %v3433_v18 }
 0x6cb   :  { %3894 = vmatprep.mubr.msk.f32.mxu1 %vm310_vm4, %v3448_v14 }
 0x782   :  { %v1575_v20 = vpop.f32.mrf.mxu1  ;;  %v1658_v21 = vpop.f32.mrf.mxu0 }
 0x783   :  { %v1576_v23 = vadd.f32 %v1575_v20, %v1504_v19  ;;  %v1659_v31 = vadd.f32 %v1658_v21, %v1587_v30  ;;  %v3460_v20 = vld [vmem:[%s4818_s6 + $0x6] sm:$0x3] }
 0x784   :  { %v3858_v24 = vpop.f32.mrf.mxu1  ;;  %v3869_v25 = vpop.f32.mrf.mxu0  ;;  %v3463_v21 = vld [vmem:[%s4819_s7 + $0x6] sm:$0x3] }
 0x785   :  { %4040 = vtanh.f32 %v1576_v23  ;;  %v3470_v23 = vld [vmem:[%s4814_s2 + $0x80] sm:$0xff]  ;;  %v3471_v24 = vld [vmem:[%s4814_s2 + $0x88] sm:$0xff] }
 0x786   :  { %v3874_v35 = vpop.f32.mrf.mxu1  ;;  %v3466_v25 = vld [vmem:[%s4813_s1 + $0x80] sm:$0xff] }
 0x788   :  { %v1755_v36 = vpop.f32.mrf.mxu1 }
 0x78a   :  { %v3877_v40 = vpop.f32.mrf.mxu1 }
 0x78c   :  { %v1765_v46 = vpop.f32.mrf.mxu1 }
 0x792   :  { %v4041_v26 = vpop.eup %4040 }
 0x793   :  { %v1662_v27 = vmul.f32 1.442695, %v4041_v26  ;;  %v4589_v28 = vadd.f32 %v4041_v26, %v1124_v2  ;;  %v3472_v2 = vld [vmem:[%s4814_s2 + $0x90] sm:$0xff]  ;;  %v3473_v26 = vld [vmem:[%s4814_s2 + $0x98] sm:$0xff] }
 0x795   :  { %4042 = vpow2.f32 %v1662_v27  ;;  %v2045_v27 = vpop.permute.xlu0 %2044 }
 0x7a2   :  { %v4043_v29 = vpop.eup %4042 }
 0x7a3   :  { %v1664_v32 = vmul.f32 %v4043_v29, %v4428_v12  ;;  %v3429_v12 = vld [vmem:[%s4813_s1 + $0x78] sm:$0xff] }
 0x7a5   :  { %v4592_v33 = vadd.f32 %v1664_v32, %v1659_v31 }
 0x7a7   :  { %3878 = vmatprep.subr.msk.mxu0 %vm162_vm1, %v4592_v33 }
 0x7a8   :  { %3879 = vmatpush3.msk.msra.mxu0 %vm162_vm1, %v4592_v33 }
 0x7a9   :  { %3881 = vmatmul.mubr.msk.f32.vlgmr.msra.gmra.mxu0 %vm149_vm3, %v3427_v34  ;;  %3900 = vmatprep.subr.mxu0 %v4079_v38 }
 0x7aa   :  { %3883 = vmatprep.mubr.msk.f32.mxu0 %vm149_vm3, %v3428_v6 }
 0x7ad   :  { %3884 = vmatmul.mubr.msk.f32.gmra.mxu0 %vm149_vm3, %v3429_v12 }
 0x7ae   :  { %3908 = vmatprep.mubr.msk.f32.mxu0 %vm4080_vm5, %v4079_v38 }
 0x869   :  { %v3882_v37 = vpop.f32.mrf.mxu0 }
 0x86a   :  { %v1861_v44 = vadd.f32 %v3882_v37, %v3874_v35  ;;  %v2128_v35 = vpop.permute.xlu1 %2127 }
 0x86b   :  { %v1855_v41 = vpop.f32.mrf.mxu0 }
 0x86c   :  { %v1856_v48 = vadd.f32 %v1855_v41, %v1755_v36  ;;  %v1900_v52 = vadd.f32 %v1887_v51, %v1861_v44  ;;  %v3467_v44 = vld [vmem:[%s4813_s1 + $0x88] sm:$0xff] }
 0x86d   :  { %v3885_v43 = vpop.f32.mrf.mxu0 }
 0x86e   :  { %v1871_v45 = vadd.f32 %v3885_v43, %v3877_v40  ;;  %v1899_v56 = vadd.f32 %v1882_v55, %v1856_v48  ;;  %v1904_v58 = vmax.f32 %v1900_v52, 0.0  ;;  %v2440_v52 = vpop.permute.xlu1 %2439 }
 0x86f   :  { %v1865_v47 = vpop.f32.mrf.mxu0 }
 0x870   :  { %v1902_v49 = vadd.f32 %v1897_v39, %v1871_v45  ;;  %v1866_v50 = vadd.f32 %v1865_v47, %v1765_v46  ;;  %v1903_v59 = vmax.f32 %v1899_v56, 0.0  ;;  %v3488_v45 = vld [vmem:[%s4816_s4 + $0x80] sm:$0xff] }
 0x872   :  { %v1906_v53 = vmax.f32 %v1902_v49, 0.0  ;;  %v1901_v54 = vadd.f32 %v1892_v42, %v1866_v50  ;;  %v2445_v49 = vpop.permute.xlu0 %2444 }
 0x874   :  { %v1905_v57 = vmax.f32 %v1901_v54, 0.0  ;;  %3886 = vmatprep.subr.mxu1 %v1906_v53 }
 0x875   :  { %3887 = vmatpush3.msra.mxu1 %v1906_v53 }
 0x876   :  { %3888 = vmatprep.subr.mxu1 %v1905_v57 }
 0x877   :  { %3889 = vmatpush3.msra.mxu1 %v1905_v57 }
 0x878   :  { %3890 = vmatprep.subr.mxu1 %v1904_v58 }
 0x879   :  { %3891 = vmatpush3.msra.mxu1 %v1904_v58 }
 0x87a   :  { %3892 = vmatprep.subr.mxu1 %v1903_v59 }
 0x87b   :  { %3893 = vmatpush3.msra.mxu1 %v1903_v59 }
 0x87c   :  { %3895 = vmatmul.mubr.msk.f32.vlgmr.msra.gmra.mxu1 %vm310_vm4, %v3449_v60  ;;  %3911 = vmatprep.subr.mxu1 %v4079_v38 }
 0x87d   :  { %3897 = vmatprep.mubr.msk.f32.mxu1 %vm310_vm4, %v3450_v61  ;;  %v2435_v61 = vpop.permute.xlu0 %2434 }
 0x880   :  { %3898 = vmatmul.mubr.msk.f32.gmra.mxu1 %vm310_vm4, %v3451_v62 }
 0x881   :  { %3919 = vmatprep.mubr.msk.f32.mxu1 %vm4080_vm5, %v4079_v38 }
 0x93c   :  { %v3896_v0 = vpop.f32.mrf.mxu1 }
 0x93d   :  { %v2021_v10 = vadd.f32 %v3896_v0, %v1925_v8 }
 0x93e   :  { %v2015_v3 = vpop.f32.mrf.mxu1 }
 0x93f   :  { %v2016_v16 = vadd.f32 %v2015_v3, %v1920_v15  ;;  %v2035_v18 = vmax.f32 %v2021_v10, 0.0  ;;  %v3490_v10 = vld [vmem:[%s4816_s4 + $0x90] sm:$0xff] }
 0x940   :  { %v3899_v5 = vpop.f32.mrf.mxu1 }
 0x941   :  { %v2031_v7 = vadd.f32 %v3899_v5, %v1935_v63  ;;  %v2034_v19 = vmax.f32 %v2016_v16, 0.0 }
 0x942   :  { %v2025_v9 = vpop.f32.mrf.mxu1 }
 0x943   :  { %v2037_v11 = vmax.f32 %v2031_v7, 0.0  ;;  %v2026_v13 = vadd.f32 %v2025_v9, %v1930_v1  ;;  %v2430_v1 = vpop.permute.xlu1 %2429  ;;  %v3489_v9 = vld [vmem:[%s4816_s4 + $0x88] sm:$0xff] }
 0x945   :  { %v2036_v17 = vmax.f32 %v2026_v13, 0.0  ;;  %3901 = vmatpush3.msra.mxu0 %v2037_v11  ;;  %3912 = vmatpush3.msra.mxu1 %v2037_v11  ;;  %v3491_v11 = vld [vmem:[%s4816_s4 + $0x98] sm:$0xff]  ;;  %v2483_v13 = vpop.permute.xlu0 %2482 }
 0x946   :  { %3902 = vmatprep.subr.mxu0 %v4079_v38  ;;  %3913 = vmatprep.subr.mxu1 %v4079_v38 }
 0x947   :  { %3903 = vmatpush3.msra.mxu0 %v2036_v17  ;;  %3914 = vmatpush3.msra.mxu1 %v2036_v17  ;;  %v2478_v16 = vpop.permute.xlu1 %2477 }
 0x948   :  { %3904 = vmatprep.subr.mxu0 %v4079_v38  ;;  %3915 = vmatprep.subr.mxu1 %v4079_v38 }
 0x949   :  { %3905 = vmatpush3.msra.mxu0 %v2035_v18  ;;  %3916 = vmatpush3.msra.mxu1 %v2035_v18 }
 0x94a   :  { %3906 = vmatprep.subr.mxu0 %v4079_v38  ;;  %3917 = vmatprep.subr.mxu1 %v4079_v38 }
 0x94b   :  { %3907 = vmatpush3.msra.mxu0 %v2034_v19  ;;  %3918 = vmatpush3.msra.mxu1 %v2034_v19 }
 0x94c   :  { %3909 = vmatmul.mubr.msk.f32.vlgmr.msra.gmra.mxu0 %vm310_vm4, %v3460_v20  ;;  %3920 = vmatmul.mubr.msk.f32.vlgmr.msra.gmra.mxu1 %vm310_vm4, %v3463_v21  ;;  %v2473_v20 = vpop.permute.xlu0 %2472 }
 0x94d   :  { %3922 = vmatprep.subr.msk.mxu0 %vm60_vm0, %v4149_v4  ;;  %3924 = vmatprep.mubr.msk.f32.mxu0 %vm47_vm2, %v3470_v23 }
 0x94e   :  { %3923 = vmatpush3.msk.msra.mxu0 %vm60_vm0, %v4149_v4  ;;  %3932 = vmatprep.mubr.msk.f32.mxu1 %vm149_vm3, %v3466_v25 }
 0x950   :  { %3925 = vmatmul.mubr.msk.f32.vlgmr.msra.gmra.mxu0 %vm47_vm2, %v3471_v24 }
 0x951   :  { %3927 = vmatprep.mubr.msk.f32.mxu0 %vm47_vm2, %v3472_v2  ;;  %v2468_v2 = vpop.permute.xlu1 %2467 }
 0x954   :  { %3928 = vmatmul.mubr.msk.f32.gmra.mxu0 %vm47_vm2, %v3473_v26 }
 0x955   :  { %3946 = vmatprep.mubr.msk.f32.mxu0 %vm310_vm4, %v3488_v45 }
 0xa0c   :  { %v2116_v29 = vpop.f32.mrf.mxu0  ;;  %v2199_v30 = vpop.f32.mrf.mxu1 }
 0xa0d   :  { %v2117_v31 = vadd.f32 %v2116_v29, %v2045_v27  ;;  %v2200_v36 = vadd.f32 %v2199_v30, %v2128_v35  ;;  %v3513_v35 = vld [vmem:[%s4814_s2 + $0xb8] sm:$0xff] }
 0xa0e   :  { %v3910_v32 = vpop.f32.mrf.mxu0  ;;  %v3921_v34 = vpop.f32.mrf.mxu1 }
 0xa0f   :  { %4044 = vtanh.f32 %v2117_v31  ;;  %v2210_v41 = vrot.slane %v2200_v36, 6  ;;  %v3500_v31 = vld [vmem:[%s4818_s6 + $0x8] sm:$0x3]  ;;  %v3510_v34 = vld [vmem:[%s4814_s2 + $0xa0] sm:$0xff]  ;;  %v2593_v36 = vpop.permute.xlu0 %2592 }
 0xa10   :  { %v3926_v46 = vpop.f32.mrf.mxu0  ;;  %v3503_v32 = vld [vmem:[%s4819_s7 + $0x8] sm:$0x3] }
 0xa12   :  { %v2302_v47 = vpop.f32.mrf.mxu0 }
 0xa14   :  { %v3929_v50 = vpop.f32.mrf.mxu0 }
 0xa16   :  { %v2312_v56 = vpop.f32.mrf.mxu0 }
 0xa1c   :  { %v4045_v6 = vpop.eup %4044 }
 0xa1d   :  { %v2203_v12 = vmul.f32 1.442695, %v4045_v6  ;;  %v4671_v14 = vadd.f32 %v4045_v6, %v4589_v28  ;;  %v3468_v28 = vld [vmem:[%s4813_s1 + $0x90] sm:$0xff]  ;;  %v3511_v6 = vld [vmem:[%s4814_s2 + $0xa8] sm:$0xff] }
 0xa1f   :  { %4046 = vpow2.f32 %v2203_v12  ;;  %v3506_v12 = vld [vmem:[%s4813_s1 + $0xa0] sm:$0xff] }
 0xa2c   :  { %v4047_v37 = vpop.eup %4046 }
 0xa2d   :  { %v2206_v39 = vrot.slane %v4047_v37, 6 }
 0xa2f   :  { %v2208_v40 = vmul.f32 %v2206_v39, %v4510_v22  ;;  %v3469_v22 = vld [vmem:[%s4813_s1 + $0x98] sm:$0xff] }
 0xa31   :  { %v4674_v42 = vadd.f32 %v2210_v41, %v2208_v40 }
 0xa33   :  { %v2322_v43 = vrot.slane %v4674_v42, 2 }
 0xa35   :  { %3930 = vmatprep.subr.msk.mxu1 %vm162_vm1, %v2322_v43 }
 0xa36   :  { %3931 = vmatpush3.msk.msra.mxu1 %vm162_vm1, %v2322_v43 }
 0xa37   :  { %3933 = vmatmul.mubr.msk.f32.vlgmr.msra.gmra.mxu1 %vm149_vm3, %v3467_v44  ;;  %3952 = vmatprep.subr.mxu1 %v4079_v38 }
 0xa38   :  { %3935 = vmatprep.mubr.msk.f32.mxu1 %vm149_vm3, %v3468_v28 }
 0xa3b   :  { %3936 = vmatmul.mubr.msk.f32.gmra.mxu1 %vm149_vm3, %v3469_v22 }
 0xa3c   :  { %3960 = vmatprep.mubr.msk.f32.mxu1 %vm4080_vm5, %v4079_v38 }
 0xaf7   :  { %v3934_v48 = vpop.f32.mrf.mxu1 }
 0xaf8   :  { %v2409_v54 = vadd.f32 %v3934_v48, %v3926_v46  ;;  %v2676_v46 = vpop.permute.xlu1 %2675 }
 0xaf9   :  { %v2403_v51 = vpop.f32.mrf.mxu1 }
 0xafa   :  { %v2404_v58 = vadd.f32 %v2403_v51, %v2302_v47  ;;  %v2448_v62 = vadd.f32 %v2435_v61, %v2409_v54  ;;  %v3508_v51 = vld [vmem:[%s4813_s1 + $0xb0] sm:$0xff] }
 0xafb   :  { %v3937_v53 = vpop.f32.mrf.mxu1 }
 0xafc   :  { %v2419_v55 = vadd.f32 %v3937_v53, %v3929_v50  ;;  %v2447_v3 = vadd.f32 %v2430_v1, %v2404_v58  ;;  %v2452_v7 = vmax.f32 %v2448_v62, 0.0  ;;  %v3507_v50 = vld [vmem:[%s4813_s1 + $0xa8] sm:$0xff]  ;;  %v2981_v58 = vpop.permute.xlu1 %2980 }
 0xafd   :  { %v2413_v57 = vpop.f32.mrf.mxu1 }
 0xafe   :  { %v2450_v59 = vadd.f32 %v2445_v49, %v2419_v55  ;;  %v2414_v60 = vadd.f32 %v2413_v57, %v2312_v56  ;;  %v2451_v8 = vmax.f32 %v2447_v3, 0.0  ;;  %v2986_v55 = vpop.permute.xlu0 %2985 }
 0xb00   :  { %v2454_v63 = vmax.f32 %v2450_v59, 0.0  ;;  %v2449_v0 = vadd.f32 %v2440_v52, %v2414_v60 }
 0xb02   :  { %v2453_v5 = vmax.f32 %v2449_v0, 0.0  ;;  %3938 = vmatprep.subr.mxu0 %v2454_v63 }
 0xb03   :  { %3939 = vmatpush3.msra.mxu0 %v2454_v63 }
 0xb04   :  { %3940 = vmatprep.subr.mxu0 %v2453_v5 }
 0xb05   :  { %3941 = vmatpush3.msra.mxu0 %v2453_v5  ;;  %v2976_v5 = vpop.permute.xlu0 %2975 }
 0xb06   :  { %3942 = vmatprep.subr.mxu0 %v2452_v7 }
 0xb07   :  { %3943 = vmatpush3.msra.mxu0 %v2452_v7 }
 0xb08   :  { %3944 = vmatprep.subr.mxu0 %v2451_v8 }
 0xb09   :  { %3945 = vmatpush3.msra.mxu0 %v2451_v8 }
 0xb0a   :  { %3947 = vmatmul.mubr.msk.f32.vlgmr.msra.gmra.mxu0 %vm310_vm4, %v3489_v9  ;;  %3963 = vmatprep.subr.mxu0 %v4079_v38 }
 0xb0b   :  { %3949 = vmatprep.mubr.msk.f32.mxu0 %vm310_vm4, %v3490_v10  ;;  %v2971_v10 = vpop.permute.xlu1 %2970 }
 0xb0e   :  { %3950 = vmatmul.mubr.msk.f32.gmra.mxu0 %vm310_vm4, %v3491_v11 }
 0xb0f   :  { %3971 = vmatprep.mubr.msk.f32.mxu0 %vm4080_vm5, %v4079_v38 }
 0xbca   :  { %v3948_v15 = vpop.f32.mrf.mxu0 }
 0xbcb   :  { %v2569_v23 = vadd.f32 %v3948_v15, %v2473_v20  ;;  %v3024_v20 = vpop.permute.xlu0 %3023 }
 0xbcc   :  { %v2563_v17 = vpop.f32.mrf.mxu0 }
 0xbcd   :  { %v2564_v26 = vadd.f32 %v2563_v17, %v2468_v2  ;;  %v2583_v29 = vmax.f32 %v2569_v23, 0.0  ;;  %v3529_v17 = vld [vmem:[%s4816_s4 + $0xa8] sm:$0xff]  ;;  %v3019_v23 = vpop.permute.xlu1 %3018 }
 0xbce   :  { %v3951_v18 = vpop.f32.mrf.mxu0 }
 0xbcf   :  { %v2579_v19 = vadd.f32 %v3951_v18, %v2483_v13  ;;  %v2582_v30 = vmax.f32 %v2564_v26, 0.0  ;;  %v3530_v18 = vld [vmem:[%s4816_s4 + $0xb0] sm:$0xff]  ;;  %v3014_v26 = vpop.permute.xlu0 %3013 }
 0xbd0   :  { %v2573_v21 = vpop.f32.mrf.mxu0 }
 0xbd1   :  { %v2585_v24 = vmax.f32 %v2579_v19, 0.0  ;;  %v2574_v25 = vadd.f32 %v2573_v21, %v2478_v16  ;;  %v3531_v19 = vld [vmem:[%s4816_s4 + $0xb8] sm:$0xff] }
 0xbd3   :  { %v2584_v27 = vmax.f32 %v2574_v25, 0.0  ;;  %3953 = vmatpush3.msra.mxu1 %v2585_v24  ;;  %3964 = vmatpush3.msra.mxu0 %v2585_v24 }
 0xbd4   :  { %3954 = vmatprep.subr.mxu1 %v4079_v38  ;;  %3965 = vmatprep.subr.mxu0 %v4079_v38 }
 0xbd5   :  { %3955 = vmatpush3.msra.mxu1 %v2584_v27  ;;  %3966 = vmatpush3.msra.mxu0 %v2584_v27 }
 0xbd6   :  { %3956 = vmatprep.subr.mxu1 %v4079_v38  ;;  %3967 = vmatprep.subr.mxu0 %v4079_v38 }
 0xbd7   :  { %3957 = vmatpush3.msra.mxu1 %v2583_v29  ;;  %3968 = vmatpush3.msra.mxu0 %v2583_v29 }
 0xbd8   :  { %3958 = vmatprep.subr.mxu1 %v4079_v38  ;;  %3969 = vmatprep.subr.mxu0 %v4079_v38 }
 0xbd9   :  { %3959 = vmatpush3.msra.mxu1 %v2582_v30  ;;  %3970 = vmatpush3.msra.mxu0 %v2582_v30 }
 0xbda   :  { %3961 = vmatmul.mubr.msk.f32.vlgmr.msra.gmra.mxu1 %vm310_vm4, %v3500_v31  ;;  %3972 = vmatmul.mubr.msk.f32.vlgmr.msra.gmra.mxu0 %vm310_vm4, %v3503_v32  ;;  %v3009_v32 = vpop.permute.xlu1 %3008 }
 0xbdb   :  { %3974 = vmatprep.subr.msk.mxu1 %vm60_vm0, %v4149_v4  ;;  %3976 = vmatprep.mubr.msk.f32.mxu1 %vm47_vm2, %v3510_v34 }
 0xbdc   :  { %3975 = vmatpush3.msk.msra.mxu1 %vm60_vm0, %v4149_v4  ;;  %3984 = vmatprep.mubr.msk.f32.mxu0 %vm149_vm3, %v3506_v12  ;;  %v3512_v4 = vld [vmem:[%s4814_s2 + $0xb0] sm:$0xff] }
 0xbde   :  { %3977 = vmatmul.mubr.msk.f32.vlgmr.msra.gmra.mxu1 %vm47_vm2, %v3511_v6 }
 0xbdf   :  { %3979 = vmatprep.mubr.msk.f32.mxu1 %vm47_vm2, %v3512_v4 }
 0xbe2   :  { %3980 = vmatmul.mubr.msk.f32.gmra.mxu1 %vm47_vm2, %v3513_v35  ;;  %v3540_v35 = vld [vmem:[%s4818_s6 + $0xa] sm:$0x3]  ;;  %s4081_s6 = smov [#allocation2]  }
 0xc9a   :  { %v2664_v37 = vpop.f32.mrf.mxu1  ;;  %v2747_v39 = vpop.f32.mrf.mxu0 }
 0xc9b   :  { %v2665_v40 = vadd.f32 %v2664_v37, %v2593_v36  ;;  %v2748_v47 = vadd.f32 %v2747_v39, %v2676_v46  ;;  %v3543_v36 = vld [vmem:[%s4819_s7 + $0xa] sm:$0x3]  ;;  %v3134_v37 = vpop.permute.xlu0 %3133  ;;  %s3322_s7 = sshll.u32 %s4081_s6, 4  ;;  %s3323_s7 = int_to_ptr.vmem [resolvable:$true] %s3322_s7 }
 0xc9c   :  { %v3962_v41 = vpop.f32.mrf.mxu1  ;;  %v3973_v43 = vpop.f32.mrf.mxu0  ;;  %s4056_s22 = scalar_lea.vmem %s3323_s7, 128  ;;  %p4061_p1 = scmp.lt.s32.totalorder %s3323_s7, %s3323_s7 }
 0xc9d   :  { %4048 = vtanh.f32 %v2665_v40  ;;  %p4057_p0 = scmp.ne.s32.totalorder %s3323_s7, %s4056_s22  ;;  %p4062_p2 = scmp.lt.s32.totalorder %s4056_s22, %s4056_s22 }
 0xc9e   :  { %v3978_v52 = vpop.f32.mrf.mxu1 }
 0xc9f   :  { %p4063_p3 = por %p4062_p2, %p4061_p1 }
 0xca0   :  { %v2844_v53 = vpop.f32.mrf.mxu1 }
 0xca1   :  { %p4064_p4 = pnand %p4063_p3, %p4057_p0 }
 0xca2   :  { %v3981_v57 = vpop.f32.mrf.mxu1 }
 0xca4   :  { %v2854_v62 = vpop.f32.mrf.mxu1 }
 0xcaa   :  { %v4049_v44 = vpop.eup %4048 }
 0xcab   :  { %v2751_v28 = vmul.f32 1.442695, %v4049_v44  ;;  %v4752_v22 = vadd.f32 %v4049_v44, %v4671_v14  ;;  %v3528_v14 = vld [vmem:[%s4816_s4 + $0xa0] sm:$0xff] }
 0xcac   :  { %3998 = vmatprep.mubr.msk.f32.mxu1 %vm310_vm4, %v3528_v14 }
 0xcad   :  { %4050 = vpow2.f32 %v2751_v28 }
 0xcba   :  { %v4051_v45 = vpop.eup %4050 }
 0xcbb   :  { %v2753_v48 = vmul.f32 %v4051_v45, %v4592_v33  ;;  %v3509_v33 = vld [vmem:[%s4813_s1 + $0xb8] sm:$0xff] }
 0xcbd   :  { %v2754_v49 = vadd.f32 %v2753_v48, %v2748_v47 }
 0xcbf   :  { %3982 = vmatprep.subr.msk.mxu0 %vm162_vm1, %v2754_v49  ;;  %3304 = vst.msk [vmem:[#allocation2] sm:$0x3] %vm3303_vm6, %v2754_v49 }
 0xcc0   :  { %3983 = vmatpush3.msk.msra.mxu0 %vm162_vm1, %v2754_v49 }
 0xcc1   :  { %3985 = vmatmul.mubr.msk.f32.vlgmr.msra.gmra.mxu0 %vm149_vm3, %v3507_v50  ;;  %4004 = vmatprep.subr.mxu0 %v4079_v38 }
 0xcc2   :  { %3987 = vmatprep.mubr.msk.f32.mxu0 %vm149_vm3, %v3508_v51 }
 0xcc5   :  { %3988 = vmatmul.mubr.msk.f32.gmra.mxu0 %vm149_vm3, %v3509_v33  ;;  %v3217_v33 = vpop.permute.xlu1 %3216 }
 0xcc6   :  { %4012 = vmatprep.mubr.msk.f32.mxu0 %vm4080_vm5, %v4079_v38 }
 0xd81   :  { %v3986_v54 = vpop.f32.mrf.mxu0 }
 0xd82   :  { %v2950_v60 = vadd.f32 %v3986_v54, %v3978_v52 }
 0xd83   :  { %v2944_v56 = vpop.f32.mrf.mxu0 }
 0xd84   :  { %v2945_v0 = vadd.f32 %v2944_v56, %v2844_v53  ;;  %v2989_v7 = vadd.f32 %v2976_v5, %v2950_v60 }
 0xd85   :  { %v3989_v59 = vpop.f32.mrf.mxu0 }
 0xd86   :  { %v2960_v61 = vadd.f32 %v3989_v59, %v3981_v57  ;;  %v2988_v11 = vadd.f32 %v2971_v10, %v2945_v0  ;;  %v2993_v15 = vmax.f32 %v2989_v7, 0.0 }
 0xd87   :  { %v2954_v63 = vpop.f32.mrf.mxu0 }
 0xd88   :  { %v2991_v1 = vadd.f32 %v2986_v55, %v2960_v61  ;;  %v2955_v3 = vadd.f32 %v2954_v63, %v2854_v62  ;;  %v2992_v16 = vmax.f32 %v2988_v11, 0.0 }
 0xd8a   :  { %v2995_v8 = vmax.f32 %v2991_v1, 0.0  ;;  %v2990_v9 = vadd.f32 %v2981_v58, %v2955_v3 }
 0xd8c   :  { %v2994_v13 = vmax.f32 %v2990_v9, 0.0  ;;  %3990 = vmatprep.subr.mxu1 %v2995_v8 }
 0xd8d   :  { %3991 = vmatpush3.msra.mxu1 %v2995_v8 }
 0xd8e   :  { %3992 = vmatprep.subr.mxu1 %v2994_v13 }
 0xd8f   :  { %3993 = vmatpush3.msra.mxu1 %v2994_v13 }
 0xd90   :  { %3994 = vmatprep.subr.mxu1 %v2993_v15 }
 0xd91   :  { %3995 = vmatpush3.msra.mxu1 %v2993_v15 }
 0xd92   :  { %3996 = vmatprep.subr.mxu1 %v2992_v16 }
 0xd93   :  { %3997 = vmatpush3.msra.mxu1 %v2992_v16 }
 0xd94   :  { %3999 = vmatmul.mubr.msk.f32.vlgmr.msra.gmra.mxu1 %vm310_vm4, %v3529_v17  ;;  %4015 = vmatprep.subr.mxu1 %v4079_v38 }
 0xd95   :  { %4001 = vmatprep.mubr.msk.f32.mxu1 %vm310_vm4, %v3530_v18 }
 0xd98   :  { %4002 = vmatmul.mubr.msk.f32.gmra.mxu1 %vm310_vm4, %v3531_v19 }
 0xd99   :  { %4023 = vmatprep.mubr.msk.f32.mxu1 %vm4080_vm5, %v4079_v38 }
 0xe54   :  { %v4000_v21 = vpop.f32.mrf.mxu1 }
 0xe55   :  { %v3110_v29 = vadd.f32 %v4000_v21, %v3014_v26 }
 0xe56   :  { %v3104_v24 = vpop.f32.mrf.mxu1 }
 0xe57   :  { %v3105_v34 = vadd.f32 %v3104_v24, %v3009_v32  ;;  %v3124_v12 = vmax.f32 %v3110_v29, 0.0 }
 0xe58   :  { %v4003_v25 = vpop.f32.mrf.mxu1 }
 0xe59   :  { %v3120_v2 = vadd.f32 %v4003_v25, %v3024_v20  ;;  %v3123_v4 = vmax.f32 %v3105_v34, 0.0 }
 0xe5a   :  { %v3114_v27 = vpop.f32.mrf.mxu1 }
 0xe5b   :  { %v3126_v30 = vmax.f32 %v3120_v2, 0.0  ;;  %v3115_v31 = vadd.f32 %v3114_v27, %v3019_v23 }
 0xe5d   :  { %v3125_v6 = vmax.f32 %v3115_v31, 0.0  ;;  %4005 = vmatpush3.msra.mxu0 %v3126_v30  ;;  %4016 = vmatpush3.msra.mxu1 %v3126_v30 }
 0xe5e   :  { %4006 = vmatprep.subr.mxu0 %v4079_v38  ;;  %4017 = vmatprep.subr.mxu1 %v4079_v38 }
 0xe5f   :  { %4007 = vmatpush3.msra.mxu0 %v3125_v6  ;;  %4018 = vmatpush3.msra.mxu1 %v3125_v6 }
 0xe60   :  { %4008 = vmatprep.subr.mxu0 %v4079_v38  ;;  %4019 = vmatprep.subr.mxu1 %v4079_v38 }
 0xe61   :  { %4009 = vmatpush3.msra.mxu0 %v3124_v12  ;;  %4020 = vmatpush3.msra.mxu1 %v3124_v12 }
 0xe62   :  { %4010 = vmatprep.subr.mxu0 %v4079_v38  ;;  %4021 = vmatprep.subr.mxu1 %v4079_v38 }
 0xe63   :  { %4011 = vmatpush3.msra.mxu0 %v3123_v4  ;;  %4022 = vmatpush3.msra.mxu1 %v3123_v4 }
 0xe64   :  { %4013 = vmatmul.mubr.msk.f32.vlgmr.msra.gmra.mxu0 %vm310_vm4, %v3540_v35  ;;  %4024 = vmatmul.mubr.msk.f32.vlgmr.msra.gmra.mxu1 %vm310_vm4, %v3543_v36 }
 0xf24   :  { %v3205_v39 = vpop.f32.mrf.mxu0  ;;  %v3288_v40 = vpop.f32.mrf.mxu1 }
 0xf25   :  { %v3206_v41 = vadd.f32 %v3205_v39, %v3134_v37  ;;  %v3289_v52 = vadd.f32 %v3288_v40, %v3217_v33 }
 0xf26   :  { %v4014_v43 = vpop.f32.mrf.mxu0  ;;  %v4025_v44 = vpop.f32.mrf.mxu1 }
 0xf27   :  { %4052 = vtanh.f32 %v3206_v41 }
 0xf34   :  { %v4053_v28 = vpop.eup %4052 }
 0xf35   :  { %v3292_v45 = vmul.f32 1.442695, %v4053_v28  ;;  %v3302_v46 = vadd.f32 %v4053_v28, %v4752_v22  ;;  %v3299_v22 = vrot.slane %v3289_v52, 6 }
 0xf37   :  { %4054 = vpow2.f32 %v3292_v45  ;;  %v3307_v38 = vsel %vm3303_vm6, %v3302_v46, 0.0 }
 0xf38   :  { %v3308_v47 = vrot.slane %v3307_v38, 4 }
 0xf3a   :  { %v3309_v48 = vadd.f32 %v3308_v47, %v3307_v38 }
 0xf3c   :  { %v3310_v49 = vrot.slane %v3309_v48, 2 }
 0xf3e   :  { %v3311_v50 = vadd.f32 %v3310_v49, %v3309_v48 }
 0xf40   :  { %v3312_v51 = vrot.slane %v3311_v50, 1 }
 0xf42   :  { %v3313_v14 = vadd.f32 %v3312_v51, %v3311_v50 }
 0xf44   :  { %v4055_v53 = vpop.eup %4054  ;;  %3315 = vst.msk [vmem:[#allocation2 + $0x4] sm:$0x1] %vm3314_vm7, %v3313_v14 }
 0xf45   :  { %v3295_v54 = vrot.slane %v4055_v53, 6 }
 0xf47   :  { %v3297_v55 = vmul.f32 %v3295_v54, %v4674_v42 }
 0xf49   :  { %v3301_v56 = vadd.f32 %v3299_v22, %v3297_v55 }
 0xf4b   :  { %3306 = vst.msk [vmem:[#allocation2] sm:$0xc] %vm3305_vm8, %v3301_v56 }
 0xf4c   :  { %4067 = shalt.err (!%p4064_p4)
}
 0xf4d   :  { %3325 = dma.vmem_to_hbm [thread:$0]  %s3323_s7, 128, %s4822_s10, [#allocation3]  }
 0xf4e   :  { %4076 = dma.done.wait [#allocation3], 128  }
 0xf4f   :  { %4077 = vsyncadd [#allocation3], 4294967168 }
 0xf50   :  { %3329 = vsyncpa [#allocation3], 1 }

</bundles_post_ra>
